<compile_context>
chip_gen: v5e
topology: v5e:2x2
jax: 0.10.0
libtpu: 0.0.40
codegen_flags: <defaults>
</compile_context>

<pallas_src>
import jax
import jax.numpy as jnp
from jax.experimental import pallas as pl
from jax.experimental.pallas import tpu as pltpu  # noqa: F401  (no TPU-specific params needed)

EPS = 1e-5          # BatchNorm eps
LEAKY_SLOPE = 0.2
ATTR_DIM = 5


def _round_up(x, m):
    return (x + m - 1) // m * m


# ----------------------------------------------------------------------------
# The single fused Pallas kernel: whole Denoiser forward, VMEM resident.
# ----------------------------------------------------------------------------
def fused_forward_kernel(x1_ref, x2_ref, a_ref,
                         m0_ref, b0_ref, m1_ref, b1_ref,
                         wz_ref, wa_ref, bfc_ref,
                         md1_ref, bd1_ref, md2z_ref, md2a_ref, bd2_ref,
                         e1_ref, e2_ref, dec_ref):
    def lrelu(v):
        return jnp.where(v > 0, v, LEAKY_SLOPE * v)

    def encode(x):
        # enc0: Conv2d(4->8,k4,s2,p1)+BN+LeakyReLU folded into (1024,512) matrix + bias
        h = lrelu(jnp.dot(x, m0_ref[...], preferred_element_type=jnp.float32) + b0_ref[...])
        # enc1: Conv2d(8->16,k4,s2,p1)+BN+LeakyReLU folded into (512,256) matrix + bias
        return lrelu(jnp.dot(h, m1_ref[...], preferred_element_type=jnp.float32) + b1_ref[...])

    e1 = encode(x1_ref[...])          # (Bp, 256) — NCHW-flattened encoding of xadv1
    e2 = encode(x2_ref[...])          # (Bp, 256)
    e1_ref[...] = e1
    e2_ref[...] = e2

    z = (e1 + e2) * 0.5               # latent fusion, fused into the same kernel
    a = a_ref[...]                    # (Bp, 128) attrs padded to 128 lanes

    # dec0: Linear(256+5 -> 64)+BN+LeakyReLU; attr concat expressed as a second matmul.
    y = lrelu(jnp.dot(z, wz_ref[...], preferred_element_type=jnp.float32)
              + jnp.dot(a, wa_ref[...], preferred_element_type=jnp.float32)
              + bfc_ref[...])
    # dec1: ConvTranspose2d(64->16,k4,s2,p1) on a 1x1 input == dense 64x64 matmul, +BN+ReLU.
    y = jnp.maximum(jnp.dot(y, md1_ref[...], preferred_element_type=jnp.float32)
                    + bd1_ref[...], 0.0)
    # dec2: ConvTranspose2d(16+5 -> 4,k4,s2,p1) on 2x2, attrs spatially replicated
    #       (replication folded into md2a at prep time), no norm, Tanh.
    y = (jnp.dot(y, md2z_ref[...], preferred_element_type=jnp.float32)
         + jnp.dot(a, md2a_ref[...], preferred_element_type=jnp.float32)
         + bd2_ref[...])
    dec_ref[...] = jnp.tanh(y)        # (Bp, 64) = NCHW-flattened (B,4,4,4)


# ----------------------------------------------------------------------------
# One-time parameter preparation (hoisted out of the forward path).
# ----------------------------------------------------------------------------
def _conv_matrix(w_oihw, in_shape, stride, pad):
    """Dense matrix M s.t. flatten_NCHW(conv2d(x)) == flatten_NCHW(x) @ M (no bias)."""
    c_in, h, w = in_shape
    n_in = c_in * h * w
    basis = jnp.eye(n_in, dtype=jnp.float32).reshape(n_in, c_in, h, w)
    out = jax.lax.conv_general_dilated(
        basis, w_oihw.astype(jnp.float32),
        window_strides=(stride, stride),
        padding=((pad, pad), (pad, pad)),
        dimension_numbers=("NCHW", "OIHW", "NCHW"))
    c_out, ho, wo = out.shape[1:]
    return out.reshape(n_in, c_out * ho * wo), (c_out, ho, wo)


def _convT_matrix(w_iohw, in_shape, stride, pad):
    """Dense matrix for PyTorch ConvTranspose2d: zero-dilated input, pad k-1-p, flipped kernel."""
    c_in, h, w = in_shape
    k = w_iohw.shape[2]
    w_conv = jnp.transpose(w_iohw[:, :, ::-1, ::-1], (1, 0, 2, 3)).astype(jnp.float32)  # (C_out,C_in,k,k)
    n_in = c_in * h * w
    basis = jnp.eye(n_in, dtype=jnp.float32).reshape(n_in, c_in, h, w)
    out = jax.lax.conv_general_dilated(
        basis, w_conv,
        window_strides=(1, 1),
        padding=((k - 1 - pad, k - 1 - pad), (k - 1 - pad, k - 1 - pad)),
        lhs_dilation=(stride, stride),
        dimension_numbers=("NCHW", "OIHW", "NCHW"))
    c_out, ho, wo = out.shape[1:]
    return out.reshape(n_in, c_out * ho * wo), (c_out, ho, wo)


def _bn_affine(gamma, beta):
    # Eval-mode BatchNorm with fresh running stats (mean=0, var=1) folded to scale/shift.
    # TODO(synk): if real trained running stats are loaded, substitute them here.
    return gamma / jnp.sqrt(1.0 + EPS), beta


def prepare_params(p):
    """Fold conv geometry, conv bias and eval-mode BN into matmul-ready slabs (run once)."""
    f32 = jnp.float32
    prep = {}

    def fold_bn_conv(M, bias, gamma, beta, hw_out):
        scale, shift = _bn_affine(gamma, beta)
        scale_f = jnp.repeat(scale, hw_out)     # per-channel -> per NCHW-flat output element
        shift_f = jnp.repeat(shift, hw_out)
        bias_f = jnp.repeat(bias, hw_out)
        return M * scale_f[None, :], (bias_f * scale_f + shift_f)[None, :]

    # encoder conv 0: Conv2d(4->8, k4 s2 p1) on 16x16 + BN + LeakyReLU
    M, (c, h, w) = _conv_matrix(p["enc0_w"], (4, 16, 16), 2, 1)
    prep["M0"], prep["b0"] = fold_bn_conv(M, p["enc0_b"], p["enc0_g"], p["enc0_be"], h * w)
    # encoder conv 1: Conv2d(8->16, k4 s2 p1) on 8x8 + BN + LeakyReLU
    M, (c, h, w) = _conv_matrix(p["enc1_w"], (8, 8, 8), 2, 1)
    prep["M1"], prep["b1"] = fold_bn_conv(M, p["enc1_b"], p["enc1_g"], p["enc1_be"], h * w)

    # decoder fc: Linear(256+5 -> 64) + BN1d + LeakyReLU;  split z / attr columns, pad attrs to 128
    scale, shift = _bn_affine(p["dec0_g"], p["dec0_be"])
    Wf = p["dec0_w"] * scale[None, :]
    bf = p["dec0_b"] * scale + shift
    prep["Wz"] = Wf[:256]
    prep["Wa"] = jnp.zeros((128, 64), f32).at[:ATTR_DIM].set(Wf[256:])
    prep["bfc"] = bf[None, :]

    # decoder convT 1: ConvTranspose2d(64->16, k4 s2 p1) on 1x1 == 64x64 matmul, + BN + ReLU
    M, (c, h, w) = _convT_matrix(p["dec1_w"], (64, 1, 1), 2, 1)
    prep["Md1"], prep["bd1"] = fold_bn_conv(M, p["dec1_b"], p["dec1_g"], p["dec1_be"], h * w)

    # decoder convT 2: ConvTranspose2d(16+5 -> 4, k4 s2 p1) on 2x2, no norm, Tanh
    M, (c, h, w) = _convT_matrix(p["dec2_w"], (16 + ATTR_DIM, 2, 2), 2, 1)
    hw_in, n_out = 2 * 2, c * h * w
    Mz = M[:16 * hw_in]                                        # rows fed by the 16 feature channels
    Ma = M[16 * hw_in:].reshape(ATTR_DIM, hw_in, n_out).sum(1)  # fold spatial replication of attrs
    prep["Md2z"] = Mz
    prep["Md2a"] = jnp.zeros((128, n_out), f32).at[:ATTR_DIM].set(Ma)
    prep["bd2"] = jnp.repeat(p["dec2_b"], h * w)[None, :]
    return prep


# ----------------------------------------------------------------------------
# Parameter init matching the module's weights_init as written in the spec:
#   'Conv*' (Conv2d / ConvTranspose2d) weights ~ N(0, 0.02);
#   'BatchNorm*' weight ~ N(0, 0.02) (NOTE: the spec literally uses mean 0.0, not the usual
#   DCGAN 1.0), bias = 0.  Linear and conv biases keep simple placeholder inits (PyTorch's
#   default uniform init RNG cannot be reproduced bit-wise anyway).
# ----------------------------------------------------------------------------
def init_params(key):
    ks = jax.random.split(key, 9)

    def nrm(k, shape):
        return 0.02 * jax.random.normal(k, shape, jnp.float32)

    p = {}
    p["enc0_w"] = nrm(ks[0], (8, 4, 4, 4));   p["enc0_b"] = jnp.zeros((8,), jnp.float32)
    p["enc0_g"] = nrm(ks[1], (8,));           p["enc0_be"] = jnp.zeros((8,), jnp.float32)
    p["enc1_w"] = nrm(ks[2], (16, 8, 4, 4));  p["enc1_b"] = jnp.zeros((16,), jnp.float32)
    p["enc1_g"] = nrm(ks[3], (16,));          p["enc1_be"] = jnp.zeros((16,), jnp.float32)
    p["dec0_w"] = nrm(ks[4], (256 + ATTR_DIM, 64)); p["dec0_b"] = jnp.zeros((64,), jnp.float32)
    p["dec0_g"] = nrm(ks[5], (64,));                p["dec0_be"] = jnp.zeros((64,), jnp.float32)
    p["dec1_w"] = nrm(ks[6], (64, 16, 4, 4)); p["dec1_b"] = jnp.zeros((16,), jnp.float32)
    p["dec1_g"] = nrm(ks[7], (16,));          p["dec1_be"] = jnp.zeros((16,), jnp.float32)
    p["dec2_w"] = nrm(ks[8], (16 + ATTR_DIM, 4, 4, 4)); p["dec2_b"] = jnp.zeros((4,), jnp.float32)
    return p


# ----------------------------------------------------------------------------
# Forward: pad once at the input, one pallas_call, slice once at the output.
# ----------------------------------------------------------------------------
@jax.jit
def denoiser_forward(prep, xadv1, xadv2, insert_attrs):
    f32 = jnp.float32
    B = xadv1.shape[0]
    BP = _round_up(B, 8)                                      # sublane-aligned batch rows
    n_in = xadv1.shape[1] * xadv1.shape[2] * xadv1.shape[3]   # NCHW flatten (== torch .view)

    x1 = jnp.zeros((BP, n_in), f32).at[:B].set(xadv1.reshape(B, n_in).astype(f32))
    x2 = jnp.zeros((BP, n_in), f32).at[:B].set(xadv2.reshape(B, n_in).astype(f32))
    a = jnp.zeros((BP, 128), f32).at[:B, :ATTR_DIM].set(insert_attrs.astype(f32))

    e1p, e2p, dp = pl.pallas_call(
        fused_forward_kernel,
        out_shape=(
            jax.ShapeDtypeStruct((BP, 256), f32),   # encode(xadv1), NCHW-flattened
            jax.ShapeDtypeStruct((BP, 256), f32),   # encode(xadv2), NCHW-flattened
            jax.ShapeDtypeStruct((BP, 64), f32),    # decoder output, NCHW-flattened
        ),
    )(x1, x2, a,
      prep["M0"], prep["b0"], prep["M1"], prep["b1"],
      prep["Wz"], prep["Wa"], prep["bfc"],
      prep["Md1"], prep["bd1"], prep["Md2z"], prep["Md2a"], prep["bd2"])

    e1 = e1p[:B]
    e2 = e2p[:B]
    out = dp[:B].reshape(B, 4, 4, 4)                # NCHW, like the PyTorch module
    return out, e1, e2


# TODO(synk): training-mode semantics (batch-stat BatchNorm, Dropout RNG, reparameterize)
#             are never exercised by forward() in eval mode and are not implemented.

if __name__ == "__main__":
    key = jax.random.PRNGKey(0)
    kp, k1, k2, k3 = jax.random.split(key, 4)
    params = init_params(kp)
    prep = prepare_params(params)     # one-time weight prep, hoisted out of the forward path

    xadv1 = jax.random.normal(k1, (2, 4, 16, 16), jnp.float32)
    xadv2 = jax.random.normal(k2, (2, 4, 16, 16), jnp.float32)
    attrs = jax.random.normal(k3, (2, ATTR_DIM), jnp.float32)

    out, e1, e2 = denoiser_forward(prep, xadv1, xadv2, attrs)
    jax.block_until_ready((out, e1, e2))

    assert out.shape == (2, 4, 4, 4)
    assert e1.shape == (2, 256) and e2.shape == (2, 256)
    assert bool(jnp.all(jnp.isfinite(out)))
    print("KERNEL_OK")
</pallas_src>

<mosaic_0001>
module attributes {stable_mosaic.version = 11 : i64} {
  func.func @fused_forward_kernel(%arg0: memref<8x1024xf32, #tpu.memory_space<vmem>>, %arg1: memref<8x1024xf32, #tpu.memory_space<vmem>>, %arg2: memref<8x128xf32, #tpu.memory_space<vmem>>, %arg3: memref<1024x512xf32, #tpu.memory_space<vmem>>, %arg4: memref<1x512xf32, #tpu.memory_space<vmem>>, %arg5: memref<512x256xf32, #tpu.memory_space<vmem>>, %arg6: memref<1x256xf32, #tpu.memory_space<vmem>>, %arg7: memref<256x64xf32, #tpu.memory_space<vmem>>, %arg8: memref<128x64xf32, #tpu.memory_space<vmem>>, %arg9: memref<1x64xf32, #tpu.memory_space<vmem>>, %arg10: memref<64x64xf32, #tpu.memory_space<vmem>>, %arg11: memref<1x64xf32, #tpu.memory_space<vmem>>, %arg12: memref<64x64xf32, #tpu.memory_space<vmem>>, %arg13: memref<128x64xf32, #tpu.memory_space<vmem>>, %arg14: memref<1x64xf32, #tpu.memory_space<vmem>>, %arg15: memref<8x256xf32, #tpu.memory_space<vmem>>, %arg16: memref<8x256xf32, #tpu.memory_space<vmem>>, %arg17: memref<8x64xf32, #tpu.memory_space<vmem>>) attributes {dimension_semantics = [], scalar_prefetch = 0 : i64, scratch_operands = 0 : i64, tpu.core_type = #tpu.core_type<tc>} {
    %c0 = arith.constant 0 : index
    %c0_0 = arith.constant 0 : index
    %0 = vector.load %arg0[%c0, %c0_0] : memref<8x1024xf32, #tpu.memory_space<vmem>>, vector<8x1024xf32>
    %c0_1 = arith.constant 0 : index
    %c0_2 = arith.constant 0 : index
    %1 = vector.load %arg3[%c0_1, %c0_2] : memref<1024x512xf32, #tpu.memory_space<vmem>>, vector<1024x512xf32>
    %cst = arith.constant dense<0.000000e+00> : vector<8x512xf32>
    %2 = tpu.matmul %0, %1, %cst {dimension_numbers = #tpu.dot_dimension_numbers<[1], [0], [0], [1], [0, 0, 1, 1], [], []>} : vector<8x1024xf32>, vector<1024x512xf32>, vector<8x512xf32> -> vector<8x512xf32>
    %c0_3 = arith.constant 0 : index
    %c0_4 = arith.constant 0 : index
    %3 = vector.load %arg4[%c0_3, %c0_4] : memref<1x512xf32, #tpu.memory_space<vmem>>, vector<1x512xf32>
    %4 = vector.broadcast %3 : vector<1x512xf32> to vector<8x512xf32>
    %5 = arith.addf %2, %4 : vector<8x512xf32>
    %cst_5 = arith.constant 0.000000e+00 : f32
    %6 = vector.broadcast %cst_5 : f32 to vector<8x512xf32>
    %7 = arith.cmpf ogt, %5, %6 : vector<8x512xf32>
    %cst_6 = arith.constant 2.000000e-01 : f32
    %8 = vector.broadcast %cst_6 : f32 to vector<8x512xf32>
    %9 = arith.mulf %8, %5 : vector<8x512xf32>
    %10 = arith.select %7, %5, %9 : vector<8x512xi1>, vector<8x512xf32>
    %c0_7 = arith.constant 0 : index
    %c0_8 = arith.constant 0 : index
    %11 = vector.load %arg5[%c0_7, %c0_8] : memref<512x256xf32, #tpu.memory_space<vmem>>, vector<512x256xf32>
    %cst_9 = arith.constant dense<0.000000e+00> : vector<8x256xf32>
    %12 = tpu.matmul %10, %11, %cst_9 {dimension_numbers = #tpu.dot_dimension_numbers<[1], [0], [0], [1], [0, 0, 1, 1], [], []>} : vector<8x512xf32>, vector<512x256xf32>, vector<8x256xf32> -> vector<8x256xf32>
    %c0_10 = arith.constant 0 : index
    %c0_11 = arith.constant 0 : index
    %13 = vector.load %arg6[%c0_10, %c0_11] : memref<1x256xf32, #tpu.memory_space<vmem>>, vector<1x256xf32>
    %14 = vector.broadcast %13 : vector<1x256xf32> to vector<8x256xf32>
    %15 = arith.addf %12, %14 : vector<8x256xf32>
    %cst_12 = arith.constant 0.000000e+00 : f32
    %16 = vector.broadcast %cst_12 : f32 to vector<8x256xf32>
    %17 = arith.cmpf ogt, %15, %16 : vector<8x256xf32>
    %cst_13 = arith.constant 2.000000e-01 : f32
    %18 = vector.broadcast %cst_13 : f32 to vector<8x256xf32>
    %19 = arith.mulf %18, %15 : vector<8x256xf32>
    %20 = arith.select %17, %15, %19 : vector<8x256xi1>, vector<8x256xf32>
    %c0_14 = arith.constant 0 : index
    %c0_15 = arith.constant 0 : index
    %21 = vector.load %arg1[%c0_14, %c0_15] : memref<8x1024xf32, #tpu.memory_space<vmem>>, vector<8x1024xf32>
    %c0_16 = arith.constant 0 : index
    %c0_17 = arith.constant 0 : index
    %22 = vector.load %arg3[%c0_16, %c0_17] : memref<1024x512xf32, #tpu.memory_space<vmem>>, vector<1024x512xf32>
    %cst_18 = arith.constant dense<0.000000e+00> : vector<8x512xf32>
    %23 = tpu.matmul %21, %22, %cst_18 {dimension_numbers = #tpu.dot_dimension_numbers<[1], [0], [0], [1], [0, 0, 1, 1], [], []>} : vector<8x1024xf32>, vector<1024x512xf32>, vector<8x512xf32> -> vector<8x512xf32>
    %c0_19 = arith.constant 0 : index
    %c0_20 = arith.constant 0 : index
    %24 = vector.load %arg4[%c0_19, %c0_20] : memref<1x512xf32, #tpu.memory_space<vmem>>, vector<1x512xf32>
    %25 = vector.broadcast %24 : vector<1x512xf32> to vector<8x512xf32>
    %26 = arith.addf %23, %25 : vector<8x512xf32>
    %cst_21 = arith.constant 0.000000e+00 : f32
    %27 = vector.broadcast %cst_21 : f32 to vector<8x512xf32>
    %28 = arith.cmpf ogt, %26, %27 : vector<8x512xf32>
    %cst_22 = arith.constant 2.000000e-01 : f32
    %29 = vector.broadcast %cst_22 : f32 to vector<8x512xf32>
    %30 = arith.mulf %29, %26 : vector<8x512xf32>
    %31 = arith.select %28, %26, %30 : vector<8x512xi1>, vector<8x512xf32>
    %c0_23 = arith.constant 0 : index
    %c0_24 = arith.constant 0 : index
    %32 = vector.load %arg5[%c0_23, %c0_24] : memref<512x256xf32, #tpu.memory_space<vmem>>, vector<512x256xf32>
    %cst_25 = arith.constant dense<0.000000e+00> : vector<8x256xf32>
    %33 = tpu.matmul %31, %32, %cst_25 {dimension_numbers = #tpu.dot_dimension_numbers<[1], [0], [0], [1], [0, 0, 1, 1], [], []>} : vector<8x512xf32>, vector<512x256xf32>, vector<8x256xf32> -> vector<8x256xf32>
    %c0_26 = arith.constant 0 : index
    %c0_27 = arith.constant 0 : index
    %34 = vector.load %arg6[%c0_26, %c0_27] : memref<1x256xf32, #tpu.memory_space<vmem>>, vector<1x256xf32>
    %35 = vector.broadcast %34 : vector<1x256xf32> to vector<8x256xf32>
    %36 = arith.addf %33, %35 : vector<8x256xf32>
    %cst_28 = arith.constant 0.000000e+00 : f32
    %37 = vector.broadcast %cst_28 : f32 to vector<8x256xf32>
    %38 = arith.cmpf ogt, %36, %37 : vector<8x256xf32>
    %cst_29 = arith.constant 2.000000e-01 : f32
    %39 = vector.broadcast %cst_29 : f32 to vector<8x256xf32>
    %40 = arith.mulf %39, %36 : vector<8x256xf32>
    %41 = arith.select %38, %36, %40 : vector<8x256xi1>, vector<8x256xf32>
    %c0_30 = arith.constant 0 : index
    %c0_31 = arith.constant 0 : index
    %42 = vector.load %arg15[%c0_30, %c0_31] : memref<8x256xf32, #tpu.memory_space<vmem>>, vector<8x256xf32>
    tpu.vector_store %arg15[%c0_30, %c0_31], %20 {strides = array<i32>} : memref<8x256xf32, #tpu.memory_space<vmem>>, vector<8x256xf32>,
    %c0_32 = arith.constant 0 : index
    %c0_33 = arith.constant 0 : index
    %43 = vector.load %arg16[%c0_32, %c0_33] : memref<8x256xf32, #tpu.memory_space<vmem>>, vector<8x256xf32>
    tpu.vector_store %arg16[%c0_32, %c0_33], %41 {strides = array<i32>} : memref<8x256xf32, #tpu.memory_space<vmem>>, vector<8x256xf32>,
    %44 = arith.addf %20, %41 : vector<8x256xf32>
    %cst_34 = arith.constant 5.000000e-01 : f32
    %45 = vector.broadcast %cst_34 : f32 to vector<8x256xf32>
    %46 = arith.mulf %44, %45 : vector<8x256xf32>
    %c0_35 = arith.constant 0 : index
    %c0_36 = arith.constant 0 : index
    %47 = vector.load %arg2[%c0_35, %c0_36] : memref<8x128xf32, #tpu.memory_space<vmem>>, vector<8x128xf32>
    %c0_37 = arith.constant 0 : index
    %c0_38 = arith.constant 0 : index
    %48 = vector.load %arg7[%c0_37, %c0_38] : memref<256x64xf32, #tpu.memory_space<vmem>>, vector<256x64xf32>
    %cst_39 = arith.constant dense<0.000000e+00> : vector<8x64xf32>
    %49 = tpu.matmul %46, %48, %cst_39 {dimension_numbers = #tpu.dot_dimension_numbers<[1], [0], [0], [1], [0, 0, 1, 1], [], []>} : vector<8x256xf32>, vector<256x64xf32>, vector<8x64xf32> -> vector<8x64xf32>
    %c0_40 = arith.constant 0 : index
    %c0_41 = arith.constant 0 : index
    %50 = vector.load %arg8[%c0_40, %c0_41] : memref<128x64xf32, #tpu.memory_space<vmem>>, vector<128x64xf32>
    %cst_42 = arith.constant dense<0.000000e+00> : vector<8x64xf32>
    %51 = tpu.matmul %47, %50, %cst_42 {dimension_numbers = #tpu.dot_dimension_numbers<[1], [0], [0], [1], [0, 0, 1, 1], [], []>} : vector<8x128xf32>, vector<128x64xf32>, vector<8x64xf32> -> vector<8x64xf32>
    %52 = arith.addf %49, %51 : vector<8x64xf32>
    %c0_43 = arith.constant 0 : index
    %c0_44 = arith.constant 0 : index
    %53 = vector.load %arg9[%c0_43, %c0_44] : memref<1x64xf32, #tpu.memory_space<vmem>>, vector<1x64xf32>
    %54 = vector.broadcast %53 : vector<1x64xf32> to vector<8x64xf32>
    %55 = arith.addf %52, %54 : vector<8x64xf32>
    %cst_45 = arith.constant 0.000000e+00 : f32
    %56 = vector.broadcast %cst_45 : f32 to vector<8x64xf32>
    %57 = arith.cmpf ogt, %55, %56 : vector<8x64xf32>
    %cst_46 = arith.constant 2.000000e-01 : f32
    %58 = vector.broadcast %cst_46 : f32 to vector<8x64xf32>
    %59 = arith.mulf %58, %55 : vector<8x64xf32>
    %60 = arith.select %57, %55, %59 : vector<8x64xi1>, vector<8x64xf32>
    %c0_47 = arith.constant 0 : index
    %c0_48 = arith.constant 0 : index
    %61 = vector.load %arg10[%c0_47, %c0_48] : memref<64x64xf32, #tpu.memory_space<vmem>>, vector<64x64xf32>
    %cst_49 = arith.constant dense<0.000000e+00> : vector<8x64xf32>
    %62 = tpu.matmul %60, %61, %cst_49 {dimension_numbers = #tpu.dot_dimension_numbers<[1], [0], [0], [1], [0, 0, 1, 1], [], []>} : vector<8x64xf32>, vector<64x64xf32>, vector<8x64xf32> -> vector<8x64xf32>
    %c0_50 = arith.constant 0 : index
    %c0_51 = arith.constant 0 : index
    %63 = vector.load %arg11[%c0_50, %c0_51] : memref<1x64xf32, #tpu.memory_space<vmem>>, vector<1x64xf32>
    %64 = vector.broadcast %63 : vector<1x64xf32> to vector<8x64xf32>
    %65 = arith.addf %62, %64 : vector<8x64xf32>
    %cst_52 = arith.constant 0.000000e+00 : f32
    %66 = vector.broadcast %cst_52 : f32 to vector<8x64xf32>
    %67 = arith.maximumf %65, %66 : vector<8x64xf32>
    %c0_53 = arith.constant 0 : index
    %c0_54 = arith.constant 0 : index
    %68 = vector.load %arg12[%c0_53, %c0_54] : memref<64x64xf32, #tpu.memory_space<vmem>>, vector<64x64xf32>
    %cst_55 = arith.constant dense<0.000000e+00> : vector<8x64xf32>
    %69 = tpu.matmul %67, %68, %cst_55 {dimension_numbers = #tpu.dot_dimension_numbers<[1], [0], [0], [1], [0, 0, 1, 1], [], []>} : vector<8x64xf32>, vector<64x64xf32>, vector<8x64xf32> -> vector<8x64xf32>
    %c0_56 = arith.constant 0 : index
    %c0_57 = arith.constant 0 : index
    %70 = vector.load %arg13[%c0_56, %c0_57] : memref<128x64xf32, #tpu.memory_space<vmem>>, vector<128x64xf32>
    %cst_58 = arith.constant dense<0.000000e+00> : vector<8x64xf32>
    %71 = tpu.matmul %47, %70, %cst_58 {dimension_numbers = #tpu.dot_dimension_numbers<[1], [0], [0], [1], [0, 0, 1, 1], [], []>} : vector<8x128xf32>, vector<128x64xf32>, vector<8x64xf32> -> vector<8x64xf32>
    %72 = arith.addf %69, %71 : vector<8x64xf32>
    %c0_59 = arith.constant 0 : index
    %c0_60 = arith.constant 0 : index
    %73 = vector.load %arg14[%c0_59, %c0_60] : memref<1x64xf32, #tpu.memory_space<vmem>>, vector<1x64xf32>
    %74 = vector.broadcast %73 : vector<1x64xf32> to vector<8x64xf32>
    %75 = arith.addf %72, %74 : vector<8x64xf32>
    %76 = math.tanh %75 : vector<8x64xf32>
    %c0_61 = arith.constant 0 : index
    %c0_62 = arith.constant 0 : index
    %77 = vector.load %arg17[%c0_61, %c0_62] : memref<8x64xf32, #tpu.memory_space<vmem>>, vector<8x64xf32>
    tpu.vector_store %arg17[%c0_61, %c0_62], %76 {strides = array<i32>} : memref<8x64xf32, #tpu.memory_space<vmem>>, vector<8x64xf32>,
    return
  }
}

</mosaic_0001>

<bundles_post_ra>
// kernel: denoiser_forward.1
= control target key start
LH: loop header
LB: loop body
LE: loop exit
PB: predicated region body
PF: predicated region fallthrough
CT: control target
= control target key end

     0   :  { %s4252_s0 = inlined_call_operand.vmem [shape: f32[8,1024], index: 0, kind: input, shape index: {}]   ;;  %s4253_s1 = inlined_call_operand.vmem [shape: f32[8,1024], index: 1, kind: input, shape index: {}]   ;;  %s4254_s2 = inlined_call_operand.vmem [shape: f32[8,128], index: 2, kind: input, shape index: {}]   ;;  %s4255_s3 = inlined_call_operand.hbm [shape: f32[1024,512], index: 3, kind: input, shape index: {}]   ;;  %s4256_s4 = inlined_call_operand.hbm [shape: f32[1,512], index: 4, kind: input, shape index: {}]   ;;  %s4257_s5 = inlined_call_operand.hbm [shape: f32[512,256], index: 5, kind: input, shape index: {}]   ;;  %s4258_s6 = inlined_call_operand.hbm [shape: f32[1,256], index: 6, kind: input, shape index: {}]   ;;  %s4259_s7 = inlined_call_operand.vmem [shape: f32[256,64], index: 7, kind: input, shape index: {}]   ;;  %s4260_s8 = inlined_call_operand.vmem [shape: f32[128,64], index: 8, kind: input, shape index: {}]   ;;  %s4261_s9 = inlined_call_operand.hbm [shape: f32[1,64], index: 9, kind: input, shape index: {}]   ;;  %s4262_s10 = inlined_call_operand.hbm [shape: f32[64,64], index: 10, kind: input, shape index: {}]   ;;  %s4263_s11 = inlined_call_operand.hbm [shape: f32[1,64], index: 11, kind: input, shape index: {}]   ;;  %s4264_s12 = inlined_call_operand.hbm [shape: f32[64,64], index: 12, kind: input, shape index: {}]   ;;  %s4265_s13 = inlined_call_operand.vmem [shape: f32[128,64], index: 13, kind: input, shape index: {}]   ;;  %s4266_s14 = inlined_call_operand.hbm [shape: f32[1,64], index: 14, kind: input, shape index: {}]   ;;  %s4267_s15 = inlined_call_operand.vmem [shape: f32[8,256], index: 15, kind: output, shape index: {0}]   ;;  %s4268_s16 = inlined_call_operand.vmem [shape: f32[8,256], index: 16, kind: output, shape index: {1}]   ;;  %s4269_s17 = inlined_call_operand.vmem [shape: f32[8,64], index: 17, kind: output, shape index: {2}]  }
   0x1   :  { %4272 = sst [smem:[#allocation21_spill]] %s4252_s0 }
   0x2   :  { %4273 = sst [smem:[#allocation22_spill]] %s4253_s1 }
   0x3   :  { %23 = vsyncpa [#allocation3], 0 }
   0x4   :  { %24 = vsyncpa [#allocation5], 0 }
   0x5   :  { %25 = vsyncpa [#allocation8], 0 }
   0x6   :  { %26 = vsyncpa [#allocation11], 0  ;;  %s52_s26 = sshll.u32 %s4256_s4, 4  ;;  %s53_s26 = int_to_ptr.hbm [resolvable:$true] %s52_s26 }
   0x7   :  { %27 = vsyncpa [#allocation14], 0  ;;  %s3640_s27 = smov [#allocation4]   ;;  %s76_s30 = sshll.u32 %s4258_s6, 4  ;;  %s77_s30 = int_to_ptr.hbm [resolvable:$true] %s76_s30 }
   0x8   :  { %s54_s28 = sshll.u32 %s3640_s27, 4  ;;  %s3641_s18 = smov [#allocation7]   ;;  %s55_s28 = int_to_ptr.vmem [resolvable:$true] %s54_s28 }
   0x9   :  { %57 = dma.hbm_to_vmem [thread:$0]  %s53_s26, 64, %s55_s28, [#allocation5]  }
   0xa   :  { %s78_s19 = sshll.u32 %s3641_s18, 4  ;;  %s101_s21 = sshll.u32 %s4262_s10, 4  ;;  %s79_s19 = int_to_ptr.vmem [resolvable:$true] %s78_s19  ;;  %s102_s21 = int_to_ptr.hbm [resolvable:$true] %s101_s21 }
   0xb   :  { %81 = dma.hbm_to_vmem [thread:$0]  %s77_s30, 32, %s79_s19, [#allocation8]  }
   0xc   :  { %s3642_s4 = smov [#allocation10]   ;;  %s125_s25 = sshll.u32 %s4264_s12, 4  ;;  %s126_s25 = int_to_ptr.hbm [resolvable:$true] %s125_s25 }
   0xd   :  { %s103_s22 = sshll.u32 %s3642_s4, 4  ;;  %s3643_s27 = smov 128   ;;  %s104_s22 = int_to_ptr.vmem [resolvable:$true] %s103_s22 }
   0xe   :  { %s3644_s6 = smov 8   ;;  %s3645_s26 = smov [#allocation13]  }
   0xf   :  { %109 = dma.hbm_to_vmem [thread:$0]  %s102_s21, 1024, %s104_s22, [#allocation11], %s3643_s27, %s3643_s27, %s3644_s6  }
  0x10   :  { %s127_s28 = sshll.u32 %s3645_s26, 4  ;;  %s38_s10 = sshll.u32 %s4255_s3, 4  ;;  %s128_s28 = int_to_ptr.vmem [resolvable:$true] %s127_s28  ;;  %s39_s10 = int_to_ptr.hbm [resolvable:$true] %s38_s10 }
  0x11   :  { %133 = dma.hbm_to_vmem [thread:$0]  %s126_s25, 1024, %s128_s28, [#allocation14], %s3643_s27, %s3643_s27, %s3644_s6  }
  0x12   :  { %s3646_s30 = smov [#allocation2]   ;;  %s62_s12 = sshll.u32 %s4257_s5, 4  ;;  %s63_s12 = int_to_ptr.hbm [resolvable:$true] %s62_s12 }
  0x13   :  { %s40_s18 = sshll.u32 %s3646_s30, 4  ;;  %s3647_s20 = smov 512   ;;  %s41_s18 = int_to_ptr.vmem [resolvable:$true] %s40_s18 }
  0x14   :  { %s3648_s4 = smov 32   ;;  %s3649_s21 = smov [#allocation6]  }
  0x15   :  { %46 = dma.hbm_to_vmem [thread:$0]  %s39_s10, 65536, %s41_s18, [#allocation3], %s3647_s20, %s3647_s20, %s3648_s4  }
  0x16   :  { %s64_s22 = sshll.u32 %s3649_s21, 4  ;;  %s3650_s23 = smov 256   ;;  %s65_s22 = int_to_ptr.vmem [resolvable:$true] %s64_s22 }
  0x17   :  { %s3651_s24 = smov 16   ;;  %s91_s25 = sshll.u32 %s4261_s9, 4  ;;  %s92_s25 = int_to_ptr.hbm [resolvable:$true] %s91_s25 }
  0x18   :  { %70 = dma.hbm_to_vmem [thread:$0]  %s63_s12, 16384, %s65_s22, [#allocation5], %s3650_s23, %s3650_s23, %s3651_s24  }
  0x19   :  { %s3652_s27 = smov [#allocation9]   ;;  %s115_s29 = sshll.u32 %s4263_s11, 4  ;;  %s116_s29 = int_to_ptr.hbm [resolvable:$true] %s115_s29 }
  0x1a   :  { %s93_s6 = sshll.u32 %s3652_s27, 4  ;;  %s3653_s0 = smov [#allocation12]   ;;  %s94_s6 = int_to_ptr.vmem [resolvable:$true] %s93_s6 }
  0x1b   :  { %96 = dma.hbm_to_vmem [thread:$0]  %s92_s25, 16, %s94_s6, [#allocation8]  }
  0x1c   :  { %s117_s10 = sshll.u32 %s3653_s0, 4  ;;  %s141_s19 = sshll.u32 %s4266_s14, 4  ;;  %s118_s10 = int_to_ptr.vmem [resolvable:$true] %s117_s10  ;;  %s142_s19 = int_to_ptr.hbm [resolvable:$true] %s141_s19 }
  0x1d   :  { %120 = dma.hbm_to_vmem [thread:$0]  %s116_s29, 16, %s118_s10, [#allocation11]  }
  0x1e   :  { %s3654_s9 = smov [#allocation15]  }
  0x1f   :  { %s143_s1 = sshll.u32 %s3654_s9, 4  ;;  %s144_s1 = int_to_ptr.vmem [resolvable:$true] %s143_s1 }
  0x20   :  { %146 = dma.hbm_to_vmem [thread:$0]  %s142_s19, 16, %s144_s1, [#allocation14]  }
  0x21   :  { %3630 = dma.done.wait [#allocation3], 65536  }
  0x22   :  { %3631 = vsyncadd [#allocation3], 4294901760 }
  0x23   :  { %3632 = dma.done.wait [#allocation5], 16448  }
  0x24   :  { %3633 = vsyncadd [#allocation5], 4294950848 }
  0x25   :  { %3634 = dma.done.wait [#allocation8], 48  }
  0x26   :  { %3635 = vsyncadd [#allocation8], 4294967248 }
  0x27   :  { %3636 = dma.done.wait [#allocation11], 1040  }
  0x28   :  { %3637 = vsyncadd [#allocation11], 4294966256 }
  0x29   :  { %3638 = dma.done.wait [#allocation14], 1040  }
  0x2a   :  { %3639 = vsyncadd [#allocation14], 4294966256  ;;  %v251_v0 = vld [vmem:[#allocation2 + $0x1e0] sm:$0xff]  ;;  %s4274_s12 = sld [smem:[#allocation21_spill]]  ;;  %vm2628_vm13 = vcmask 523264  }
  0x2b   :  { %v315_v1 = vld [vmem:[#allocation2 + $0x3e0] sm:$0xff]  ;;  %713 = vmatpush.msra.mxu0 %v251_v0  ;;  %s4275_s25 = sld [smem:[#allocation22_spill]] }
  0x2c   :  { %v379_v2 = vld [vmem:[#allocation2 + $0x5e0] sm:$0xff]  ;;  %733 = vmatpush.msra.mxu1 %v315_v1 }
  0x2d   :  { %v247_v3 = vld [vmem:[#allocation2 + $0x1c0] sm:$0xff]  ;;  %753 = vmatpush.msra.mxu2 %v379_v2 }
  0x2e   :  { %v311_v4 = vld [vmem:[#allocation2 + $0x3c0] sm:$0xff]  ;;  %714 = vmatpush.msra.mxu0 %v247_v3 }
  0x2f   :  { %v375_v5 = vld [vmem:[#allocation2 + $0x5c0] sm:$0xff]  ;;  %734 = vmatpush.msra.mxu1 %v311_v4 }
  0x30   :  { %v443_v6 = vld [vmem:[#allocation2 + $0x7e0] sm:$0xff]  ;;  %754 = vmatpush.msra.mxu2 %v375_v5 }
  0x31   :  { %v243_v7 = vld [vmem:[#allocation2 + $0x1a0] sm:$0xff]  ;;  %773 = vmatpush.msra.mxu3 %v443_v6 }
  0x32   :  { %v307_v8 = vld [vmem:[#allocation2 + $0x3a0] sm:$0xff]  ;;  %715 = vmatpush.msra.mxu0 %v243_v7 }
  0x33   :  { %v371_v9 = vld [vmem:[#allocation2 + $0x5a0] sm:$0xff]  ;;  %735 = vmatpush.msra.mxu1 %v307_v8 }
  0x34   :  { %v439_v10 = vld [vmem:[#allocation2 + $0x7c0] sm:$0xff]  ;;  %755 = vmatpush.msra.mxu2 %v371_v9 }
  0x35   :  { %v239_v11 = vld [vmem:[#allocation2 + $0x180] sm:$0xff]  ;;  %774 = vmatpush.msra.mxu3 %v439_v10 }
  0x36   :  { %v303_v12 = vld [vmem:[#allocation2 + $0x380] sm:$0xff]  ;;  %716 = vmatpush.msra.mxu0 %v239_v11 }
  0x37   :  { %v367_v13 = vld [vmem:[#allocation2 + $0x580] sm:$0xff]  ;;  %736 = vmatpush.msra.mxu1 %v303_v12 }
  0x38   :  { %v435_v14 = vld [vmem:[#allocation2 + $0x7a0] sm:$0xff]  ;;  %756 = vmatpush.msra.mxu2 %v367_v13 }
  0x39   :  { %v235_v15 = vld [vmem:[#allocation2 + $0x160] sm:$0xff]  ;;  %775 = vmatpush.msra.mxu3 %v435_v14 }
  0x3a   :  { %v299_v16 = vld [vmem:[#allocation2 + $0x360] sm:$0xff]  ;;  %717 = vmatpush.msra.mxu0 %v235_v15 }
  0x3b   :  { %v363_v17 = vld [vmem:[#allocation2 + $0x560] sm:$0xff]  ;;  %737 = vmatpush.msra.mxu1 %v299_v16 }
  0x3c   :  { %v431_v18 = vld [vmem:[#allocation2 + $0x780] sm:$0xff]  ;;  %757 = vmatpush.msra.mxu2 %v363_v17 }
  0x3d   :  { %v231_v19 = vld [vmem:[#allocation2 + $0x140] sm:$0xff]  ;;  %776 = vmatpush.msra.mxu3 %v431_v18 }
  0x3e   :  { %v295_v20 = vld [vmem:[#allocation2 + $0x340] sm:$0xff]  ;;  %718 = vmatpush.msra.mxu0 %v231_v19 }
  0x3f   :  { %v359_v21 = vld [vmem:[#allocation2 + $0x540] sm:$0xff]  ;;  %738 = vmatpush.msra.mxu1 %v295_v20 }
  0x40   :  { %v427_v22 = vld [vmem:[#allocation2 + $0x760] sm:$0xff]  ;;  %758 = vmatpush.msra.mxu2 %v359_v21 }
  0x41   :  { %v227_v23 = vld [vmem:[#allocation2 + $0x120] sm:$0xff]  ;;  %777 = vmatpush.msra.mxu3 %v427_v22 }
  0x42   :  { %v291_v24 = vld [vmem:[#allocation2 + $0x320] sm:$0xff]  ;;  %719 = vmatpush.msra.mxu0 %v227_v23 }
  0x43   :  { %v355_v25 = vld [vmem:[#allocation2 + $0x520] sm:$0xff]  ;;  %739 = vmatpush.msra.mxu1 %v291_v24 }
  0x44   :  { %v423_v26 = vld [vmem:[#allocation2 + $0x740] sm:$0xff]  ;;  %759 = vmatpush.msra.mxu2 %v355_v25 }
  0x45   :  { %v223_v27 = vld [vmem:[#allocation2 + $0x100] sm:$0xff]  ;;  %778 = vmatpush.msra.mxu3 %v423_v26 }
  0x46   :  { %v287_v28 = vld [vmem:[#allocation2 + $0x300] sm:$0xff]  ;;  %720 = vmatpush.msra.mxu0 %v223_v27 }
  0x47   :  { %v351_v29 = vld [vmem:[#allocation2 + $0x500] sm:$0xff]  ;;  %740 = vmatpush.msra.mxu1 %v287_v28 }
  0x48   :  { %v419_v30 = vld [vmem:[#allocation2 + $0x720] sm:$0xff]  ;;  %760 = vmatpush.msra.mxu2 %v351_v29 }
  0x49   :  { %v219_v31 = vld [vmem:[#allocation2 + $0xe0] sm:$0xff]  ;;  %779 = vmatpush.msra.mxu3 %v419_v30 }
  0x4a   :  { %v283_v32 = vld [vmem:[#allocation2 + $0x2e0] sm:$0xff]  ;;  %721 = vmatpush.msra.mxu0 %v219_v31 }
  0x4b   :  { %v347_v33 = vld [vmem:[#allocation2 + $0x4e0] sm:$0xff]  ;;  %741 = vmatpush.msra.mxu1 %v283_v32 }
  0x4c   :  { %v415_v34 = vld [vmem:[#allocation2 + $0x700] sm:$0xff]  ;;  %761 = vmatpush.msra.mxu2 %v347_v33 }
  0x4d   :  { %v215_v35 = vld [vmem:[#allocation2 + $0xc0] sm:$0xff]  ;;  %780 = vmatpush.msra.mxu3 %v415_v34 }
  0x4e   :  { %v279_v36 = vld [vmem:[#allocation2 + $0x2c0] sm:$0xff]  ;;  %722 = vmatpush.msra.mxu0 %v215_v35 }
  0x4f   :  { %v343_v37 = vld [vmem:[#allocation2 + $0x4c0] sm:$0xff]  ;;  %742 = vmatpush.msra.mxu1 %v279_v36 }
  0x50   :  { %v411_v38 = vld [vmem:[#allocation2 + $0x6e0] sm:$0xff]  ;;  %762 = vmatpush.msra.mxu2 %v343_v37 }
  0x51   :  { %v211_v39 = vld [vmem:[#allocation2 + $0xa0] sm:$0xff]  ;;  %781 = vmatpush.msra.mxu3 %v411_v38 }
  0x52   :  { %v275_v40 = vld [vmem:[#allocation2 + $0x2a0] sm:$0xff]  ;;  %723 = vmatpush.msra.mxu0 %v211_v39 }
  0x53   :  { %v339_v41 = vld [vmem:[#allocation2 + $0x4a0] sm:$0xff]  ;;  %743 = vmatpush.msra.mxu1 %v275_v40 }
  0x54   :  { %v407_v42 = vld [vmem:[#allocation2 + $0x6c0] sm:$0xff]  ;;  %763 = vmatpush.msra.mxu2 %v339_v41 }
  0x55   :  { %v207_v43 = vld [vmem:[#allocation2 + $0x80] sm:$0xff]  ;;  %782 = vmatpush.msra.mxu3 %v407_v42 }
  0x56   :  { %v271_v44 = vld [vmem:[#allocation2 + $0x280] sm:$0xff]  ;;  %724 = vmatpush.msra.mxu0 %v207_v43 }
  0x57   :  { %v335_v45 = vld [vmem:[#allocation2 + $0x480] sm:$0xff]  ;;  %744 = vmatpush.msra.mxu1 %v271_v44 }
  0x58   :  { %v403_v46 = vld [vmem:[#allocation2 + $0x6a0] sm:$0xff]  ;;  %764 = vmatpush.msra.mxu2 %v335_v45 }
  0x59   :  { %v203_v47 = vld [vmem:[#allocation2 + $0x60] sm:$0xff]  ;;  %783 = vmatpush.msra.mxu3 %v403_v46 }
  0x5a   :  { %v267_v48 = vld [vmem:[#allocation2 + $0x260] sm:$0xff]  ;;  %725 = vmatpush.msra.mxu0 %v203_v47 }
  0x5b   :  { %v331_v49 = vld [vmem:[#allocation2 + $0x460] sm:$0xff]  ;;  %745 = vmatpush.msra.mxu1 %v267_v48 }
  0x5c   :  { %v399_v50 = vld [vmem:[#allocation2 + $0x680] sm:$0xff]  ;;  %765 = vmatpush.msra.mxu2 %v331_v49 }
  0x5d   :  { %v199_v51 = vld [vmem:[#allocation2 + $0x40] sm:$0xff]  ;;  %784 = vmatpush.msra.mxu3 %v399_v50 }
  0x5e   :  { %v263_v52 = vld [vmem:[#allocation2 + $0x240] sm:$0xff]  ;;  %726 = vmatpush.msra.mxu0 %v199_v51 }
  0x5f   :  { %v327_v53 = vld [vmem:[#allocation2 + $0x440] sm:$0xff]  ;;  %746 = vmatpush.msra.mxu1 %v263_v52 }
  0x60   :  { %v395_v54 = vld [vmem:[#allocation2 + $0x660] sm:$0xff]  ;;  %766 = vmatpush.msra.mxu2 %v327_v53 }
  0x61   :  { %v195_v55 = vld [vmem:[#allocation2 + $0x20] sm:$0xff]  ;;  %785 = vmatpush.msra.mxu3 %v395_v54 }
  0x62   :  { %v259_v56 = vld [vmem:[#allocation2 + $0x220] sm:$0xff]  ;;  %727 = vmatpush.msra.mxu0 %v195_v55 }
  0x63   :  { %v323_v57 = vld [vmem:[#allocation2 + $0x420] sm:$0xff]  ;;  %747 = vmatpush.msra.mxu1 %v259_v56 }
  0x64   :  { %v391_v58 = vld [vmem:[#allocation2 + $0x640] sm:$0xff]  ;;  %767 = vmatpush.msra.mxu2 %v323_v57 }
  0x65   :  { %v191_v59 = vld [vmem:[#allocation2] sm:$0xff]  ;;  %786 = vmatpush.msra.mxu3 %v391_v58 }
  0x66   :  { %v255_v60 = vld [vmem:[#allocation2 + $0x200] sm:$0xff]  ;;  %728 = vmatpush.msra.mxu0 %v191_v59  ;;  %v3775_v59 = vld [vmem:[%s4274_s12 + $0x10] sm:$0xff] }
  0x67   :  { %v319_v61 = vld [vmem:[#allocation2 + $0x400] sm:$0xff]  ;;  %748 = vmatpush.msra.mxu1 %v255_v60 }
  0x68   :  { %v387_v62 = vld [vmem:[#allocation2 + $0x620] sm:$0xff]  ;;  %768 = vmatpush.msra.mxu2 %v319_v61 }
  0x69   :  { %v507_v63 = vld [vmem:[#allocation2 + $0x9e0] sm:$0xff]  ;;  %787 = vmatpush.msra.mxu3 %v387_v62  ;;  %769 = vmatmul.f32.vlgmr.msra.gmra.mxu2 %v3775_v59 }
  0x6a   :  { %v571_v0 = vld [vmem:[#allocation2 + $0xbe0] sm:$0xff]  ;;  %793 = vmatpush.msrb.mxu0 %v507_v63 }
  0x6b   :  { %v635_v1 = vld [vmem:[#allocation2 + $0xde0] sm:$0xff]  ;;  %813 = vmatpush.msrb.mxu1 %v571_v0 }
  0x6c   :  { %v383_v2 = vld [vmem:[#allocation2 + $0x600] sm:$0xff]  ;;  %833 = vmatpush.msrb.mxu2 %v635_v1  ;;  %v3786_v1 = vld [vmem:[%s4274_s12 + $0x8] sm:$0xff] }
  0x6d   :  { %v503_v3 = vld [vmem:[#allocation2 + $0x9c0] sm:$0xff]  ;;  %788 = vmatpush.msra.mxu3 %v383_v2  ;;  %v3791_v2 = vld [vmem:[%s4274_s12 + $0x18] sm:$0xff]  ;;  %749 = vmatmul.f32.vlgmr.msra.gmra.mxu1 %v3786_v1 }
  0x6e   :  { %v567_v4 = vld [vmem:[#allocation2 + $0xbc0] sm:$0xff]  ;;  %794 = vmatpush.msrb.mxu0 %v503_v3  ;;  %v252_v3 = vld [vmem:[#allocation2 + $0x1e8] sm:$0xff]  ;;  %789 = vmatmul.f32.vlgmr.msra.gmra.mxu3 %v3791_v2 }
  0x6f   :  { %v631_v5 = vld [vmem:[#allocation2 + $0xdc0] sm:$0xff]  ;;  %814 = vmatpush.msrb.mxu1 %v567_v4  ;;  %v316_v4 = vld [vmem:[#allocation2 + $0x3e8] sm:$0xff] }
  0x70   :  { %v699_v6 = vld [vmem:[#allocation2 + $0xfe0] sm:$0xff]  ;;  %834 = vmatpush.msrb.mxu2 %v631_v5  ;;  %v380_v5 = vld [vmem:[#allocation2 + $0x5e8] sm:$0xff] }
  0x71   :  { %v499_v7 = vld [vmem:[#allocation2 + $0x9a0] sm:$0xff]  ;;  %853 = vmatpush.msrb.mxu3 %v699_v6 }
  0x72   :  { %v563_v8 = vld [vmem:[#allocation2 + $0xba0] sm:$0xff]  ;;  %795 = vmatpush.msrb.mxu0 %v499_v7  ;;  %v248_v7 = vld [vmem:[#allocation2 + $0x1c8] sm:$0xff] }
  0x73   :  { %v627_v9 = vld [vmem:[#allocation2 + $0xda0] sm:$0xff]  ;;  %815 = vmatpush.msrb.mxu1 %v563_v8  ;;  %v312_v8 = vld [vmem:[#allocation2 + $0x3c8] sm:$0xff] }
  0x74   :  { %v695_v10 = vld [vmem:[#allocation2 + $0xfc0] sm:$0xff]  ;;  %835 = vmatpush.msrb.mxu2 %v627_v9  ;;  %v376_v9 = vld [vmem:[#allocation2 + $0x5c8] sm:$0xff] }
  0x75   :  { %v495_v11 = vld [vmem:[#allocation2 + $0x980] sm:$0xff]  ;;  %854 = vmatpush.msrb.mxu3 %v695_v10  ;;  %v444_v10 = vld [vmem:[#allocation2 + $0x7e8] sm:$0xff] }
  0x76   :  { %v559_v12 = vld [vmem:[#allocation2 + $0xb80] sm:$0xff]  ;;  %796 = vmatpush.msrb.mxu0 %v495_v11  ;;  %v244_v11 = vld [vmem:[#allocation2 + $0x1a8] sm:$0xff] }
  0x77   :  { %v623_v13 = vld [vmem:[#allocation2 + $0xd80] sm:$0xff]  ;;  %816 = vmatpush.msrb.mxu1 %v559_v12  ;;  %v308_v12 = vld [vmem:[#allocation2 + $0x3a8] sm:$0xff] }
  0x78   :  { %v691_v14 = vld [vmem:[#allocation2 + $0xfa0] sm:$0xff]  ;;  %836 = vmatpush.msrb.mxu2 %v623_v13  ;;  %v372_v13 = vld [vmem:[#allocation2 + $0x5a8] sm:$0xff] }
  0x79   :  { %v491_v15 = vld [vmem:[#allocation2 + $0x960] sm:$0xff]  ;;  %855 = vmatpush.msrb.mxu3 %v691_v14  ;;  %v440_v14 = vld [vmem:[#allocation2 + $0x7c8] sm:$0xff] }
  0x7a   :  { %v555_v16 = vld [vmem:[#allocation2 + $0xb60] sm:$0xff]  ;;  %797 = vmatpush.msrb.mxu0 %v491_v15  ;;  %v3799_v15 = vld [vmem:[%s4274_s12 + $0x30] sm:$0xff] }
  0x7b   :  { %v619_v17 = vld [vmem:[#allocation2 + $0xd60] sm:$0xff]  ;;  %817 = vmatpush.msrb.mxu1 %v555_v16  ;;  %v240_v16 = vld [vmem:[#allocation2 + $0x188] sm:$0xff] }
  0x7c   :  { %v687_v18 = vld [vmem:[#allocation2 + $0xf80] sm:$0xff]  ;;  %837 = vmatpush.msrb.mxu2 %v619_v17  ;;  %v304_v17 = vld [vmem:[#allocation2 + $0x388] sm:$0xff] }
  0x7d   :  { %v487_v19 = vld [vmem:[#allocation2 + $0x940] sm:$0xff]  ;;  %856 = vmatpush.msrb.mxu3 %v687_v18  ;;  %v368_v18 = vld [vmem:[#allocation2 + $0x588] sm:$0xff] }
  0x7e   :  { %v551_v20 = vld [vmem:[#allocation2 + $0xb40] sm:$0xff]  ;;  %798 = vmatpush.msrb.mxu0 %v487_v19  ;;  %v436_v19 = vld [vmem:[#allocation2 + $0x7a8] sm:$0xff] }
  0x7f   :  { %v615_v21 = vld [vmem:[#allocation2 + $0xd40] sm:$0xff]  ;;  %818 = vmatpush.msrb.mxu1 %v551_v20 }
  0x80   :  { %v683_v22 = vld [vmem:[#allocation2 + $0xf60] sm:$0xff]  ;;  %838 = vmatpush.msrb.mxu2 %v615_v21  ;;  %v3810_v21 = vld [vmem:[%s4274_s12 + $0x38] sm:$0xff] }
  0x81   :  { %v483_v23 = vld [vmem:[#allocation2 + $0x920] sm:$0xff]  ;;  %857 = vmatpush.msrb.mxu3 %v683_v22  ;;  %v236_v22 = vld [vmem:[#allocation2 + $0x168] sm:$0xff] }
  0x82   :  { %v547_v24 = vld [vmem:[#allocation2 + $0xb20] sm:$0xff]  ;;  %799 = vmatpush.msrb.mxu0 %v483_v23  ;;  %v300_v23 = vld [vmem:[#allocation2 + $0x368] sm:$0xff] }
  0x83   :  { %v611_v25 = vld [vmem:[#allocation2 + $0xd20] sm:$0xff]  ;;  %819 = vmatpush.msrb.mxu1 %v547_v24  ;;  %v364_v24 = vld [vmem:[#allocation2 + $0x568] sm:$0xff] }
  0x84   :  { %v679_v26 = vld [vmem:[#allocation2 + $0xf40] sm:$0xff]  ;;  %839 = vmatpush.msrb.mxu2 %v611_v25  ;;  %v432_v25 = vld [vmem:[#allocation2 + $0x788] sm:$0xff] }
  0x85   :  { %v479_v27 = vld [vmem:[#allocation2 + $0x900] sm:$0xff]  ;;  %858 = vmatpush.msrb.mxu3 %v679_v26  ;;  %v3816_v26 = vld [vmem:[%s4274_s12 + $0x28] sm:$0xff] }
  0x86   :  { %v543_v28 = vld [vmem:[#allocation2 + $0xb00] sm:$0xff]  ;;  %800 = vmatpush.msrb.mxu0 %v479_v27  ;;  %v232_v27 = vld [vmem:[#allocation2 + $0x148] sm:$0xff] }
  0x87   :  { %v607_v29 = vld [vmem:[#allocation2 + $0xd00] sm:$0xff]  ;;  %820 = vmatpush.msrb.mxu1 %v543_v28  ;;  %v296_v28 = vld [vmem:[#allocation2 + $0x348] sm:$0xff] }
  0x88   :  { %v675_v30 = vld [vmem:[#allocation2 + $0xf20] sm:$0xff]  ;;  %840 = vmatpush.msrb.mxu2 %v607_v29  ;;  %v360_v29 = vld [vmem:[#allocation2 + $0x548] sm:$0xff] }
  0x89   :  { %v475_v31 = vld [vmem:[#allocation2 + $0x8e0] sm:$0xff]  ;;  %859 = vmatpush.msrb.mxu3 %v675_v30  ;;  %v428_v30 = vld [vmem:[#allocation2 + $0x768] sm:$0xff] }
  0x8a   :  { %v539_v32 = vld [vmem:[#allocation2 + $0xae0] sm:$0xff]  ;;  %801 = vmatpush.msrb.mxu0 %v475_v31  ;;  %v228_v31 = vld [vmem:[#allocation2 + $0x128] sm:$0xff] }
  0x8b   :  { %v603_v33 = vld [vmem:[#allocation2 + $0xce0] sm:$0xff]  ;;  %821 = vmatpush.msrb.mxu1 %v539_v32  ;;  %v292_v32 = vld [vmem:[#allocation2 + $0x328] sm:$0xff] }
  0x8c   :  { %v671_v34 = vld [vmem:[#allocation2 + $0xf00] sm:$0xff]  ;;  %841 = vmatpush.msrb.mxu2 %v603_v33  ;;  %v356_v33 = vld [vmem:[#allocation2 + $0x528] sm:$0xff] }
  0x8d   :  { %v471_v35 = vld [vmem:[#allocation2 + $0x8c0] sm:$0xff]  ;;  %860 = vmatpush.msrb.mxu3 %v671_v34  ;;  %v424_v34 = vld [vmem:[#allocation2 + $0x748] sm:$0xff] }
  0x8e   :  { %v535_v36 = vld [vmem:[#allocation2 + $0xac0] sm:$0xff]  ;;  %802 = vmatpush.msrb.mxu0 %v471_v35  ;;  %v224_v35 = vld [vmem:[#allocation2 + $0x108] sm:$0xff] }
  0x8f   :  { %v599_v37 = vld [vmem:[#allocation2 + $0xcc0] sm:$0xff]  ;;  %822 = vmatpush.msrb.mxu1 %v535_v36  ;;  %v288_v36 = vld [vmem:[#allocation2 + $0x308] sm:$0xff] }
  0x90   :  { %v667_v38 = vld [vmem:[#allocation2 + $0xee0] sm:$0xff]  ;;  %842 = vmatpush.msrb.mxu2 %v599_v37  ;;  %v352_v37 = vld [vmem:[#allocation2 + $0x508] sm:$0xff] }
  0x91   :  { %v467_v39 = vld [vmem:[#allocation2 + $0x8a0] sm:$0xff]  ;;  %861 = vmatpush.msrb.mxu3 %v667_v38  ;;  %v420_v38 = vld [vmem:[#allocation2 + $0x728] sm:$0xff] }
  0x92   :  { %v531_v40 = vld [vmem:[#allocation2 + $0xaa0] sm:$0xff]  ;;  %803 = vmatpush.msrb.mxu0 %v467_v39  ;;  %v220_v39 = vld [vmem:[#allocation2 + $0xe8] sm:$0xff] }
  0x93   :  { %v595_v41 = vld [vmem:[#allocation2 + $0xca0] sm:$0xff]  ;;  %823 = vmatpush.msrb.mxu1 %v531_v40  ;;  %v284_v40 = vld [vmem:[#allocation2 + $0x2e8] sm:$0xff] }
  0x94   :  { %v663_v42 = vld [vmem:[#allocation2 + $0xec0] sm:$0xff]  ;;  %843 = vmatpush.msrb.mxu2 %v595_v41  ;;  %v348_v41 = vld [vmem:[#allocation2 + $0x4e8] sm:$0xff] }
  0x95   :  { %v463_v43 = vld [vmem:[#allocation2 + $0x880] sm:$0xff]  ;;  %862 = vmatpush.msrb.mxu3 %v663_v42  ;;  %v416_v42 = vld [vmem:[#allocation2 + $0x708] sm:$0xff] }
  0x96   :  { %v527_v44 = vld [vmem:[#allocation2 + $0xa80] sm:$0xff]  ;;  %804 = vmatpush.msrb.mxu0 %v463_v43  ;;  %v216_v43 = vld [vmem:[#allocation2 + $0xc8] sm:$0xff] }
  0x97   :  { %v591_v45 = vld [vmem:[#allocation2 + $0xc80] sm:$0xff]  ;;  %824 = vmatpush.msrb.mxu1 %v527_v44  ;;  %v280_v44 = vld [vmem:[#allocation2 + $0x2c8] sm:$0xff] }
  0x98   :  { %v659_v46 = vld [vmem:[#allocation2 + $0xea0] sm:$0xff]  ;;  %844 = vmatpush.msrb.mxu2 %v591_v45  ;;  %v344_v45 = vld [vmem:[#allocation2 + $0x4c8] sm:$0xff] }
  0x99   :  { %v459_v47 = vld [vmem:[#allocation2 + $0x860] sm:$0xff]  ;;  %863 = vmatpush.msrb.mxu3 %v659_v46  ;;  %v412_v46 = vld [vmem:[#allocation2 + $0x6e8] sm:$0xff] }
  0x9a   :  { %v523_v48 = vld [vmem:[#allocation2 + $0xa60] sm:$0xff]  ;;  %805 = vmatpush.msrb.mxu0 %v459_v47  ;;  %v212_v47 = vld [vmem:[#allocation2 + $0xa8] sm:$0xff] }
  0x9b   :  { %v587_v49 = vld [vmem:[#allocation2 + $0xc60] sm:$0xff]  ;;  %825 = vmatpush.msrb.mxu1 %v523_v48  ;;  %v276_v48 = vld [vmem:[#allocation2 + $0x2a8] sm:$0xff] }
  0x9c   :  { %v655_v50 = vld [vmem:[#allocation2 + $0xe80] sm:$0xff]  ;;  %845 = vmatpush.msrb.mxu2 %v587_v49  ;;  %v340_v49 = vld [vmem:[#allocation2 + $0x4a8] sm:$0xff] }
  0x9d   :  { %v455_v51 = vld [vmem:[#allocation2 + $0x840] sm:$0xff]  ;;  %864 = vmatpush.msrb.mxu3 %v655_v50  ;;  %v408_v50 = vld [vmem:[#allocation2 + $0x6c8] sm:$0xff] }
  0x9e   :  { %v519_v52 = vld [vmem:[#allocation2 + $0xa40] sm:$0xff]  ;;  %806 = vmatpush.msrb.mxu0 %v455_v51  ;;  %v208_v51 = vld [vmem:[#allocation2 + $0x88] sm:$0xff] }
  0x9f   :  { %v583_v53 = vld [vmem:[#allocation2 + $0xc40] sm:$0xff]  ;;  %826 = vmatpush.msrb.mxu1 %v519_v52  ;;  %v272_v52 = vld [vmem:[#allocation2 + $0x288] sm:$0xff] }
  0xa0   :  { %v651_v54 = vld [vmem:[#allocation2 + $0xe60] sm:$0xff]  ;;  %846 = vmatpush.msrb.mxu2 %v583_v53  ;;  %v336_v53 = vld [vmem:[#allocation2 + $0x488] sm:$0xff] }
  0xa1   :  { %v451_v55 = vld [vmem:[#allocation2 + $0x820] sm:$0xff]  ;;  %865 = vmatpush.msrb.mxu3 %v651_v54  ;;  %v404_v54 = vld [vmem:[#allocation2 + $0x6a8] sm:$0xff] }
  0xa2   :  { %v515_v56 = vld [vmem:[#allocation2 + $0xa20] sm:$0xff]  ;;  %807 = vmatpush.msrb.mxu0 %v451_v55  ;;  %v204_v55 = vld [vmem:[#allocation2 + $0x68] sm:$0xff] }
  0xa3   :  { %v579_v57 = vld [vmem:[#allocation2 + $0xc20] sm:$0xff]  ;;  %827 = vmatpush.msrb.mxu1 %v515_v56  ;;  %v268_v56 = vld [vmem:[#allocation2 + $0x268] sm:$0xff] }
  0xa4   :  { %v647_v58 = vld [vmem:[#allocation2 + $0xe40] sm:$0xff]  ;;  %847 = vmatpush.msrb.mxu2 %v579_v57  ;;  %v332_v57 = vld [vmem:[#allocation2 + $0x468] sm:$0xff] }
  0xa5   :  { %v447_v60 = vld [vmem:[#allocation2 + $0x800] sm:$0xff]  ;;  %866 = vmatpush.msrb.mxu3 %v647_v58  ;;  %v400_v58 = vld [vmem:[#allocation2 + $0x688] sm:$0xff] }
  0xa6   :  { %v511_v61 = vld [vmem:[#allocation2 + $0xa00] sm:$0xff]  ;;  %808 = vmatpush.msrb.mxu0 %v447_v60  ;;  %v200_v60 = vld [vmem:[#allocation2 + $0x48] sm:$0xff] }
  0xa7   :  { %v575_v62 = vld [vmem:[#allocation2 + $0xc00] sm:$0xff]  ;;  %828 = vmatpush.msrb.mxu1 %v511_v61  ;;  %v264_v61 = vld [vmem:[#allocation2 + $0x248] sm:$0xff] }
  0xa8   :  { %v643_v63 = vld [vmem:[#allocation2 + $0xe20] sm:$0xff]  ;;  %848 = vmatpush.msrb.mxu2 %v575_v62  ;;  %829 = vmatmul.f32.vlgmr.msrb.gmra.mxu1 %v3816_v26  ;;  %v328_v62 = vld [vmem:[#allocation2 + $0x448] sm:$0xff] }
  0xa9   :  { %v3780_v0 = vld [vmem:[%s4274_s12] sm:$0xff]  ;;  %867 = vmatpush.msrb.mxu3 %v643_v63  ;;  %893 = vmatpush.msra.mxu1 %v316_v4  ;;  %v396_v63 = vld [vmem:[#allocation2 + $0x668] sm:$0xff] }
  0xaa   :  { %729 = vmatmul.f32.vlgmr.msra.gmra.mxu0 %v3780_v0  ;;  %v639_v6 = vld [vmem:[#allocation2 + $0xe00] sm:$0xff]  ;;  %913 = vmatpush.msra.mxu2 %v380_v5  ;;  %v260_v4 = vld [vmem:[#allocation2 + $0x228] sm:$0xff] }
  0xab   :  { %873 = vmatpush.msra.mxu0 %v252_v3  ;;  %868 = vmatpush.msrb.mxu3 %v639_v6  ;;  %v3804_v20 = vld [vmem:[%s4274_s12 + $0x20] sm:$0xff]  ;;  %v196_v3 = vld [vmem:[#allocation2 + $0x28] sm:$0xff] }
  0xac   :  { %894 = vmatpush.msra.mxu1 %v312_v8  ;;  %914 = vmatpush.msra.mxu2 %v376_v9  ;;  %v324_v5 = vld [vmem:[#allocation2 + $0x428] sm:$0xff] }
  0xad   :  { %874 = vmatpush.msra.mxu0 %v248_v7  ;;  %933 = vmatpush.msra.mxu3 %v444_v10  ;;  %v392_v6 = vld [vmem:[#allocation2 + $0x648] sm:$0xff] }
  0xae   :  { %895 = vmatpush.msra.mxu1 %v308_v12  ;;  %915 = vmatpush.msra.mxu2 %v372_v13  ;;  %v192_v7 = vld [vmem:[#allocation2 + $0x8] sm:$0xff] }
  0xaf   :  { %875 = vmatpush.msra.mxu0 %v244_v11  ;;  %934 = vmatpush.msra.mxu3 %v440_v14  ;;  %v256_v8 = vld [vmem:[#allocation2 + $0x208] sm:$0xff] }
  0xb0   :  { %849 = vmatmul.f32.vlgmr.msrb.gmra.mxu2 %v3799_v15  ;;  %896 = vmatpush.msra.mxu1 %v304_v17  ;;  %v320_v9 = vld [vmem:[#allocation2 + $0x408] sm:$0xff] }
  0xb1   :  { %876 = vmatpush.msra.mxu0 %v240_v16  ;;  %916 = vmatpush.msra.mxu2 %v368_v18  ;;  %v388_v10 = vld [vmem:[#allocation2 + $0x628] sm:$0xff] }
  0xb2   :  { %935 = vmatpush.msra.mxu3 %v436_v19  ;;  %809 = vmatmul.f32.vlgmr.msrb.gmra.mxu0 %v3804_v20  ;;  %v508_v11 = vld [vmem:[#allocation2 + $0x9e8] sm:$0xff] }
  0xb3   :  { %869 = vmatmul.f32.vlgmr.msrb.gmra.mxu3 %v3810_v21  ;;  %877 = vmatpush.msra.mxu0 %v236_v22  ;;  %v572_v12 = vld [vmem:[#allocation2 + $0xbe8] sm:$0xff] }
  0xb4   :  { %897 = vmatpush.msra.mxu1 %v300_v23  ;;  %917 = vmatpush.msra.mxu2 %v364_v24  ;;  %v636_v13 = vld [vmem:[#allocation2 + $0xde8] sm:$0xff] }
  0xb5   :  { %936 = vmatpush.msra.mxu3 %v432_v25  ;;  %878 = vmatpush.msra.mxu0 %v232_v27  ;;  %v384_v14 = vld [vmem:[#allocation2 + $0x608] sm:$0xff] }
  0xb6   :  { %898 = vmatpush.msra.mxu1 %v296_v28  ;;  %918 = vmatpush.msra.mxu2 %v360_v29  ;;  %v504_v16 = vld [vmem:[#allocation2 + $0x9c8] sm:$0xff] }
  0xb7   :  { %937 = vmatpush.msra.mxu3 %v428_v30  ;;  %879 = vmatpush.msra.mxu0 %v228_v31  ;;  %v568_v17 = vld [vmem:[#allocation2 + $0xbc8] sm:$0xff] }
  0xb8   :  { %899 = vmatpush.msra.mxu1 %v292_v32  ;;  %919 = vmatpush.msra.mxu2 %v356_v33  ;;  %v632_v18 = vld [vmem:[#allocation2 + $0xdc8] sm:$0xff] }
  0xb9   :  { %938 = vmatpush.msra.mxu3 %v424_v34  ;;  %880 = vmatpush.msra.mxu0 %v224_v35  ;;  %v700_v19 = vld [vmem:[#allocation2 + $0xfe8] sm:$0xff] }
  0xba   :  { %900 = vmatpush.msra.mxu1 %v288_v36  ;;  %920 = vmatpush.msra.mxu2 %v352_v37  ;;  %v500_v22 = vld [vmem:[#allocation2 + $0x9a8] sm:$0xff] }
  0xbb   :  { %939 = vmatpush.msra.mxu3 %v420_v38  ;;  %881 = vmatpush.msra.mxu0 %v220_v39  ;;  %v564_v23 = vld [vmem:[#allocation2 + $0xba8] sm:$0xff] }
  0xbc   :  { %901 = vmatpush.msra.mxu1 %v284_v40  ;;  %921 = vmatpush.msra.mxu2 %v348_v41  ;;  %v628_v24 = vld [vmem:[#allocation2 + $0xda8] sm:$0xff] }
  0xbd   :  { %940 = vmatpush.msra.mxu3 %v416_v42  ;;  %882 = vmatpush.msra.mxu0 %v216_v43  ;;  %v696_v25 = vld [vmem:[#allocation2 + $0xfc8] sm:$0xff] }
  0xbe   :  { %902 = vmatpush.msra.mxu1 %v280_v44  ;;  %922 = vmatpush.msra.mxu2 %v344_v45  ;;  %v496_v27 = vld [vmem:[#allocation2 + $0x988] sm:$0xff] }
  0xbf   :  { %941 = vmatpush.msra.mxu3 %v412_v46  ;;  %883 = vmatpush.msra.mxu0 %v212_v47  ;;  %v560_v28 = vld [vmem:[#allocation2 + $0xb88] sm:$0xff] }
  0xc0   :  { %903 = vmatpush.msra.mxu1 %v276_v48  ;;  %923 = vmatpush.msra.mxu2 %v340_v49  ;;  %v624_v29 = vld [vmem:[#allocation2 + $0xd88] sm:$0xff] }
  0xc1   :  { %942 = vmatpush.msra.mxu3 %v408_v50  ;;  %884 = vmatpush.msra.mxu0 %v208_v51  ;;  %v692_v30 = vld [vmem:[#allocation2 + $0xfa8] sm:$0xff] }
  0xc2   :  { %904 = vmatpush.msra.mxu1 %v272_v52  ;;  %924 = vmatpush.msra.mxu2 %v336_v53  ;;  %v492_v31 = vld [vmem:[#allocation2 + $0x968] sm:$0xff] }
  0xc3   :  { %943 = vmatpush.msra.mxu3 %v404_v54  ;;  %885 = vmatpush.msra.mxu0 %v204_v55  ;;  %v556_v32 = vld [vmem:[#allocation2 + $0xb68] sm:$0xff] }
  0xc4   :  { %905 = vmatpush.msra.mxu1 %v268_v56  ;;  %925 = vmatpush.msra.mxu2 %v332_v57  ;;  %v620_v33 = vld [vmem:[#allocation2 + $0xd68] sm:$0xff] }
  0xc5   :  { %944 = vmatpush.msra.mxu3 %v400_v58  ;;  %886 = vmatpush.msra.mxu0 %v200_v60  ;;  %v688_v34 = vld [vmem:[#allocation2 + $0xf88] sm:$0xff] }
  0xc6   :  { %906 = vmatpush.msra.mxu1 %v264_v61  ;;  %926 = vmatpush.msra.mxu2 %v328_v62  ;;  %v488_v35 = vld [vmem:[#allocation2 + $0x948] sm:$0xff] }
  0xc7   :  { %945 = vmatpush.msra.mxu3 %v396_v63  ;;  %887 = vmatpush.msra.mxu0 %v196_v3  ;;  %v552_v36 = vld [vmem:[#allocation2 + $0xb48] sm:$0xff] }
  0xc8   :  { %907 = vmatpush.msra.mxu1 %v260_v4  ;;  %927 = vmatpush.msra.mxu2 %v324_v5  ;;  %v616_v37 = vld [vmem:[#allocation2 + $0xd48] sm:$0xff] }
  0xc9   :  { %946 = vmatpush.msra.mxu3 %v392_v6  ;;  %888 = vmatpush.msra.mxu0 %v192_v7  ;;  %v684_v38 = vld [vmem:[#allocation2 + $0xf68] sm:$0xff] }
  0xca   :  { %908 = vmatpush.msra.mxu1 %v256_v8  ;;  %928 = vmatpush.msra.mxu2 %v320_v9  ;;  %v484_v39 = vld [vmem:[#allocation2 + $0x928] sm:$0xff] }
  0xcb   :  { %947 = vmatpush.msra.mxu3 %v388_v10  ;;  %953 = vmatpush.msrb.mxu0 %v508_v11  ;;  %v548_v40 = vld [vmem:[#allocation2 + $0xb28] sm:$0xff] }
  0xcc   :  { %973 = vmatpush.msrb.mxu1 %v572_v12  ;;  %993 = vmatpush.msrb.mxu2 %v636_v13  ;;  %v612_v41 = vld [vmem:[#allocation2 + $0xd28] sm:$0xff] }
  0xcd   :  { %948 = vmatpush.msra.mxu3 %v384_v14  ;;  %954 = vmatpush.msrb.mxu0 %v504_v16  ;;  %v680_v42 = vld [vmem:[#allocation2 + $0xf48] sm:$0xff] }
  0xce   :  { %974 = vmatpush.msrb.mxu1 %v568_v17  ;;  %994 = vmatpush.msrb.mxu2 %v632_v18  ;;  %v480_v43 = vld [vmem:[#allocation2 + $0x908] sm:$0xff] }
  0xcf   :  { %1013 = vmatpush.msrb.mxu3 %v700_v19  ;;  %955 = vmatpush.msrb.mxu0 %v500_v22  ;;  %v544_v44 = vld [vmem:[#allocation2 + $0xb08] sm:$0xff]  ;;  %v253_v22 = vld [vmem:[#allocation2 + $0x1f0] sm:$0xff] }
  0xd0   :  { %975 = vmatpush.msrb.mxu1 %v564_v23  ;;  %995 = vmatpush.msrb.mxu2 %v628_v24  ;;  %v608_v45 = vld [vmem:[#allocation2 + $0xd08] sm:$0xff]  ;;  %v317_v23 = vld [vmem:[#allocation2 + $0x3f0] sm:$0xff] }
  0xd1   :  { %1014 = vmatpush.msrb.mxu3 %v696_v25  ;;  %956 = vmatpush.msrb.mxu0 %v496_v27  ;;  %v676_v46 = vld [vmem:[#allocation2 + $0xf28] sm:$0xff]  ;;  %v381_v24 = vld [vmem:[#allocation2 + $0x5f0] sm:$0xff] }
  0xd2   :  { %976 = vmatpush.msrb.mxu1 %v560_v28  ;;  %996 = vmatpush.msrb.mxu2 %v624_v29  ;;  %v476_v47 = vld [vmem:[#allocation2 + $0x8e8] sm:$0xff]  ;;  %v249_v27 = vld [vmem:[#allocation2 + $0x1d0] sm:$0xff] }
  0xd3   :  { %1015 = vmatpush.msrb.mxu3 %v692_v30  ;;  %957 = vmatpush.msrb.mxu0 %v492_v31  ;;  %v540_v48 = vld [vmem:[#allocation2 + $0xae8] sm:$0xff]  ;;  %v313_v28 = vld [vmem:[#allocation2 + $0x3d0] sm:$0xff] }
  0xd4   :  { %977 = vmatpush.msrb.mxu1 %v556_v32  ;;  %997 = vmatpush.msrb.mxu2 %v620_v33  ;;  %v604_v49 = vld [vmem:[#allocation2 + $0xce8] sm:$0xff]  ;;  %v377_v29 = vld [vmem:[#allocation2 + $0x5d0] sm:$0xff] }
  0xd5   :  { %1016 = vmatpush.msrb.mxu3 %v688_v34  ;;  %958 = vmatpush.msrb.mxu0 %v488_v35  ;;  %v672_v50 = vld [vmem:[#allocation2 + $0xf08] sm:$0xff]  ;;  %v245_v30 = vld [vmem:[#allocation2 + $0x1b0] sm:$0xff] }
  0xd6   :  { %978 = vmatpush.msrb.mxu1 %v552_v36  ;;  %998 = vmatpush.msrb.mxu2 %v616_v37  ;;  %v472_v51 = vld [vmem:[#allocation2 + $0x8c8] sm:$0xff]  ;;  %v309_v31 = vld [vmem:[#allocation2 + $0x3b0] sm:$0xff] }
  0xd7   :  { %1017 = vmatpush.msrb.mxu3 %v684_v38  ;;  %959 = vmatpush.msrb.mxu0 %v484_v39  ;;  %v536_v52 = vld [vmem:[#allocation2 + $0xac8] sm:$0xff]  ;;  %v373_v32 = vld [vmem:[#allocation2 + $0x5b0] sm:$0xff] }
  0xd8   :  { %979 = vmatpush.msrb.mxu1 %v548_v40  ;;  %999 = vmatpush.msrb.mxu2 %v612_v41  ;;  %v600_v53 = vld [vmem:[#allocation2 + $0xcc8] sm:$0xff]  ;;  %v241_v33 = vld [vmem:[#allocation2 + $0x190] sm:$0xff] }
  0xd9   :  { %1018 = vmatpush.msrb.mxu3 %v680_v42  ;;  %960 = vmatpush.msrb.mxu0 %v480_v43  ;;  %v668_v54 = vld [vmem:[#allocation2 + $0xee8] sm:$0xff]  ;;  %v437_v34 = vld [vmem:[#allocation2 + $0x7b0] sm:$0xff] }
  0xda   :  { %980 = vmatpush.msrb.mxu1 %v544_v44  ;;  %1000 = vmatpush.msrb.mxu2 %v608_v45  ;;  %v468_v55 = vld [vmem:[#allocation2 + $0x8a8] sm:$0xff]  ;;  %v237_v35 = vld [vmem:[#allocation2 + $0x170] sm:$0xff] }
  0xdb   :  { %1019 = vmatpush.msrb.mxu3 %v676_v46  ;;  %961 = vmatpush.msrb.mxu0 %v476_v47  ;;  %v532_v56 = vld [vmem:[#allocation2 + $0xaa8] sm:$0xff]  ;;  %v301_v36 = vld [vmem:[#allocation2 + $0x370] sm:$0xff] }
  0xdc   :  { %981 = vmatpush.msrb.mxu1 %v540_v48  ;;  %1001 = vmatpush.msrb.mxu2 %v604_v49  ;;  %v596_v57 = vld [vmem:[#allocation2 + $0xca8] sm:$0xff]  ;;  %v365_v37 = vld [vmem:[#allocation2 + $0x570] sm:$0xff] }
  0xdd   :  { %1020 = vmatpush.msrb.mxu3 %v672_v50  ;;  %962 = vmatpush.msrb.mxu0 %v472_v51  ;;  %v664_v58 = vld [vmem:[#allocation2 + $0xec8] sm:$0xff]  ;;  %v433_v38 = vld [vmem:[#allocation2 + $0x790] sm:$0xff] }
  0xde   :  { %982 = vmatpush.msrb.mxu1 %v536_v52  ;;  %1002 = vmatpush.msrb.mxu2 %v600_v53  ;;  %v464_v60 = vld [vmem:[#allocation2 + $0x888] sm:$0xff]  ;;  %v233_v39 = vld [vmem:[#allocation2 + $0x150] sm:$0xff] }
  0xdf   :  { %1021 = vmatpush.msrb.mxu3 %v668_v54  ;;  %v528_v61 = vld [vmem:[#allocation2 + $0xa88] sm:$0xff]  ;;  %963 = vmatpush.msrb.mxu0 %v468_v55  ;;  %v297_v40 = vld [vmem:[#allocation2 + $0x350] sm:$0xff] }
  0xe0   :  { %983 = vmatpush.msrb.mxu1 %v532_v56  ;;  %v592_v62 = vld [vmem:[#allocation2 + $0xc88] sm:$0xff]  ;;  %1003 = vmatpush.msrb.mxu2 %v596_v57  ;;  %v361_v41 = vld [vmem:[#allocation2 + $0x550] sm:$0xff] }
  0xe1   :  { %v660_v63 = vld [vmem:[#allocation2 + $0xea8] sm:$0xff]  ;;  %1022 = vmatpush.msrb.mxu3 %v664_v58  ;;  %964 = vmatpush.msrb.mxu0 %v464_v60  ;;  %v429_v42 = vld [vmem:[#allocation2 + $0x770] sm:$0xff] }
  0xe2   :  { %v460_v3 = vld [vmem:[#allocation2 + $0x868] sm:$0xff]  ;;  %984 = vmatpush.msrb.mxu1 %v528_v61  ;;  %1004 = vmatpush.msrb.mxu2 %v592_v62  ;;  %v293_v43 = vld [vmem:[#allocation2 + $0x330] sm:$0xff] }
  0xe3   :  { %v524_v4 = vld [vmem:[#allocation2 + $0xa68] sm:$0xff]  ;;  %1023 = vmatpush.msrb.mxu3 %v660_v63  ;;  %965 = vmatpush.msrb.mxu0 %v460_v3  ;;  %v357_v44 = vld [vmem:[#allocation2 + $0x530] sm:$0xff] }
  0xe4   :  { %v588_v5 = vld [vmem:[#allocation2 + $0xc68] sm:$0xff]  ;;  %985 = vmatpush.msrb.mxu1 %v524_v4  ;;  %929 = vmatmul.f32.vlgmr.msra.gmra.mxu2 %v3775_v59  ;;  %v445_v59 = vld [vmem:[#allocation2 + $0x7f0] sm:$0xff] }
  0xe5   :  { %v656_v6 = vld [vmem:[#allocation2 + $0xe88] sm:$0xff]  ;;  %1005 = vmatpush.msrb.mxu2 %v588_v5  ;;  %889 = vmatmul.f32.vlgmr.msra.gmra.mxu0 %v3780_v0  ;;  %v441_v0 = vld [vmem:[#allocation2 + $0x7d0] sm:$0xff] }
  0xe6   :  { %v456_v7 = vld [vmem:[#allocation2 + $0x848] sm:$0xff]  ;;  %1024 = vmatpush.msrb.mxu3 %v656_v6  ;;  %909 = vmatmul.f32.vlgmr.msra.gmra.mxu1 %v3786_v1  ;;  %v305_v1 = vld [vmem:[#allocation2 + $0x390] sm:$0xff] }
  0xe7   :  { %v520_v8 = vld [vmem:[#allocation2 + $0xa48] sm:$0xff]  ;;  %966 = vmatpush.msrb.mxu0 %v456_v7  ;;  %949 = vmatmul.f32.vlgmr.msra.gmra.mxu3 %v3791_v2  ;;  %v369_v2 = vld [vmem:[#allocation2 + $0x590] sm:$0xff] }
  0xe8   :  { %v584_v9 = vld [vmem:[#allocation2 + $0xc48] sm:$0xff]  ;;  %986 = vmatpush.msrb.mxu1 %v520_v8  ;;  %v425_v45 = vld [vmem:[#allocation2 + $0x750] sm:$0xff] }
  0xe9   :  { %v652_v10 = vld [vmem:[#allocation2 + $0xe68] sm:$0xff]  ;;  %1006 = vmatpush.msrb.mxu2 %v584_v9  ;;  %v353_v46 = vld [vmem:[#allocation2 + $0x510] sm:$0xff] }
  0xea   :  { %v452_v11 = vld [vmem:[#allocation2 + $0x828] sm:$0xff]  ;;  %1025 = vmatpush.msrb.mxu3 %v652_v10  ;;  %v421_v47 = vld [vmem:[#allocation2 + $0x730] sm:$0xff] }
  0xeb   :  { %v516_v12 = vld [vmem:[#allocation2 + $0xa28] sm:$0xff]  ;;  %967 = vmatpush.msrb.mxu0 %v452_v11  ;;  %v221_v48 = vld [vmem:[#allocation2 + $0xf0] sm:$0xff] }
  0xec   :  { %v580_v13 = vld [vmem:[#allocation2 + $0xc28] sm:$0xff]  ;;  %987 = vmatpush.msrb.mxu1 %v516_v12  ;;  %v285_v49 = vld [vmem:[#allocation2 + $0x2f0] sm:$0xff] }
  0xed   :  { %v648_v14 = vld [vmem:[#allocation2 + $0xe48] sm:$0xff]  ;;  %1007 = vmatpush.msrb.mxu2 %v580_v13  ;;  %v417_v50 = vld [vmem:[#allocation2 + $0x710] sm:$0xff] }
  0xee   :  { %v448_v16 = vld [vmem:[#allocation2 + $0x808] sm:$0xff]  ;;  %1026 = vmatpush.msrb.mxu3 %v648_v14  ;;  %v217_v51 = vld [vmem:[#allocation2 + $0xd0] sm:$0xff] }
  0xef   :  { %v512_v17 = vld [vmem:[#allocation2 + $0xa08] sm:$0xff]  ;;  %968 = vmatpush.msrb.mxu0 %v448_v16  ;;  %v281_v52 = vld [vmem:[#allocation2 + $0x2d0] sm:$0xff] }
  0xf0   :  { %v576_v18 = vld [vmem:[#allocation2 + $0xc08] sm:$0xff]  ;;  %988 = vmatpush.msrb.mxu1 %v512_v17  ;;  %969 = vmatmul.f32.vlgmr.msrb.gmra.mxu0 %v3804_v20  ;;  %v225_v20 = vld [vmem:[#allocation2 + $0x110] sm:$0xff] }
  0xf1   :  { %v644_v19 = vld [vmem:[#allocation2 + $0xe28] sm:$0xff]  ;;  %1008 = vmatpush.msrb.mxu2 %v576_v18  ;;  %1033 = vmatpush.msra.mxu0 %v253_v22  ;;  %v345_v53 = vld [vmem:[#allocation2 + $0x4d0] sm:$0xff] }
  0xf2   :  { %1027 = vmatpush.msrb.mxu3 %v644_v19  ;;  %v640_v25 = vld [vmem:[#allocation2 + $0xe08] sm:$0xff]  ;;  %1053 = vmatpush.msra.mxu1 %v317_v23  ;;  %v413_v54 = vld [vmem:[#allocation2 + $0x6f0] sm:$0xff] }
  0xf3   :  { %1073 = vmatpush.msra.mxu2 %v381_v24  ;;  %1034 = vmatpush.msra.mxu0 %v249_v27  ;;  %v213_v55 = vld [vmem:[#allocation2 + $0xb0] sm:$0xff] }
  0xf4   :  { %1028 = vmatpush.msrb.mxu3 %v640_v25  ;;  %1054 = vmatpush.msra.mxu1 %v313_v28  ;;  %v277_v56 = vld [vmem:[#allocation2 + $0x2b0] sm:$0xff] }
  0xf5   :  { %1074 = vmatpush.msra.mxu2 %v377_v29  ;;  %1035 = vmatpush.msra.mxu0 %v245_v30  ;;  %v341_v57 = vld [vmem:[#allocation2 + $0x4b0] sm:$0xff] }
  0xf6   :  { %1093 = vmatpush.msra.mxu3 %v445_v59  ;;  %1055 = vmatpush.msra.mxu1 %v309_v31  ;;  %v409_v58 = vld [vmem:[#allocation2 + $0x6d0] sm:$0xff] }
  0xf7   :  { %1075 = vmatpush.msra.mxu2 %v373_v32  ;;  %1036 = vmatpush.msra.mxu0 %v241_v33  ;;  %v209_v60 = vld [vmem:[#allocation2 + $0x90] sm:$0xff] }
  0xf8   :  { %1094 = vmatpush.msra.mxu3 %v441_v0  ;;  %1009 = vmatmul.f32.vlgmr.msrb.gmra.mxu2 %v3799_v15  ;;  %v229_v15 = vld [vmem:[#allocation2 + $0x130] sm:$0xff] }
  0xf9   :  { %1056 = vmatpush.msra.mxu1 %v305_v1  ;;  %1076 = vmatpush.msra.mxu2 %v369_v2  ;;  %v273_v61 = vld [vmem:[#allocation2 + $0x290] sm:$0xff] }
  0xfa   :  { %1095 = vmatpush.msra.mxu3 %v437_v34  ;;  %1037 = vmatpush.msra.mxu0 %v237_v35  ;;  %v337_v62 = vld [vmem:[#allocation2 + $0x490] sm:$0xff] }
  0xfb   :  { %1029 = vmatmul.f32.vlgmr.msrb.gmra.mxu3 %v3810_v21  ;;  %1057 = vmatpush.msra.mxu1 %v301_v36  ;;  %v289_v21 = vld [vmem:[#allocation2 + $0x310] sm:$0xff] }
  0xfc   :  { %1077 = vmatpush.msra.mxu2 %v365_v37  ;;  %1096 = vmatpush.msra.mxu3 %v433_v38  ;;  %v405_v63 = vld [vmem:[#allocation2 + $0x6b0] sm:$0xff] }
  0xfd   :  { %989 = vmatmul.f32.vlgmr.msrb.gmra.mxu1 %v3816_v26  ;;  %1038 = vmatpush.msra.mxu0 %v233_v39  ;;  %v349_v26 = vld [vmem:[#allocation2 + $0x4f0] sm:$0xff] }
  0xfe   :  { %1058 = vmatpush.msra.mxu1 %v297_v40  ;;  %1078 = vmatpush.msra.mxu2 %v361_v41  ;;  %v205_v3 = vld [vmem:[#allocation2 + $0x70] sm:$0xff] }
  0xff   :  { %1097 = vmatpush.msra.mxu3 %v429_v42  ;;  %1039 = vmatpush.msra.mxu0 %v229_v15  ;;  %v269_v4 = vld [vmem:[#allocation2 + $0x270] sm:$0xff] }
 0x100   :  { %1059 = vmatpush.msra.mxu1 %v293_v43  ;;  %1079 = vmatpush.msra.mxu2 %v357_v44  ;;  %v333_v5 = vld [vmem:[#allocation2 + $0x470] sm:$0xff] }
 0x101   :  { %1098 = vmatpush.msra.mxu3 %v425_v45  ;;  %1040 = vmatpush.msra.mxu0 %v225_v20  ;;  %v401_v6 = vld [vmem:[#allocation2 + $0x690] sm:$0xff] }
 0x102   :  { %1060 = vmatpush.msra.mxu1 %v289_v21  ;;  %1080 = vmatpush.msra.mxu2 %v353_v46  ;;  %v201_v7 = vld [vmem:[#allocation2 + $0x50] sm:$0xff] }
 0x103   :  { %1099 = vmatpush.msra.mxu3 %v421_v47  ;;  %1041 = vmatpush.msra.mxu0 %v221_v48  ;;  %v265_v8 = vld [vmem:[#allocation2 + $0x250] sm:$0xff] }
 0x104   :  { %1061 = vmatpush.msra.mxu1 %v285_v49  ;;  %1081 = vmatpush.msra.mxu2 %v349_v26  ;;  %v329_v9 = vld [vmem:[#allocation2 + $0x450] sm:$0xff] }
 0x105   :  { %1100 = vmatpush.msra.mxu3 %v417_v50  ;;  %1042 = vmatpush.msra.mxu0 %v217_v51  ;;  %v397_v10 = vld [vmem:[#allocation2 + $0x670] sm:$0xff] }
 0x106   :  { %1062 = vmatpush.msra.mxu1 %v281_v52  ;;  %1082 = vmatpush.msra.mxu2 %v345_v53  ;;  %v197_v11 = vld [vmem:[#allocation2 + $0x30] sm:$0xff] }
 0x107   :  { %1101 = vmatpush.msra.mxu3 %v413_v54  ;;  %1043 = vmatpush.msra.mxu0 %v213_v55  ;;  %v261_v12 = vld [vmem:[#allocation2 + $0x230] sm:$0xff] }
 0x108   :  { %1063 = vmatpush.msra.mxu1 %v277_v56  ;;  %1083 = vmatpush.msra.mxu2 %v341_v57  ;;  %v325_v13 = vld [vmem:[#allocation2 + $0x430] sm:$0xff] }
 0x109   :  { %1102 = vmatpush.msra.mxu3 %v409_v58  ;;  %1044 = vmatpush.msra.mxu0 %v209_v60  ;;  %v393_v14 = vld [vmem:[#allocation2 + $0x650] sm:$0xff] }
 0x10a   :  { %1064 = vmatpush.msra.mxu1 %v273_v61  ;;  %1084 = vmatpush.msra.mxu2 %v337_v62  ;;  %v193_v16 = vld [vmem:[#allocation2 + $0x10] sm:$0xff] }
 0x10b   :  { %1103 = vmatpush.msra.mxu3 %v405_v63  ;;  %1045 = vmatpush.msra.mxu0 %v205_v3  ;;  %v257_v17 = vld [vmem:[#allocation2 + $0x210] sm:$0xff] }
 0x10c   :  { %1065 = vmatpush.msra.mxu1 %v269_v4  ;;  %1085 = vmatpush.msra.mxu2 %v333_v5  ;;  %v321_v18 = vld [vmem:[#allocation2 + $0x410] sm:$0xff] }
 0x10d   :  { %1104 = vmatpush.msra.mxu3 %v401_v6  ;;  %1046 = vmatpush.msra.mxu0 %v201_v7  ;;  %v389_v19 = vld [vmem:[#allocation2 + $0x630] sm:$0xff] }
 0x10e   :  { %1066 = vmatpush.msra.mxu1 %v265_v8  ;;  %1086 = vmatpush.msra.mxu2 %v329_v9  ;;  %v509_v22 = vld [vmem:[#allocation2 + $0x9f0] sm:$0xff] }
 0x10f   :  { %1105 = vmatpush.msra.mxu3 %v397_v10  ;;  %1047 = vmatpush.msra.mxu0 %v197_v11  ;;  %v573_v23 = vld [vmem:[#allocation2 + $0xbf0] sm:$0xff]  ;;  %v3837_v11 = vld [vmem:[%s4274_s12] sm:$0xff] }
 0x110   :  { %1067 = vmatpush.msra.mxu1 %v261_v12  ;;  %1087 = vmatpush.msra.mxu2 %v325_v13  ;;  %v637_v24 = vld [vmem:[#allocation2 + $0xdf0] sm:$0xff]  ;;  %v3843_v13 = vld [vmem:[%s4274_s12 + $0x18] sm:$0xff] }
 0x111   :  { %1106 = vmatpush.msra.mxu3 %v393_v14  ;;  %1048 = vmatpush.msra.mxu0 %v193_v16  ;;  %v385_v25 = vld [vmem:[#allocation2 + $0x610] sm:$0xff] }
 0x112   :  { %1068 = vmatpush.msra.mxu1 %v257_v17  ;;  %1088 = vmatpush.msra.mxu2 %v321_v18  ;;  %v505_v27 = vld [vmem:[#allocation2 + $0x9d0] sm:$0xff] }
 0x113   :  { %1107 = vmatpush.msra.mxu3 %v389_v19  ;;  %v569_v28 = vld [vmem:[#allocation2 + $0xbd0] sm:$0xff]  ;;  %1113 = vmatpush.msrb.mxu0 %v509_v22  ;;  %v3849_v19 = vld [vmem:[%s4274_s12 + $0x8] sm:$0xff] }
 0x114   :  { %1133 = vmatpush.msrb.mxu1 %v573_v23  ;;  %v633_v29 = vld [vmem:[#allocation2 + $0xdd0] sm:$0xff]  ;;  %1153 = vmatpush.msrb.mxu2 %v637_v24 }
 0x115   :  { %v701_v59 = vld [vmem:[#allocation2 + $0xff0] sm:$0xff]  ;;  %1108 = vmatpush.msra.mxu3 %v385_v25  ;;  %1114 = vmatpush.msrb.mxu0 %v505_v27  ;;  %v254_v27 = vld [vmem:[#allocation2 + $0x1f8] sm:$0xff] }
 0x116   :  { %v501_v30 = vld [vmem:[#allocation2 + $0x9b0] sm:$0xff]  ;;  %1134 = vmatpush.msrb.mxu1 %v569_v28  ;;  %1154 = vmatpush.msrb.mxu2 %v633_v29  ;;  %v318_v28 = vld [vmem:[#allocation2 + $0x3f8] sm:$0xff] }
 0x117   :  { %v565_v31 = vld [vmem:[#allocation2 + $0xbb0] sm:$0xff]  ;;  %1173 = vmatpush.msrb.mxu3 %v701_v59  ;;  %1115 = vmatpush.msrb.mxu0 %v501_v30  ;;  %v382_v29 = vld [vmem:[#allocation2 + $0x5f8] sm:$0xff] }
 0x118   :  { %v629_v32 = vld [vmem:[#allocation2 + $0xdb0] sm:$0xff]  ;;  %1135 = vmatpush.msrb.mxu1 %v565_v31  ;;  %1049 = vmatmul.f32.vlgmr.msra.gmra.mxu0 %v3837_v11  ;;  %v250_v31 = vld [vmem:[#allocation2 + $0x1d8] sm:$0xff] }
 0x119   :  { %v697_v0 = vld [vmem:[#allocation2 + $0xfd0] sm:$0xff]  ;;  %1155 = vmatpush.msrb.mxu2 %v629_v32  ;;  %1109 = vmatmul.f32.vlgmr.msra.gmra.mxu3 %v3843_v13  ;;  %v314_v32 = vld [vmem:[#allocation2 + $0x3d8] sm:$0xff] }
 0x11a   :  { %v497_v33 = vld [vmem:[#allocation2 + $0x990] sm:$0xff]  ;;  %1174 = vmatpush.msrb.mxu3 %v697_v0  ;;  %1069 = vmatmul.f32.vlgmr.msra.gmra.mxu1 %v3849_v19  ;;  %v378_v0 = vld [vmem:[#allocation2 + $0x5d8] sm:$0xff] }
 0x11b   :  { %v561_v1 = vld [vmem:[#allocation2 + $0xb90] sm:$0xff]  ;;  %1116 = vmatpush.msrb.mxu0 %v497_v33  ;;  %v3861_v33 = vld [vmem:[%s4274_s12 + $0x20] sm:$0xff] }
 0x11c   :  { %v625_v2 = vld [vmem:[#allocation2 + $0xd90] sm:$0xff]  ;;  %1136 = vmatpush.msrb.mxu1 %v561_v1  ;;  %v446_v1 = vld [vmem:[#allocation2 + $0x7f8] sm:$0xff] }
 0x11d   :  { %v693_v34 = vld [vmem:[#allocation2 + $0xfb0] sm:$0xff]  ;;  %1156 = vmatpush.msrb.mxu2 %v625_v2  ;;  %v3867_v2 = vld [vmem:[%s4274_s12 + $0x38] sm:$0xff] }
 0x11e   :  { %v493_v35 = vld [vmem:[#allocation2 + $0x970] sm:$0xff]  ;;  %1175 = vmatpush.msrb.mxu3 %v693_v34  ;;  %v246_v34 = vld [vmem:[#allocation2 + $0x1b8] sm:$0xff] }
 0x11f   :  { %v557_v36 = vld [vmem:[#allocation2 + $0xb70] sm:$0xff]  ;;  %1117 = vmatpush.msrb.mxu0 %v493_v35  ;;  %v310_v35 = vld [vmem:[#allocation2 + $0x3b8] sm:$0xff] }
 0x120   :  { %v621_v37 = vld [vmem:[#allocation2 + $0xd70] sm:$0xff]  ;;  %1137 = vmatpush.msrb.mxu1 %v557_v36  ;;  %v374_v36 = vld [vmem:[#allocation2 + $0x5b8] sm:$0xff] }
 0x121   :  { %v689_v38 = vld [vmem:[#allocation2 + $0xf90] sm:$0xff]  ;;  %1157 = vmatpush.msrb.mxu2 %v621_v37  ;;  %v442_v37 = vld [vmem:[#allocation2 + $0x7d8] sm:$0xff] }
 0x122   :  { %v489_v39 = vld [vmem:[#allocation2 + $0x950] sm:$0xff]  ;;  %1176 = vmatpush.msrb.mxu3 %v689_v38  ;;  %v3873_v38 = vld [vmem:[%s4274_s12 + $0x28] sm:$0xff] }
 0x123   :  { %v553_v40 = vld [vmem:[#allocation2 + $0xb50] sm:$0xff]  ;;  %1118 = vmatpush.msrb.mxu0 %v489_v39  ;;  %v242_v39 = vld [vmem:[#allocation2 + $0x198] sm:$0xff] }
 0x124   :  { %v617_v41 = vld [vmem:[#allocation2 + $0xd50] sm:$0xff]  ;;  %1138 = vmatpush.msrb.mxu1 %v553_v40  ;;  %v306_v40 = vld [vmem:[#allocation2 + $0x398] sm:$0xff] }
 0x125   :  { %v685_v42 = vld [vmem:[#allocation2 + $0xf70] sm:$0xff]  ;;  %1158 = vmatpush.msrb.mxu2 %v617_v41  ;;  %v370_v41 = vld [vmem:[#allocation2 + $0x598] sm:$0xff] }
 0x126   :  { %v485_v15 = vld [vmem:[#allocation2 + $0x930] sm:$0xff]  ;;  %1177 = vmatpush.msrb.mxu3 %v685_v42  ;;  %v438_v42 = vld [vmem:[#allocation2 + $0x7b8] sm:$0xff] }
 0x127   :  { %v549_v43 = vld [vmem:[#allocation2 + $0xb30] sm:$0xff]  ;;  %1119 = vmatpush.msrb.mxu0 %v485_v15  ;;  %v238_v15 = vld [vmem:[#allocation2 + $0x178] sm:$0xff] }
 0x128   :  { %v613_v44 = vld [vmem:[#allocation2 + $0xd30] sm:$0xff]  ;;  %1139 = vmatpush.msrb.mxu1 %v549_v43  ;;  %v302_v43 = vld [vmem:[#allocation2 + $0x378] sm:$0xff] }
 0x129   :  { %v681_v45 = vld [vmem:[#allocation2 + $0xf50] sm:$0xff]  ;;  %1159 = vmatpush.msrb.mxu2 %v613_v44  ;;  %v366_v44 = vld [vmem:[#allocation2 + $0x578] sm:$0xff] }
 0x12a   :  { %v481_v20 = vld [vmem:[#allocation2 + $0x910] sm:$0xff]  ;;  %1178 = vmatpush.msrb.mxu3 %v681_v45  ;;  %v434_v45 = vld [vmem:[#allocation2 + $0x798] sm:$0xff] }
 0x12b   :  { %v545_v21 = vld [vmem:[#allocation2 + $0xb10] sm:$0xff]  ;;  %1120 = vmatpush.msrb.mxu0 %v481_v20  ;;  %v234_v20 = vld [vmem:[#allocation2 + $0x158] sm:$0xff] }
 0x12c   :  { %v609_v46 = vld [vmem:[#allocation2 + $0xd10] sm:$0xff]  ;;  %1140 = vmatpush.msrb.mxu1 %v545_v21  ;;  %v298_v21 = vld [vmem:[#allocation2 + $0x358] sm:$0xff] }
 0x12d   :  { %v677_v47 = vld [vmem:[#allocation2 + $0xf30] sm:$0xff]  ;;  %1160 = vmatpush.msrb.mxu2 %v609_v46  ;;  %v362_v46 = vld [vmem:[#allocation2 + $0x558] sm:$0xff] }
 0x12e   :  { %v477_v48 = vld [vmem:[#allocation2 + $0x8f0] sm:$0xff]  ;;  %1179 = vmatpush.msrb.mxu3 %v677_v47  ;;  %v430_v47 = vld [vmem:[#allocation2 + $0x778] sm:$0xff] }
 0x12f   :  { %v541_v49 = vld [vmem:[#allocation2 + $0xaf0] sm:$0xff]  ;;  %1121 = vmatpush.msrb.mxu0 %v477_v48  ;;  %v230_v48 = vld [vmem:[#allocation2 + $0x138] sm:$0xff] }
 0x130   :  { %v605_v26 = vld [vmem:[#allocation2 + $0xcf0] sm:$0xff]  ;;  %1141 = vmatpush.msrb.mxu1 %v541_v49  ;;  %v294_v49 = vld [vmem:[#allocation2 + $0x338] sm:$0xff] }
 0x131   :  { %v673_v50 = vld [vmem:[#allocation2 + $0xf10] sm:$0xff]  ;;  %1161 = vmatpush.msrb.mxu2 %v605_v26  ;;  %v358_v26 = vld [vmem:[#allocation2 + $0x538] sm:$0xff] }
 0x132   :  { %v473_v51 = vld [vmem:[#allocation2 + $0x8d0] sm:$0xff]  ;;  %1180 = vmatpush.msrb.mxu3 %v673_v50  ;;  %v426_v50 = vld [vmem:[#allocation2 + $0x758] sm:$0xff] }
 0x133   :  { %v537_v52 = vld [vmem:[#allocation2 + $0xad0] sm:$0xff]  ;;  %1122 = vmatpush.msrb.mxu0 %v473_v51  ;;  %v226_v51 = vld [vmem:[#allocation2 + $0x118] sm:$0xff] }
 0x134   :  { %v601_v53 = vld [vmem:[#allocation2 + $0xcd0] sm:$0xff]  ;;  %1142 = vmatpush.msrb.mxu1 %v537_v52  ;;  %v290_v52 = vld [vmem:[#allocation2 + $0x318] sm:$0xff] }
 0x135   :  { %v669_v54 = vld [vmem:[#allocation2 + $0xef0] sm:$0xff]  ;;  %1162 = vmatpush.msrb.mxu2 %v601_v53  ;;  %v354_v53 = vld [vmem:[#allocation2 + $0x518] sm:$0xff] }
 0x136   :  { %v469_v55 = vld [vmem:[#allocation2 + $0x8b0] sm:$0xff]  ;;  %1181 = vmatpush.msrb.mxu3 %v669_v54  ;;  %v422_v54 = vld [vmem:[#allocation2 + $0x738] sm:$0xff] }
 0x137   :  { %v533_v56 = vld [vmem:[#allocation2 + $0xab0] sm:$0xff]  ;;  %1123 = vmatpush.msrb.mxu0 %v469_v55  ;;  %v222_v55 = vld [vmem:[#allocation2 + $0xf8] sm:$0xff] }
 0x138   :  { %v597_v57 = vld [vmem:[#allocation2 + $0xcb0] sm:$0xff]  ;;  %1143 = vmatpush.msrb.mxu1 %v533_v56  ;;  %v286_v56 = vld [vmem:[#allocation2 + $0x2f8] sm:$0xff] }
 0x139   :  { %v665_v58 = vld [vmem:[#allocation2 + $0xed0] sm:$0xff]  ;;  %1163 = vmatpush.msrb.mxu2 %v597_v57  ;;  %v350_v57 = vld [vmem:[#allocation2 + $0x4f8] sm:$0xff] }
 0x13a   :  { %v465_v60 = vld [vmem:[#allocation2 + $0x890] sm:$0xff]  ;;  %1182 = vmatpush.msrb.mxu3 %v665_v58  ;;  %v418_v58 = vld [vmem:[#allocation2 + $0x718] sm:$0xff] }
 0x13b   :  { %v529_v61 = vld [vmem:[#allocation2 + $0xa90] sm:$0xff]  ;;  %1124 = vmatpush.msrb.mxu0 %v465_v60  ;;  %v218_v60 = vld [vmem:[#allocation2 + $0xd8] sm:$0xff] }
 0x13c   :  { %v593_v62 = vld [vmem:[#allocation2 + $0xc90] sm:$0xff]  ;;  %1144 = vmatpush.msrb.mxu1 %v529_v61  ;;  %v282_v61 = vld [vmem:[#allocation2 + $0x2d8] sm:$0xff] }
 0x13d   :  { %v661_v63 = vld [vmem:[#allocation2 + $0xeb0] sm:$0xff]  ;;  %1164 = vmatpush.msrb.mxu2 %v593_v62  ;;  %v346_v62 = vld [vmem:[#allocation2 + $0x4d8] sm:$0xff] }
 0x13e   :  { %v461_v3 = vld [vmem:[#allocation2 + $0x870] sm:$0xff]  ;;  %1183 = vmatpush.msrb.mxu3 %v661_v63  ;;  %v414_v63 = vld [vmem:[#allocation2 + $0x6f8] sm:$0xff] }
 0x13f   :  { %v525_v4 = vld [vmem:[#allocation2 + $0xa70] sm:$0xff]  ;;  %1125 = vmatpush.msrb.mxu0 %v461_v3  ;;  %v214_v3 = vld [vmem:[#allocation2 + $0xb8] sm:$0xff] }
 0x140   :  { %v589_v5 = vld [vmem:[#allocation2 + $0xc70] sm:$0xff]  ;;  %1145 = vmatpush.msrb.mxu1 %v525_v4  ;;  %v278_v4 = vld [vmem:[#allocation2 + $0x2b8] sm:$0xff] }
 0x141   :  { %v657_v6 = vld [vmem:[#allocation2 + $0xe90] sm:$0xff]  ;;  %1165 = vmatpush.msrb.mxu2 %v589_v5  ;;  %v342_v5 = vld [vmem:[#allocation2 + $0x4b8] sm:$0xff] }
 0x142   :  { %v3831_v7 = vld [vmem:[%s4274_s12 + $0x10] sm:$0xff]  ;;  %1184 = vmatpush.msrb.mxu3 %v657_v6  ;;  %v410_v6 = vld [vmem:[#allocation2 + $0x6d8] sm:$0xff] }
 0x143   :  { %1089 = vmatmul.f32.vlgmr.msra.gmra.mxu2 %v3831_v7  ;;  %v457_v8 = vld [vmem:[#allocation2 + $0x850] sm:$0xff] }
 0x144   :  { %v521_v9 = vld [vmem:[#allocation2 + $0xa50] sm:$0xff]  ;;  %1126 = vmatpush.msrb.mxu0 %v457_v8  ;;  %v210_v8 = vld [vmem:[#allocation2 + $0x98] sm:$0xff] }
 0x145   :  { %v585_v10 = vld [vmem:[#allocation2 + $0xc50] sm:$0xff]  ;;  %1146 = vmatpush.msrb.mxu1 %v521_v9  ;;  %v274_v9 = vld [vmem:[#allocation2 + $0x298] sm:$0xff] }
 0x146   :  { %v653_v12 = vld [vmem:[#allocation2 + $0xe70] sm:$0xff]  ;;  %1166 = vmatpush.msrb.mxu2 %v585_v10  ;;  %v338_v10 = vld [vmem:[#allocation2 + $0x498] sm:$0xff] }
 0x147   :  { %v453_v14 = vld [vmem:[#allocation2 + $0x830] sm:$0xff]  ;;  %1185 = vmatpush.msrb.mxu3 %v653_v12  ;;  %v406_v12 = vld [vmem:[#allocation2 + $0x6b8] sm:$0xff] }
 0x148   :  { %v517_v16 = vld [vmem:[#allocation2 + $0xa30] sm:$0xff]  ;;  %1127 = vmatpush.msrb.mxu0 %v453_v14  ;;  %v206_v14 = vld [vmem:[#allocation2 + $0x78] sm:$0xff] }
 0x149   :  { %v581_v17 = vld [vmem:[#allocation2 + $0xc30] sm:$0xff]  ;;  %1147 = vmatpush.msrb.mxu1 %v517_v16  ;;  %v270_v16 = vld [vmem:[#allocation2 + $0x278] sm:$0xff] }
 0x14a   :  { %v649_v18 = vld [vmem:[#allocation2 + $0xe50] sm:$0xff]  ;;  %1167 = vmatpush.msrb.mxu2 %v581_v17  ;;  %v334_v17 = vld [vmem:[#allocation2 + $0x478] sm:$0xff] }
 0x14b   :  { %v449_v22 = vld [vmem:[#allocation2 + $0x810] sm:$0xff]  ;;  %1186 = vmatpush.msrb.mxu3 %v649_v18  ;;  %v402_v18 = vld [vmem:[#allocation2 + $0x698] sm:$0xff] }
 0x14c   :  { %v513_v23 = vld [vmem:[#allocation2 + $0xa10] sm:$0xff]  ;;  %1128 = vmatpush.msrb.mxu0 %v449_v22  ;;  %v202_v22 = vld [vmem:[#allocation2 + $0x58] sm:$0xff] }
 0x14d   :  { %v577_v24 = vld [vmem:[#allocation2 + $0xc10] sm:$0xff]  ;;  %1148 = vmatpush.msrb.mxu1 %v513_v23  ;;  %1129 = vmatmul.f32.vlgmr.msrb.gmra.mxu0 %v3861_v33  ;;  %v266_v23 = vld [vmem:[#allocation2 + $0x258] sm:$0xff] }
 0x14e   :  { %v645_v25 = vld [vmem:[#allocation2 + $0xe30] sm:$0xff]  ;;  %1168 = vmatpush.msrb.mxu2 %v577_v24  ;;  %1193 = vmatpush.msra.mxu0 %v254_v27  ;;  %v330_v24 = vld [vmem:[#allocation2 + $0x458] sm:$0xff] }
 0x14f   :  { %1187 = vmatpush.msrb.mxu3 %v645_v25  ;;  %v641_v59 = vld [vmem:[#allocation2 + $0xe10] sm:$0xff]  ;;  %1213 = vmatpush.msra.mxu1 %v318_v28  ;;  %v398_v25 = vld [vmem:[#allocation2 + $0x678] sm:$0xff] }
 0x150   :  { %v3855_v30 = vld [vmem:[%s4274_s12 + $0x30] sm:$0xff]  ;;  %1233 = vmatpush.msra.mxu2 %v382_v29  ;;  %1194 = vmatpush.msra.mxu0 %v250_v31  ;;  %v198_v27 = vld [vmem:[#allocation2 + $0x38] sm:$0xff] }
 0x151   :  { %1169 = vmatmul.f32.vlgmr.msrb.gmra.mxu2 %v3855_v30  ;;  %1188 = vmatpush.msrb.mxu3 %v641_v59  ;;  %v262_v28 = vld [vmem:[#allocation2 + $0x238] sm:$0xff] }
 0x152   :  { %1189 = vmatmul.f32.vlgmr.msrb.gmra.mxu3 %v3867_v2  ;;  %1214 = vmatpush.msra.mxu1 %v314_v32  ;;  %v326_v29 = vld [vmem:[#allocation2 + $0x438] sm:$0xff] }
 0x153   :  { %1234 = vmatpush.msra.mxu2 %v378_v0  ;;  %1253 = vmatpush.msra.mxu3 %v446_v1  ;;  %v394_v59 = vld [vmem:[#allocation2 + $0x658] sm:$0xff] }
 0x154   :  { %1149 = vmatmul.f32.vlgmr.msrb.gmra.mxu1 %v3873_v38  ;;  %1195 = vmatpush.msra.mxu0 %v246_v34  ;;  %v194_v31 = vld [vmem:[#allocation2 + $0x18] sm:$0xff] }
 0x155   :  { %1215 = vmatpush.msra.mxu1 %v310_v35  ;;  %1235 = vmatpush.msra.mxu2 %v374_v36  ;;  %v258_v32 = vld [vmem:[#allocation2 + $0x218] sm:$0xff] }
 0x156   :  { %1254 = vmatpush.msra.mxu3 %v442_v37  ;;  %1196 = vmatpush.msra.mxu0 %v242_v39  ;;  %v322_v0 = vld [vmem:[#allocation2 + $0x418] sm:$0xff] }
 0x157   :  { %1216 = vmatpush.msra.mxu1 %v306_v40  ;;  %1236 = vmatpush.msra.mxu2 %v370_v41  ;;  %v390_v1 = vld [vmem:[#allocation2 + $0x638] sm:$0xff] }
 0x158   :  { %1255 = vmatpush.msra.mxu3 %v438_v42  ;;  %1197 = vmatpush.msra.mxu0 %v238_v15  ;;  %v510_v34 = vld [vmem:[#allocation2 + $0x9f8] sm:$0xff] }
 0x159   :  { %1217 = vmatpush.msra.mxu1 %v302_v43  ;;  %1237 = vmatpush.msra.mxu2 %v366_v44  ;;  %v574_v35 = vld [vmem:[#allocation2 + $0xbf8] sm:$0xff] }
 0x15a   :  { %1256 = vmatpush.msra.mxu3 %v434_v45  ;;  %1198 = vmatpush.msra.mxu0 %v234_v20  ;;  %v638_v36 = vld [vmem:[#allocation2 + $0xdf8] sm:$0xff] }
 0x15b   :  { %1218 = vmatpush.msra.mxu1 %v298_v21  ;;  %1238 = vmatpush.msra.mxu2 %v362_v46  ;;  %v386_v37 = vld [vmem:[#allocation2 + $0x618] sm:$0xff] }
 0x15c   :  { %1257 = vmatpush.msra.mxu3 %v430_v47  ;;  %1199 = vmatpush.msra.mxu0 %v230_v48  ;;  %v506_v39 = vld [vmem:[#allocation2 + $0x9d8] sm:$0xff] }
 0x15d   :  { %1219 = vmatpush.msra.mxu1 %v294_v49  ;;  %1239 = vmatpush.msra.mxu2 %v358_v26  ;;  %v570_v40 = vld [vmem:[#allocation2 + $0xbd8] sm:$0xff] }
 0x15e   :  { %1258 = vmatpush.msra.mxu3 %v426_v50  ;;  %1200 = vmatpush.msra.mxu0 %v226_v51  ;;  %v634_v41 = vld [vmem:[#allocation2 + $0xdd8] sm:$0xff] }
 0x15f   :  { %1220 = vmatpush.msra.mxu1 %v290_v52  ;;  %1240 = vmatpush.msra.mxu2 %v354_v53  ;;  %v702_v42 = vld [vmem:[#allocation2 + $0xff8] sm:$0xff]  ;;  %v3876_v53 = vpop.f32.mrf.mxu0 }
 0x160   :  { %1259 = vmatpush.msra.mxu3 %v422_v54  ;;  %1201 = vmatpush.msra.mxu0 %v222_v55  ;;  %v502_v15 = vld [vmem:[#allocation2 + $0x9b8] sm:$0xff] }
 0x161   :  { %1221 = vmatpush.msra.mxu1 %v286_v56  ;;  %1241 = vmatpush.msra.mxu2 %v350_v57  ;;  %v566_v43 = vld [vmem:[#allocation2 + $0xbb8] sm:$0xff] }
 0x162   :  { %1260 = vmatpush.msra.mxu3 %v418_v58  ;;  %1202 = vmatpush.msra.mxu0 %v218_v60  ;;  %v630_v44 = vld [vmem:[#allocation2 + $0xdb8] sm:$0xff] }
 0x163   :  { %1222 = vmatpush.msra.mxu1 %v282_v61  ;;  %1242 = vmatpush.msra.mxu2 %v346_v62  ;;  %v698_v45 = vld [vmem:[#allocation2 + $0xfd8] sm:$0xff] }
 0x164   :  { %1261 = vmatpush.msra.mxu3 %v414_v63  ;;  %1203 = vmatpush.msra.mxu0 %v214_v3  ;;  %v498_v20 = vld [vmem:[#allocation2 + $0x998] sm:$0xff]  ;;  %v3878_v63 = vpop.f32.mrf.mxu1 }
 0x165   :  { %1223 = vmatpush.msra.mxu1 %v278_v4  ;;  %1243 = vmatpush.msra.mxu2 %v342_v5  ;;  %v562_v21 = vld [vmem:[#allocation2 + $0xb98] sm:$0xff] }
 0x166   :  { %1262 = vmatpush.msra.mxu3 %v410_v6  ;;  %1204 = vmatpush.msra.mxu0 %v210_v8  ;;  %v626_v46 = vld [vmem:[#allocation2 + $0xd98] sm:$0xff] }
 0x167   :  { %1224 = vmatpush.msra.mxu1 %v274_v9  ;;  %1244 = vmatpush.msra.mxu2 %v338_v10  ;;  %v694_v47 = vld [vmem:[#allocation2 + $0xfb8] sm:$0xff] }
 0x168   :  { %1263 = vmatpush.msra.mxu3 %v406_v12  ;;  %1205 = vmatpush.msra.mxu0 %v206_v14  ;;  %v494_v48 = vld [vmem:[#allocation2 + $0x978] sm:$0xff]  ;;  %v3880_v14 = vpop.f32.mrf.mxu2 }
 0x169   :  { %1225 = vmatpush.msra.mxu1 %v270_v16  ;;  %1245 = vmatpush.msra.mxu2 %v334_v17  ;;  %v558_v49 = vld [vmem:[#allocation2 + $0xb78] sm:$0xff] }
 0x16a   :  { %1264 = vmatpush.msra.mxu3 %v402_v18  ;;  %1206 = vmatpush.msra.mxu0 %v202_v22  ;;  %v622_v26 = vld [vmem:[#allocation2 + $0xd78] sm:$0xff] }
 0x16b   :  { %1226 = vmatpush.msra.mxu1 %v266_v23  ;;  %1246 = vmatpush.msra.mxu2 %v330_v24  ;;  %v690_v50 = vld [vmem:[#allocation2 + $0xf98] sm:$0xff]  ;;  %v3882_v23 = vpop.f32.mrf.mxu0 }
 0x16c   :  { %1265 = vmatpush.msra.mxu3 %v398_v25  ;;  %1207 = vmatpush.msra.mxu0 %v198_v27  ;;  %v490_v51 = vld [vmem:[#allocation2 + $0x958] sm:$0xff] }
 0x16d   :  { %1227 = vmatpush.msra.mxu1 %v262_v28  ;;  %1247 = vmatpush.msra.mxu2 %v326_v29  ;;  %v554_v52 = vld [vmem:[#allocation2 + $0xb58] sm:$0xff]  ;;  %v3884_v29 = vpop.f32.mrf.mxu3 }
 0x16e   :  { %1266 = vmatpush.msra.mxu3 %v394_v59  ;;  %1208 = vmatpush.msra.mxu0 %v194_v31  ;;  %v618_v54 = vld [vmem:[#allocation2 + $0xd58] sm:$0xff] }
 0x16f   :  { %1228 = vmatpush.msra.mxu1 %v258_v32  ;;  %1248 = vmatpush.msra.mxu2 %v322_v0  ;;  %v686_v55 = vld [vmem:[#allocation2 + $0xf78] sm:$0xff]  ;;  %v3886_v0 = vld [vmem:[#allocation4] sm:$0xf] }
 0x170   :  { %1267 = vmatpush.msra.mxu3 %v390_v1  ;;  %1273 = vmatpush.msrb.mxu0 %v510_v34  ;;  %v486_v56 = vld [vmem:[#allocation2 + $0x938] sm:$0xff]  ;;  %v3888_v1 = vpop.f32.mrf.mxu1 }
 0x171   :  { %1293 = vmatpush.msrb.mxu1 %v574_v35  ;;  %1313 = vmatpush.msrb.mxu2 %v638_v36  ;;  %v550_v57 = vld [vmem:[#allocation2 + $0xb38] sm:$0xff] }
 0x172   :  { %1268 = vmatpush.msra.mxu3 %v386_v37  ;;  %1274 = vmatpush.msrb.mxu0 %v506_v39  ;;  %v614_v58 = vld [vmem:[#allocation2 + $0xd38] sm:$0xff]  ;;  %v705_v39 = vperm.slane %v3886_v0, 0 }
 0x173   :  { %1294 = vmatpush.msrb.mxu1 %v570_v40  ;;  %1314 = vmatpush.msrb.mxu2 %v634_v41  ;;  %v682_v60 = vld [vmem:[#allocation2 + $0xf58] sm:$0xff] }
 0x174   :  { %1333 = vmatpush.msrb.mxu3 %v702_v42  ;;  %1275 = vmatpush.msrb.mxu0 %v502_v15  ;;  %v482_v61 = vld [vmem:[#allocation2 + $0x918] sm:$0xff]  ;;  %v706_v42 = vperm.slane %v3886_v0, 1  ;;  %v3893_v15 = vpop.f32.mrf.mxu2 }
 0x175   :  { %1295 = vmatpush.msrb.mxu1 %v566_v43  ;;  %1315 = vmatpush.msrb.mxu2 %v630_v44  ;;  %v546_v62 = vld [vmem:[#allocation2 + $0xb18] sm:$0xff]  ;;  %v890_v44 = vpop.f32.mrf.mxu0 }
 0x176   :  { %1334 = vmatpush.msrb.mxu3 %v698_v45  ;;  %1276 = vmatpush.msrb.mxu0 %v498_v20  ;;  %v610_v3 = vld [vmem:[#allocation2 + $0xd18] sm:$0xff] }
 0x177   :  { %1296 = vmatpush.msrb.mxu1 %v562_v21  ;;  %1316 = vmatpush.msrb.mxu2 %v626_v46  ;;  %v678_v4 = vld [vmem:[#allocation2 + $0xf38] sm:$0xff]  ;;  %v731_v46 = vadd.f32 %v3876_v53, %v705_v39 }
 0x178   :  { %1335 = vmatpush.msrb.mxu3 %v694_v47  ;;  %1277 = vmatpush.msrb.mxu0 %v494_v48  ;;  %v478_v5 = vld [vmem:[#allocation2 + $0x8f8] sm:$0xff]  ;;  %v891_v48 = vadd.f32 %v890_v44, %v706_v42 }
 0x179   :  { %1297 = vmatpush.msrb.mxu1 %v558_v49  ;;  %1317 = vmatpush.msrb.mxu2 %v622_v26  ;;  %v542_v6 = vld [vmem:[#allocation2 + $0xaf8] sm:$0xff] }
 0x17a   :  { %1336 = vmatpush.msrb.mxu3 %v690_v50  ;;  %1278 = vmatpush.msrb.mxu0 %v490_v51  ;;  %v606_v8 = vld [vmem:[#allocation2 + $0xcf8] sm:$0xff]  ;;  %v910_v50 = vpop.f32.mrf.mxu1 }
 0x17b   :  { %1298 = vmatpush.msrb.mxu1 %v554_v52  ;;  %1318 = vmatpush.msrb.mxu2 %v618_v54  ;;  %v674_v9 = vld [vmem:[#allocation2 + $0xf18] sm:$0xff]  ;;  %v911_v54 = vadd.f32 %v910_v50, %v891_v48  ;;  %v1369_v50 = vld [vmem:[#allocation6 + $0x20] sm:$0xff] }
 0x17c   :  { %1337 = vmatpush.msrb.mxu3 %v686_v55  ;;  %1279 = vmatpush.msrb.mxu0 %v486_v56  ;;  %v474_v10 = vld [vmem:[#allocation2 + $0x8d8] sm:$0xff]  ;;  %v1393_v55 = vld [vmem:[#allocation6 + $0xe0] sm:$0xff] }
 0x17d   :  { %1299 = vmatpush.msrb.mxu1 %v550_v57  ;;  %1319 = vmatpush.msrb.mxu2 %v614_v58  ;;  %v538_v12 = vld [vmem:[#allocation2 + $0xad8] sm:$0xff]  ;;  %v1425_v56 = vld [vmem:[#allocation6 + $0x1e0] sm:$0xff]  ;;  %v930_v57 = vpop.f32.mrf.mxu2 }
 0x17e   :  { %1338 = vmatpush.msrb.mxu3 %v682_v60  ;;  %1280 = vmatpush.msrb.mxu0 %v482_v61  ;;  %v602_v16 = vld [vmem:[#allocation2 + $0xcd8] sm:$0xff] }
 0x17f   :  { %1300 = vmatpush.msrb.mxu1 %v546_v62  ;;  %1320 = vmatpush.msrb.mxu2 %v610_v3  ;;  %v670_v17 = vld [vmem:[#allocation2 + $0xef8] sm:$0xff]  ;;  %v1457_v3 = vld [vmem:[#allocation6 + $0x2e0] sm:$0xff] }
 0x180   :  { %1339 = vmatpush.msrb.mxu3 %v678_v4  ;;  %1281 = vmatpush.msrb.mxu0 %v478_v5  ;;  %v470_v18 = vld [vmem:[#allocation2 + $0x8b8] sm:$0xff]  ;;  %v1421_v4 = vld [vmem:[#allocation6 + $0x1c0] sm:$0xff] }
 0x181   :  { %1301 = vmatpush.msrb.mxu1 %v542_v6  ;;  %1321 = vmatpush.msrb.mxu2 %v606_v8  ;;  %v534_v22 = vld [vmem:[#allocation2 + $0xab8] sm:$0xff] }
 0x182   :  { %1340 = vmatpush.msrb.mxu3 %v674_v9  ;;  %1282 = vmatpush.msrb.mxu0 %v474_v10  ;;  %v598_v24 = vld [vmem:[#allocation2 + $0xcb8] sm:$0xff]  ;;  %v1453_v10 = vld [vmem:[#allocation6 + $0x2c0] sm:$0xff] }
 0x183   :  { %1302 = vmatpush.msrb.mxu1 %v538_v12  ;;  %v666_v25 = vld [vmem:[#allocation2 + $0xed8] sm:$0xff]  ;;  %1322 = vmatpush.msrb.mxu2 %v602_v16  ;;  %v970_v12 = vpop.f32.mrf.mxu0  ;;  %v1417_v16 = vld [vmem:[#allocation6 + $0x1a0] sm:$0xff] }
 0x184   :  { %1341 = vmatpush.msrb.mxu3 %v670_v17  ;;  %v466_v27 = vld [vmem:[#allocation2 + $0x898] sm:$0xff]  ;;  %1283 = vmatpush.msrb.mxu0 %v470_v18 }
 0x185   :  { %v530_v28 = vld [vmem:[#allocation2 + $0xa98] sm:$0xff]  ;;  %1303 = vmatpush.msrb.mxu1 %v534_v22  ;;  %1323 = vmatpush.msrb.mxu2 %v598_v24 }
 0x186   :  { %v594_v59 = vld [vmem:[#allocation2 + $0xc98] sm:$0xff]  ;;  %1342 = vmatpush.msrb.mxu3 %v666_v25  ;;  %1284 = vmatpush.msrb.mxu0 %v466_v27  ;;  %v1449_v25 = vld [vmem:[#allocation6 + $0x2a0] sm:$0xff]  ;;  %v990_v27 = vpop.f32.mrf.mxu1 }
 0x187   :  { %v662_v31 = vld [vmem:[#allocation2 + $0xeb8] sm:$0xff]  ;;  %1304 = vmatpush.msrb.mxu1 %v530_v28  ;;  %1324 = vmatpush.msrb.mxu2 %v594_v59  ;;  %v1381_v28 = vld [vmem:[#allocation6 + $0x80] sm:$0xff] }
 0x188   :  { %v462_v32 = vld [vmem:[#allocation2 + $0x878] sm:$0xff]  ;;  %1343 = vmatpush.msrb.mxu3 %v662_v31  ;;  %1249 = vmatmul.f32.vlgmr.msra.gmra.mxu2 %v3831_v7 }
 0x189   :  { %v526_v34 = vld [vmem:[#allocation2 + $0xa78] sm:$0xff]  ;;  %1285 = vmatpush.msrb.mxu0 %v462_v32  ;;  %1269 = vmatmul.f32.vlgmr.msra.gmra.mxu3 %v3843_v13  ;;  %v3903_v13 = vpop.f32.mrf.mxu3 }
 0x18a   :  { %v590_v35 = vld [vmem:[#allocation2 + $0xc78] sm:$0xff]  ;;  %1305 = vmatpush.msrb.mxu1 %v526_v34  ;;  %1209 = vmatmul.f32.vlgmr.msra.gmra.mxu0 %v3837_v11 }
 0x18b   :  { %v658_v36 = vld [vmem:[#allocation2 + $0xe98] sm:$0xff]  ;;  %1325 = vmatpush.msrb.mxu2 %v590_v35  ;;  %1229 = vmatmul.f32.vlgmr.msra.gmra.mxu1 %v3849_v19  ;;  %v751_v19 = vadd.f32 %v3878_v63, %v731_v46  ;;  %v931_v63 = vadd.f32 %v930_v57, %v911_v54  ;;  %v1405_v46 = vld [vmem:[#allocation6 + $0x140] sm:$0xff] }
 0x18c   :  { %v458_v37 = vld [vmem:[#allocation2 + $0x858] sm:$0xff]  ;;  %1344 = vmatpush.msrb.mxu3 %v658_v36  ;;  %v1010_v36 = vpop.f32.mrf.mxu2  ;;  %v1397_v57 = vld [vmem:[#allocation6 + $0x100] sm:$0xff] }
 0x18d   :  { %v522_v40 = vld [vmem:[#allocation2 + $0xa58] sm:$0xff]  ;;  %1286 = vmatpush.msrb.mxu0 %v458_v37  ;;  %v771_v62 = vadd.f32 %v3880_v14, %v751_v19  ;;  %v1385_v14 = vld [vmem:[#allocation6 + $0xa0] sm:$0xff] }
 0x18e   :  { %v586_v41 = vld [vmem:[#allocation2 + $0xc58] sm:$0xff]  ;;  %1306 = vmatpush.msrb.mxu1 %v522_v40  ;;  %v1377_v37 = vld [vmem:[#allocation6 + $0x60] sm:$0xff] }
 0x18f   :  { %v654_v43 = vld [vmem:[#allocation2 + $0xe78] sm:$0xff]  ;;  %1326 = vmatpush.msrb.mxu2 %v586_v41  ;;  %v1409_v40 = vld [vmem:[#allocation6 + $0x160] sm:$0xff] }
 0x190   :  { %v454_v7 = vld [vmem:[#allocation2 + $0x838] sm:$0xff]  ;;  %1345 = vmatpush.msrb.mxu3 %v654_v43 }
 0x191   :  { %v518_v45 = vld [vmem:[#allocation2 + $0xa38] sm:$0xff]  ;;  %1287 = vmatpush.msrb.mxu0 %v454_v7  ;;  %v950_v5 = vpop.f32.mrf.mxu3 }
 0x192   :  { %v582_v20 = vld [vmem:[#allocation2 + $0xc38] sm:$0xff]  ;;  %1307 = vmatpush.msrb.mxu1 %v518_v45  ;;  %v951_v9 = vadd.f32 %v950_v5, %v931_v63 }
 0x193   :  { %v650_v21 = vld [vmem:[#allocation2 + $0xe58] sm:$0xff]  ;;  %1327 = vmatpush.msrb.mxu2 %v582_v20 }
 0x194   :  { %v450_v47 = vld [vmem:[#allocation2 + $0x818] sm:$0xff]  ;;  %1346 = vmatpush.msrb.mxu3 %v650_v21  ;;  %v971_v24 = vadd.f32 %v970_v12, %v951_v9  ;;  %v1373_v21 = vld [vmem:[#allocation6 + $0x40] sm:$0xff]  ;;  %v1458_v9 = vld [vmem:[#allocation6 + $0x2e8] sm:$0xff] }
 0x195   :  { %v514_v11 = vld [vmem:[#allocation2 + $0xa18] sm:$0xff]  ;;  %1288 = vmatpush.msrb.mxu0 %v450_v47 }
 0x196   :  { %v578_v49 = vld [vmem:[#allocation2 + $0xc18] sm:$0xff]  ;;  %1308 = vmatpush.msrb.mxu1 %v514_v11  ;;  %1289 = vmatmul.f32.vlgmr.msrb.gmra.mxu0 %v3861_v33  ;;  %v991_v35 = vadd.f32 %v990_v27, %v971_v24  ;;  %v1414_v27 = vld [vmem:[#allocation6 + $0x188] sm:$0xff] }
 0x197   :  { %v646_v26 = vld [vmem:[#allocation2 + $0xe38] sm:$0xff]  ;;  %1328 = vmatpush.msrb.mxu2 %v578_v49  ;;  %1309 = vmatmul.f32.vlgmr.msrb.gmra.mxu1 %v3873_v38 }
 0x198   :  { %v1395_v51 = vld [vmem:[#allocation6 + $0xf0] sm:$0xff]  ;;  %1347 = vmatpush.msrb.mxu3 %v646_v26  ;;  %1329 = vmatmul.f32.vlgmr.msrb.gmra.mxu2 %v3855_v30  ;;  %v1389_v30 = vld [vmem:[#allocation6 + $0xc0] sm:$0xff]  ;;  %v1011_v45 = vadd.f32 %v1010_v36, %v991_v35  ;;  %v1392_v5 = vld [vmem:[#allocation6 + $0xd8] sm:$0xff]  ;;  %v1050_v36 = vpop.f32.mrf.mxu0 }
 0x199   :  { %v1427_v52 = vld [vmem:[#allocation6 + $0x1f0] sm:$0xff]  ;;  %1499 = vmatpush.msra.mxu0 %v1395_v51  ;;  %v1030_v20 = vpop.f32.mrf.mxu3  ;;  %v1401_v51 = vld [vmem:[#allocation6 + $0x120] sm:$0xff]  ;;  %v1420_v12 = vld [vmem:[#allocation6 + $0x1b8] sm:$0xff] }
 0x19a   :  { %v642_v53 = vld [vmem:[#allocation2 + $0xe18] sm:$0xff]  ;;  %1519 = vmatpush.msra.mxu1 %v1427_v52  ;;  %v1031_v26 = vadd.f32 %v1030_v20, %v1011_v45  ;;  %v1378_v35 = vld [vmem:[#allocation6 + $0x68] sm:$0xff] }
 0x19b   :  { %1348 = vmatpush.msrb.mxu3 %v642_v53  ;;  %v1459_v58 = vld [vmem:[#allocation6 + $0x2f0] sm:$0xff]  ;;  %1500 = vmatpush.msra.mxu0 %v1393_v55  ;;  %v1452_v24 = vld [vmem:[#allocation6 + $0x2b8] sm:$0xff]  ;;  %v1406_v20 = vld [vmem:[#allocation6 + $0x148] sm:$0xff] }
 0x19c   :  { %1349 = vmatmul.f32.vlgmr.msrb.gmra.mxu3 %v3867_v2  ;;  %v1391_v60 = vld [vmem:[#allocation6 + $0xd0] sm:$0xff]  ;;  %1520 = vmatpush.msra.mxu1 %v1425_v56  ;;  %v791_v2 = vadd.f32 %v3884_v29, %v771_v62  ;;  %v1413_v29 = vld [vmem:[#allocation6 + $0x180] sm:$0xff]  ;;  %v1358_v55 = vmul.f32 0.2, %v1031_v26  ;;  %vm1354_vm1 = vcmp.gt.f32.partialorder %v1031_v26, 0.0 }
 0x19d   :  { %v1423_v61 = vld [vmem:[#allocation6 + $0x1d0] sm:$0xff]  ;;  %1539 = vmatpush.msra.mxu2 %v1459_v58  ;;  %1501 = vmatpush.msra.mxu0 %v1391_v60  ;;  %v1433_v56 = vld [vmem:[#allocation6 + $0x220] sm:$0xff]  ;;  %v1396_v58 = vld [vmem:[#allocation6 + $0xf8] sm:$0xff] }
 0x19e   :  { %1521 = vmatpush.msra.mxu1 %v1423_v61  ;;  %v1455_v6 = vld [vmem:[#allocation6 + $0x2d0] sm:$0xff]  ;;  %v811_v22 = vadd.f32 %v3882_v23, %v791_v2  ;;  %v1445_v23 = vld [vmem:[#allocation6 + $0x280] sm:$0xff]  ;;  %v1428_v60 = vld [vmem:[#allocation6 + $0x1f8] sm:$0xff]  ;;  %v3918_v62 = vsel %vm1354_vm1, %v1031_v26, %v1358_v55 }
 0x19f   :  { %v1387_v33 = vld [vmem:[#allocation6 + $0xb0] sm:$0xff]  ;;  %1540 = vmatpush.msra.mxu2 %v1457_v3  ;;  %1502 = vmatpush.msra.mxu0 %v1389_v30  ;;  %v1394_v3 = vld [vmem:[#allocation6 + $0xe8] sm:$0xff]  ;;  %v1404_v26 = vld [vmem:[#allocation6 + $0x138] sm:$0xff] }
 0x1a0   :  { %v1419_v8 = vld [vmem:[#allocation6 + $0x1b0] sm:$0xff]  ;;  %1522 = vmatpush.msra.mxu1 %v1421_v4  ;;  %v831_v34 = vadd.f32 %v3888_v1, %v811_v22  ;;  %v1441_v1 = vld [vmem:[#allocation6 + $0x260] sm:$0xff]  ;;  %v1426_v30 = vld [vmem:[#allocation6 + $0x1e8] sm:$0xff] }
 0x1a1   :  { %1541 = vmatpush.msra.mxu2 %v1455_v6  ;;  %1503 = vmatpush.msra.mxu0 %v1387_v33  ;;  %v1451_v38 = vld [vmem:[#allocation6 + $0x2b0] sm:$0xff]  ;;  %v1429_v4 = vld [vmem:[#allocation6 + $0x200] sm:$0xff]  ;;  %v1424_v6 = vld [vmem:[#allocation6 + $0x1d8] sm:$0xff] }
 0x1a2   :  { %1523 = vmatpush.msra.mxu1 %v1419_v8  ;;  %v1383_v17 = vld [vmem:[#allocation6 + $0x90] sm:$0xff]  ;;  %v851_v7 = vadd.f32 %v3893_v15, %v831_v34  ;;  %v1437_v15 = vld [vmem:[#allocation6 + $0x240] sm:$0xff]  ;;  %v1460_v33 = vld [vmem:[#allocation6 + $0x2f8] sm:$0xff] }
 0x1a3   :  { %v1415_v18 = vld [vmem:[#allocation6 + $0x190] sm:$0xff]  ;;  %1542 = vmatpush.msra.mxu2 %v1453_v10  ;;  %1504 = vmatpush.msra.mxu0 %v1385_v14  ;;  %v1390_v8 = vld [vmem:[#allocation6 + $0xc8] sm:$0xff]  ;;  %v1388_v10 = vld [vmem:[#allocation6 + $0xb8] sm:$0xff] }
 0x1a4   :  { %1524 = vmatpush.msra.mxu1 %v1417_v16  ;;  %v1447_v59 = vld [vmem:[#allocation6 + $0x290] sm:$0xff]  ;;  %v871_v49 = vadd.f32 %v3903_v13, %v851_v7  ;;  %v1365_v13 = vld [vmem:[#allocation6] sm:$0xff]  ;;  %v1422_v2 = vld [vmem:[#allocation6 + $0x1c8] sm:$0xff] }
 0x1a5   :  { %1543 = vmatpush.msra.mxu2 %v1451_v38  ;;  %1505 = vmatpush.msra.mxu0 %v1383_v17  ;;  %v1379_v31 = vld [vmem:[#allocation6 + $0x70] sm:$0xff]  ;;  %v1456_v14 = vld [vmem:[#allocation6 + $0x2d8] sm:$0xff]  ;;  %v1386_v16 = vld [vmem:[#allocation6 + $0xa8] sm:$0xff] }
 0x1a6   :  { %1525 = vmatpush.msra.mxu1 %v1415_v18  ;;  %v1411_v32 = vld [vmem:[#allocation6 + $0x170] sm:$0xff]  ;;  %v1357_v54 = vmul.f32 0.2, %v871_v49  ;;  %vm1353_vm0 = vcmp.gt.f32.partialorder %v871_v49, 0.0  ;;  %v1418_v38 = vld [vmem:[#allocation6 + $0x1a8] sm:$0xff]  ;;  %v1384_v18 = vld [vmem:[#allocation6 + $0x98] sm:$0xff] }
 0x1a7   :  { %1544 = vmatpush.msra.mxu2 %v1449_v25  ;;  %1506 = vmatpush.msra.mxu0 %v1381_v28  ;;  %v1443_v41 = vld [vmem:[#allocation6 + $0x270] sm:$0xff]  ;;  %v1454_v17 = vld [vmem:[#allocation6 + $0x2c8] sm:$0xff]  ;;  %v1416_v22 = vld [vmem:[#allocation6 + $0x198] sm:$0xff] }
 0x1a8   :  { %1526 = vmatpush.msra.mxu1 %v1413_v29  ;;  %v1375_v43 = vld [vmem:[#allocation6 + $0x50] sm:$0xff]  ;;  %v3916_v61 = vsel %vm1353_vm0, %v871_v49, %v1357_v54  ;;  %v1382_v25 = vld [vmem:[#allocation6 + $0x88] sm:$0xff]  ;;  %v1380_v29 = vld [vmem:[#allocation6 + $0x78] sm:$0xff] }
 0x1a9   :  { %1545 = vmatpush.msra.mxu2 %v1447_v59  ;;  %1507 = vmatpush.msra.mxu0 %v1379_v31  ;;  %v1407_v44 = vld [vmem:[#allocation6 + $0x150] sm:$0xff]  ;;  %v1450_v28 = vld [vmem:[#allocation6 + $0x2a8] sm:$0xff]  ;;  %v1412_v59 = vld [vmem:[#allocation6 + $0x178] sm:$0xff]  ;;  %v707_v31 = vperm.slane %v3886_v0, 2 }
 0x1aa   :  { %1527 = vmatpush.msra.mxu1 %v1411_v32  ;;  %v1439_v47 = vld [vmem:[#allocation6 + $0x250] sm:$0xff]  ;;  %v1448_v32 = vld [vmem:[#allocation6 + $0x298] sm:$0xff]  ;;  %v1438_v55 = vld [vmem:[#allocation6 + $0x248] sm:$0xff] }
 0x1ab   :  { %1546 = vmatpush.msra.mxu2 %v1445_v23  ;;  %1508 = vmatpush.msra.mxu0 %v1377_v37  ;;  %v1371_v11 = vld [vmem:[#allocation6 + $0x30] sm:$0xff]  ;;  %v1410_v23 = vld [vmem:[#allocation6 + $0x168] sm:$0xff]  ;;  %v1444_v7 = vld [vmem:[#allocation6 + $0x278] sm:$0xff] }
 0x1ac   :  { %1528 = vmatpush.msra.mxu1 %v1409_v40  ;;  %v1403_v48 = vld [vmem:[#allocation6 + $0x130] sm:$0xff]  ;;  %v1446_v37 = vld [vmem:[#allocation6 + $0x288] sm:$0xff]  ;;  %v1489_v40 = vld [vmem:[#allocation6 + $0x3e0] sm:$0xff] }
 0x1ad   :  { %1547 = vmatpush.msra.mxu2 %v1443_v41  ;;  %1509 = vmatpush.msra.mxu0 %v1375_v43  ;;  %v1435_v52 = vld [vmem:[#allocation6 + $0x230] sm:$0xff]  ;;  %v1376_v41 = vld [vmem:[#allocation6 + $0x58] sm:$0xff] }
 0x1ae   :  { %1529 = vmatpush.msra.mxu1 %v1407_v44  ;;  %v1367_v53 = vld [vmem:[#allocation6 + $0x10] sm:$0xff]  ;;  %v1408_v43 = vld [vmem:[#allocation6 + $0x158] sm:$0xff]  ;;  %v1051_v44 = vadd.f32 %v1050_v36, %v707_v31 }
 0x1af   :  { %1548 = vmatpush.msra.mxu2 %v1441_v1  ;;  %1510 = vmatpush.msra.mxu0 %v1373_v21  ;;  %v1399_v19 = vld [vmem:[#allocation6 + $0x110] sm:$0xff]  ;;  %v1374_v1 = vld [vmem:[#allocation6 + $0x48] sm:$0xff]  ;;  %v1070_v21 = vpop.f32.mrf.mxu1  ;;  %v1372_v49 = vld [vmem:[#allocation6 + $0x38] sm:$0xff] }
 0x1b0   :  { %1530 = vmatpush.msra.mxu1 %v1405_v46  ;;  %v1431_v63 = vld [vmem:[#allocation6 + $0x210] sm:$0xff]  ;;  %v1071_v46 = vadd.f32 %v1070_v21, %v1051_v44  ;;  %v2782_v36 = vld [vmem:[#allocation2 + $0x380] sm:$0xff] }
 0x1b1   :  { %1549 = vmatpush.msra.mxu2 %v1439_v47  ;;  %1511 = vmatpush.msra.mxu0 %v1371_v11  ;;  %v1491_v34 = vld [vmem:[#allocation6 + $0x3f0] sm:$0xff]  ;;  %v1442_v11 = vld [vmem:[#allocation6 + $0x268] sm:$0xff]  ;;  %v2786_v44 = vld [vmem:[#allocation2 + $0x5c0] sm:$0xff] }
 0x1b2   :  { %1531 = vmatpush.msra.mxu1 %v1403_v48  ;;  %1559 = vmatpush.msra.mxu3 %v1491_v34  ;;  %v1487_v45 = vld [vmem:[#allocation6 + $0x3d0] sm:$0xff]  ;;  %v1485_v48 = vld [vmem:[#allocation6 + $0x3c0] sm:$0xff] }
 0x1b3   :  { %1550 = vmatpush.msra.mxu2 %v1437_v15  ;;  %1512 = vmatpush.msra.mxu0 %v1369_v50  ;;  %v1440_v50 = vld [vmem:[#allocation6 + $0x258] sm:$0xff]  ;;  %v1467_v34 = vld [vmem:[#allocation6 + $0x330] sm:$0xff] }
 0x1b4   :  { %1532 = vmatpush.msra.mxu1 %v1401_v51  ;;  %1560 = vmatpush.msra.mxu3 %v1489_v40  ;;  %v1483_v51 = vld [vmem:[#allocation6 + $0x3b0] sm:$0xff]  ;;  %v2784_v40 = vld [vmem:[#allocation2 + $0x140] sm:$0xff] }
 0x1b5   :  { %1551 = vmatpush.msra.mxu2 %v1435_v52  ;;  %1513 = vmatpush.msra.mxu0 %v1367_v53  ;;  %v1370_v52 = vld [vmem:[#allocation6 + $0x28] sm:$0xff]  ;;  %v2789_v21 = vld [vmem:[#allocation2 + $0x5a0] sm:$0xff] }
 0x1b6   :  { %1533 = vmatpush.msra.mxu1 %v1399_v19  ;;  %1561 = vmatpush.msra.mxu3 %v1487_v45  ;;  %v1402_v53 = vld [vmem:[#allocation6 + $0x128] sm:$0xff]  ;;  %v1110_v19 = vpop.f32.mrf.mxu3  ;;  %v1461_v45 = vld [vmem:[#allocation6 + $0x300] sm:$0xff] }
 0x1b7   :  { %1552 = vmatpush.msra.mxu2 %v1433_v56  ;;  %1514 = vmatpush.msra.mxu0 %v1365_v13  ;;  %v1481_v56 = vld [vmem:[#allocation6 + $0x3a0] sm:$0xff]  ;;  %v1368_v13 = vld [vmem:[#allocation6 + $0x18] sm:$0xff] }
 0x1b8   :  { %1534 = vmatpush.msra.mxu1 %v1397_v57  ;;  %1515 = vmatmul.f32.vlgmr.msra.gmra.mxu0 %v3916_v61  ;;  %v1400_v57 = vld [vmem:[#allocation6 + $0x118] sm:$0xff] }
 0x1b9   :  { %1535 = vmatmul.f32.vlgmr.msra.gmra.mxu1 %v3918_v62  ;;  %1579 = vmatpush.msrb.mxu0 %v1396_v58 }
 0x1ba   :  { %1599 = vmatpush.msrb.mxu1 %v1428_v60  ;;  %1553 = vmatpush.msra.mxu2 %v1431_v63  ;;  %v1436_v60 = vld [vmem:[#allocation6 + $0x238] sm:$0xff]  ;;  %v1479_v63 = vld [vmem:[#allocation6 + $0x390] sm:$0xff] }
 0x1bb   :  { %1580 = vmatpush.msrb.mxu0 %v1394_v3  ;;  %1562 = vmatpush.msra.mxu3 %v1485_v48  ;;  %v1366_v3 = vld [vmem:[#allocation6 + $0x8] sm:$0xff]  ;;  %v2792_v48 = vld [vmem:[#allocation2 + $0xe0] sm:$0xff] }
 0x1bc   :  { %1600 = vmatpush.msrb.mxu1 %v1426_v30  ;;  %1554 = vmatpush.msra.mxu2 %v1429_v4  ;;  %v1398_v30 = vld [vmem:[#allocation6 + $0x108] sm:$0xff] }
 0x1bd   :  { %1581 = vmatpush.msrb.mxu0 %v1392_v5  ;;  %1563 = vmatpush.msra.mxu3 %v1483_v51  ;;  %v1477_v5 = vld [vmem:[#allocation6 + $0x380] sm:$0xff]  ;;  %v1486_v51 = vld [vmem:[#allocation6 + $0x3c8] sm:$0xff] }
 0x1be   :  { %1601 = vmatpush.msrb.mxu1 %v1424_v6  ;;  %1619 = vmatpush.msrb.mxu2 %v1460_v33  ;;  %v1434_v33 = vld [vmem:[#allocation6 + $0x228] sm:$0xff] }
 0x1bf   :  { %1582 = vmatpush.msrb.mxu0 %v1390_v8  ;;  %1564 = vmatpush.msra.mxu3 %v1481_v56  ;;  %v2800_v56 = vld [vmem:[#allocation2 + $0x540] sm:$0xff] }
 0x1c0   :  { %1602 = vmatpush.msrb.mxu1 %v1422_v2  ;;  %1620 = vmatpush.msrb.mxu2 %v1458_v9  ;;  %v1475_v9 = vld [vmem:[#allocation6 + $0x370] sm:$0xff] }
 0x1c1   :  { %1583 = vmatpush.msrb.mxu0 %v1388_v10  ;;  %1565 = vmatpush.msra.mxu3 %v1479_v63  ;;  %v1432_v10 = vld [vmem:[#allocation6 + $0x218] sm:$0xff] }
 0x1c2   :  { %1603 = vmatpush.msrb.mxu1 %v1420_v12  ;;  %1621 = vmatpush.msrb.mxu2 %v1456_v14  ;;  %v2774_v12 = vld [vmem:[#allocation2 + $0x1e0] sm:$0xff] }
 0x1c3   :  { %1584 = vmatpush.msrb.mxu0 %v1386_v16  ;;  %1566 = vmatpush.msra.mxu3 %v1477_v5  ;;  %v1473_v16 = vld [vmem:[#allocation6 + $0x360] sm:$0xff] }
 0x1c4   :  { %1604 = vmatpush.msrb.mxu1 %v1418_v38  ;;  %1622 = vmatpush.msrb.mxu2 %v1454_v17  ;;  %v1430_v17 = vld [vmem:[#allocation6 + $0x208] sm:$0xff]  ;;  %v2804_v63 = vld [vmem:[#allocation2 + $0x60] sm:$0xff] }
 0x1c5   :  { %1585 = vmatpush.msrb.mxu0 %v1384_v18  ;;  %1567 = vmatpush.msra.mxu3 %v1475_v9  ;;  %v2775_v18 = vld [vmem:[#allocation2 + $0x3e0] sm:$0xff] }
 0x1c6   :  { %1605 = vmatpush.msrb.mxu1 %v1416_v22  ;;  %1623 = vmatpush.msrb.mxu2 %v1452_v24  ;;  %v1090_v47 = vpop.f32.mrf.mxu2  ;;  %v2776_v22 = vld [vmem:[#allocation2 + $0x1c0] sm:$0xff] }
 0x1c7   :  { %1586 = vmatpush.msrb.mxu0 %v1382_v25  ;;  %v1091_v15 = vadd.f32 %v1090_v47, %v1071_v46  ;;  %v1471_v25 = vld [vmem:[#allocation6 + $0x350] sm:$0xff]  ;;  %1568 = vmatpush.msra.mxu3 %v1473_v16  ;;  %v2790_v46 = vld [vmem:[#allocation2 + $0x100] sm:$0xff] }
 0x1c8   :  { %1606 = vmatpush.msrb.mxu1 %v1414_v27  ;;  %1624 = vmatpush.msrb.mxu2 %v1450_v28  ;;  %v1469_v28 = vld [vmem:[#allocation6 + $0x340] sm:$0xff]  ;;  %v1476_v9 = vld [vmem:[#allocation6 + $0x378] sm:$0xff] }
 0x1c9   :  { %1587 = vmatpush.msrb.mxu0 %v1380_v29  ;;  %v1111_v54 = vadd.f32 %v1110_v19, %v1091_v15  ;;  %1569 = vmatpush.msra.mxu3 %v1471_v25  ;;  %v2779_v29 = vld [vmem:[#allocation2 + $0x3a0] sm:$0xff] }
 0x1ca   :  { %1607 = vmatpush.msrb.mxu1 %v1412_v59  ;;  %1625 = vmatpush.msrb.mxu2 %v1448_v32  ;;  %v1130_v58 = vpop.f32.mrf.mxu0  ;;  %v2780_v59 = vld [vmem:[#allocation2 + $0x180] sm:$0xff] }
 0x1cb   :  { %1588 = vmatpush.msrb.mxu0 %v1378_v35  ;;  %v1131_v4 = vadd.f32 %v1130_v58, %v1111_v54  ;;  %1570 = vmatpush.msra.mxu3 %v1469_v28  ;;  %v2781_v35 = vld [vmem:[#allocation2 + $0x160] sm:$0xff] }
 0x1cc   :  { %1608 = vmatpush.msrb.mxu1 %v1410_v23  ;;  %1626 = vmatpush.msrb.mxu2 %v1446_v37  ;;  %v1465_v23 = vld [vmem:[#allocation6 + $0x320] sm:$0xff]  ;;  %v1484_v54 = vld [vmem:[#allocation6 + $0x3b8] sm:$0xff] }
 0x1cd   :  { %1589 = vmatpush.msrb.mxu0 %v1376_v41  ;;  %1571 = vmatpush.msra.mxu3 %v1467_v34  ;;  %v2783_v37 = vld [vmem:[#allocation2 + $0x5e0] sm:$0xff]  ;;  %v1463_v41 = vld [vmem:[#allocation6 + $0x310] sm:$0xff] }
 0x1ce   :  { %1609 = vmatpush.msrb.mxu1 %v1408_v43  ;;  %1627 = vmatpush.msrb.mxu2 %v1444_v7  ;;  %v2785_v43 = vld [vmem:[#allocation2 + $0x360] sm:$0xff] }
 0x1cf   :  { %1590 = vmatpush.msrb.mxu0 %v1374_v1  ;;  %1572 = vmatpush.msra.mxu3 %v1465_v23  ;;  %v2787_v7 = vld [vmem:[#allocation2 + $0x120] sm:$0xff] }
 0x1d0   :  { %1610 = vmatpush.msrb.mxu1 %v1406_v20  ;;  %1628 = vmatpush.msrb.mxu2 %v1442_v11  ;;  %v2788_v1 = vld [vmem:[#allocation2 + $0x340] sm:$0xff]  ;;  %v1490_v11 = vld [vmem:[#allocation6 + $0x3e8] sm:$0xff] }
 0x1d1   :  { %1591 = vmatpush.msrb.mxu0 %v1372_v49  ;;  %v1150_v6 = vpop.f32.mrf.mxu1  ;;  %1573 = vmatpush.msra.mxu3 %v1463_v41  ;;  %v1492_v20 = vld [vmem:[#allocation6 + $0x3f8] sm:$0xff] }
 0x1d2   :  { %1611 = vmatpush.msrb.mxu1 %v1404_v26  ;;  %1629 = vmatpush.msrb.mxu2 %v1440_v50  ;;  %v1151_v8 = vadd.f32 %v1150_v6, %v1131_v4  ;;  %v2791_v47 = vld [vmem:[#allocation2 + $0x320] sm:$0xff]  ;;  %v1478_v6 = vld [vmem:[#allocation6 + $0x388] sm:$0xff] }
 0x1d3   :  { %1592 = vmatpush.msrb.mxu0 %v1370_v52  ;;  %1574 = vmatpush.msra.mxu3 %v1461_v45  ;;  %v1488_v49 = vld [vmem:[#allocation6 + $0x3d8] sm:$0xff] }
 0x1d4   :  { %1612 = vmatpush.msrb.mxu1 %v1402_v53  ;;  %1630 = vmatpush.msrb.mxu2 %v1438_v55  ;;  %v1170_v2 = vpop.f32.mrf.mxu2  ;;  %v2793_v26 = vld [vmem:[#allocation2 + $0x300] sm:$0xff] }
 0x1d5   :  { %1593 = vmatpush.msrb.mxu0 %v1368_v13  ;;  %v1171_v14 = vadd.f32 %v1170_v2, %v1151_v8  ;;  %v1190_v38 = vpop.f32.mrf.mxu3  ;;  %1639 = vmatpush.msrb.mxu3 %v1492_v20  ;;  %v2794_v15 = vld [vmem:[#allocation2 + $0x580] sm:$0xff] }
 0x1d6   :  { %1613 = vmatpush.msrb.mxu1 %v1400_v57  ;;  %1631 = vmatpush.msrb.mxu2 %v1436_v60  ;;  %v2795_v50 = vld [vmem:[#allocation2 + $0xc0] sm:$0xff]  ;;  %v1482_v57 = vld [vmem:[#allocation6 + $0x3a8] sm:$0xff] }
 0x1d7   :  { %1594 = vmatpush.msrb.mxu0 %v1366_v3  ;;  %v1191_v24 = vadd.f32 %v1190_v38, %v1171_v14  ;;  %1640 = vmatpush.msrb.mxu3 %v1490_v11  ;;  %v2796_v52 = vld [vmem:[#allocation2 + $0x2e0] sm:$0xff] }
 0x1d8   :  { %1614 = vmatpush.msrb.mxu1 %v1398_v30  ;;  %1595 = vmatmul.f32.vlgmr.msrb.gmra.mxu0 %v3916_v61  ;;  %v2777_v61 = vld [vmem:[#allocation2 + $0x3c0] sm:$0xff] }
 0x1d9   :  { %1615 = vmatmul.f32.vlgmr.msrb.gmra.mxu1 %v3918_v62  ;;  %1673 = vmatpush.msra.mxu0 %v2774_v12  ;;  %v2778_v62 = vld [vmem:[#allocation2 + $0x1a0] sm:$0xff]  ;;  %vm1355_vm2 = vcmp.gt.f32.partialorder %v1191_v24, 0.0  ;;  %v1359_v27 = vmul.f32 0.2, %v1191_v24 }
 0x1da   :  { %1632 = vmatpush.msrb.mxu2 %v1434_v33  ;;  %1693 = vmatpush.msra.mxu1 %v2775_v18  ;;  %v2797_v53 = vld [vmem:[#allocation2 + $0x560] sm:$0xff] }
 0x1db   :  { %1674 = vmatpush.msra.mxu0 %v2776_v22  ;;  %v1363_v32 = vsel %vm1355_vm2, %v1191_v24, %v1359_v27  ;;  %v2798_v19 = vld [vmem:[#allocation2 + $0xa0] sm:$0xff]  ;;  %1641 = vmatpush.msrb.mxu3 %v1488_v49  ;;  %v1470_v27 = vld [vmem:[#allocation6 + $0x348] sm:$0xff] }
 0x1dc   :  { %1633 = vmatpush.msrb.mxu2 %v1432_v10  ;;  %1694 = vmatpush.msra.mxu1 %v2777_v61  ;;  %v2799_v55 = vld [vmem:[#allocation2 + $0x2c0] sm:$0xff] }
 0x1dd   :  { %1675 = vmatpush.msra.mxu0 %v2778_v62  ;;  %1555 = vmatmul.f32.vlgmr.msra.gmra.mxu2 %v1363_v32  ;;  %v2801_v13 = vld [vmem:[#allocation2 + $0x80] sm:$0xff] }
 0x1de   :  { %1634 = vmatpush.msrb.mxu2 %v1430_v17  ;;  %1695 = vmatpush.msra.mxu1 %v2779_v29  ;;  %v2802_v58 = vld [vmem:[#allocation2 + $0x2a0] sm:$0xff]  ;;  %v1474_v17 = vld [vmem:[#allocation6 + $0x368] sm:$0xff] }
 0x1df   :  { %1676 = vmatpush.msra.mxu0 %v2780_v59  ;;  %1642 = vmatpush.msrb.mxu3 %v1486_v51  ;;  %v2803_v60 = vld [vmem:[#allocation2 + $0x520] sm:$0xff] }
 0x1e0   :  { %1696 = vmatpush.msra.mxu1 %v2782_v36  ;;  %1713 = vmatpush.msra.mxu2 %v2783_v37  ;;  %v1480_v3 = vld [vmem:[#allocation6 + $0x398] sm:$0xff]  ;;  %v1466_v36 = vld [vmem:[#allocation6 + $0x328] sm:$0xff] }
 0x1e1   :  { %1677 = vmatpush.msra.mxu0 %v2781_v35  ;;  %1643 = vmatpush.msrb.mxu3 %v1484_v54  ;;  %v2805_v30 = vld [vmem:[#allocation2 + $0x280] sm:$0xff] }
 0x1e2   :  { %1697 = vmatpush.msra.mxu1 %v2785_v43  ;;  %1714 = vmatpush.msra.mxu2 %v2786_v44  ;;  %v2806_v4 = vld [vmem:[#allocation2 + $0x500] sm:$0xff] }
 0x1e3   :  { %1678 = vmatpush.msra.mxu0 %v2784_v40  ;;  %v2807_v5 = vld [vmem:[#allocation2 + $0x40] sm:$0xff]  ;;  %1644 = vmatpush.msrb.mxu3 %v1482_v57 }
 0x1e4   :  { %1698 = vmatpush.msra.mxu1 %v2788_v1  ;;  %1715 = vmatpush.msra.mxu2 %v2789_v21  ;;  %v2808_v33 = vld [vmem:[#allocation2 + $0x260] sm:$0xff]  ;;  %v1462_v1 = vld [vmem:[#allocation6 + $0x308] sm:$0xff] }
 0x1e5   :  { %1679 = vmatpush.msra.mxu0 %v2787_v7  ;;  %1635 = vmatmul.f32.vlgmr.msrb.gmra.mxu2 %v1363_v32  ;;  %v2809_v8 = vld [vmem:[#allocation2 + $0x4e0] sm:$0xff] }
 0x1e6   :  { %1699 = vmatpush.msra.mxu1 %v2791_v47  ;;  %1716 = vmatpush.msra.mxu2 %v2794_v15  ;;  %v2810_v2 = vld [vmem:[#allocation2 + $0x20] sm:$0xff] }
 0x1e7   :  { %1680 = vmatpush.msra.mxu0 %v2790_v46  ;;  %1645 = vmatpush.msrb.mxu3 %v1480_v3  ;;  %v3930_v10 = vld [vmem:[%s4275_s25] sm:$0xff] }
 0x1e8   :  { %1700 = vmatpush.msra.mxu1 %v2793_v26  ;;  %1717 = vmatpush.msra.mxu2 %v2797_v53  ;;  %v2811_v12 = vld [vmem:[#allocation2 + $0x240] sm:$0xff] }
 0x1e9   :  { %1681 = vmatpush.msra.mxu0 %v2792_v48  ;;  %v2812_v14 = vld [vmem:[#allocation2 + $0x4c0] sm:$0xff]  ;;  %1646 = vmatpush.msrb.mxu3 %v1478_v6 }
 0x1ea   :  { %1701 = vmatpush.msra.mxu1 %v2796_v52  ;;  %1718 = vmatpush.msra.mxu2 %v2800_v56  ;;  %v2813_v16 = vld [vmem:[#allocation2] sm:$0xff] }
 0x1eb   :  { %1682 = vmatpush.msra.mxu0 %v2795_v50  ;;  %v2814_v38 = vld [vmem:[#allocation2 + $0x9e0] sm:$0xff]  ;;  %1647 = vmatpush.msrb.mxu3 %v1476_v9  ;;  %v708_v50 = vperm.slane %v3886_v0, 3  ;;  %v2547_v0 = vld [vmem:[%s4260_s8 + $0x78] sm:$0xff] }
 0x1ec   :  { %1702 = vmatpush.msra.mxu1 %v2799_v55  ;;  %1719 = vmatpush.msra.mxu2 %v2803_v60  ;;  %v2815_v18 = vld [vmem:[#allocation2 + $0x220] sm:$0xff] }
 0x1ed   :  { %1683 = vmatpush.msra.mxu0 %v2798_v19  ;;  %v2816_v22 = vld [vmem:[#allocation2 + $0x9c0] sm:$0xff]  ;;  %1648 = vmatpush.msrb.mxu3 %v1474_v17 }
 0x1ee   :  { %1703 = vmatpush.msra.mxu1 %v2802_v58  ;;  %1720 = vmatpush.msra.mxu2 %v2806_v4  ;;  %v1472_v24 = vld [vmem:[#allocation6 + $0x358] sm:$0xff] }
 0x1ef   :  { %1684 = vmatpush.msra.mxu0 %v2801_v13  ;;  %v2817_v25 = vld [vmem:[#allocation2 + $0x200] sm:$0xff]  ;;  %1649 = vmatpush.msrb.mxu3 %v1472_v24  ;;  %v2860_v24 = vld [vmem:[#allocation2 + $0x1e8] sm:$0xff] }
 0x1f0   :  { %1704 = vmatpush.msra.mxu1 %v2805_v30  ;;  %1721 = vmatpush.msra.mxu2 %v2809_v8  ;;  %v2818_v61 = vld [vmem:[#allocation2 + $0xbe0] sm:$0xff] }
 0x1f1   :  { %1685 = vmatpush.msra.mxu0 %v2804_v63  ;;  %v2819_v62 = vld [vmem:[#allocation2 + $0x9a0] sm:$0xff]  ;;  %1650 = vmatpush.msrb.mxu3 %v1470_v27 }
 0x1f2   :  { %1705 = vmatpush.msra.mxu1 %v2808_v33  ;;  %1722 = vmatpush.msra.mxu2 %v2812_v14  ;;  %v2820_v28 = vld [vmem:[#allocation2 + $0x4a0] sm:$0xff] }
 0x1f3   :  { %1686 = vmatpush.msra.mxu0 %v2807_v5  ;;  %v2821_v29 = vld [vmem:[#allocation2 + $0xbc0] sm:$0xff] }
 0x1f4   :  { %1706 = vmatpush.msra.mxu1 %v2811_v12  ;;  %1723 = vmatpush.msra.mxu2 %v2820_v28  ;;  %v2822_v59 = vld [vmem:[#allocation2 + $0x980] sm:$0xff]  ;;  %v2863_v28 = vld [vmem:[#allocation2 + $0x1c8] sm:$0xff] }
 0x1f5   :  { %1687 = vmatpush.msra.mxu0 %v2810_v2  ;;  %v1468_v32 = vld [vmem:[#allocation6 + $0x338] sm:$0xff] }
 0x1f6   :  { %1707 = vmatpush.msra.mxu1 %v2815_v18  ;;  %v2823_v34 = vld [vmem:[#allocation2 + $0x480] sm:$0xff]  ;;  %1651 = vmatpush.msrb.mxu3 %v1468_v32 }
 0x1f7   :  { %1688 = vmatpush.msra.mxu0 %v2813_v16  ;;  %1724 = vmatpush.msra.mxu2 %v2823_v34  ;;  %v2824_v35 = vld [vmem:[#allocation2 + $0xba0] sm:$0xff]  ;;  %v3945_v34 = vld [vmem:[%s4275_s25 + $0x8] sm:$0xff] }
 0x1f8   :  { %1689 = vmatmul.f32.vlgmr.msra.gmra.mxu0 %v3930_v10  ;;  %1708 = vmatpush.msra.mxu1 %v2817_v25  ;;  %v2825_v23 = vld [vmem:[#allocation2 + $0x960] sm:$0xff] }
 0x1f9   :  { %1753 = vmatpush.msrb.mxu0 %v2814_v38  ;;  %v2826_v37 = vld [vmem:[#allocation2 + $0x460] sm:$0xff]  ;;  %1652 = vmatpush.msrb.mxu3 %v1466_v36 }
 0x1fa   :  { %1773 = vmatpush.msrb.mxu1 %v2818_v61  ;;  %1725 = vmatpush.msra.mxu2 %v2826_v37  ;;  %v2827_v40 = vld [vmem:[#allocation2 + $0xb80] sm:$0xff] }
 0x1fb   :  { %1754 = vmatpush.msrb.mxu0 %v2816_v22  ;;  %v2828_v41 = vld [vmem:[#allocation2 + $0x940] sm:$0xff]  ;;  %1709 = vmatmul.f32.vlgmr.msra.gmra.mxu1 %v3945_v34 }
 0x1fc   :  { %1774 = vmatpush.msrb.mxu1 %v2821_v29  ;;  %v1464_v43 = vld [vmem:[#allocation6 + $0x318] sm:$0xff] }
 0x1fd   :  { %1755 = vmatpush.msrb.mxu0 %v2819_v62  ;;  %v2829_v44 = vld [vmem:[#allocation2 + $0x440] sm:$0xff]  ;;  %1653 = vmatpush.msrb.mxu3 %v1464_v43  ;;  %v2869_v43 = vld [vmem:[#allocation2 + $0x188] sm:$0xff] }
 0x1fe   :  { %1775 = vmatpush.msrb.mxu1 %v2824_v35  ;;  %1726 = vmatpush.msra.mxu2 %v2829_v44  ;;  %v2830_v7 = vld [vmem:[#allocation2 + $0xb60] sm:$0xff] }
 0x1ff   :  { %1756 = vmatpush.msrb.mxu0 %v2822_v59  ;;  %v2831_v45 = vld [vmem:[#allocation2 + $0x920] sm:$0xff]  ;;  %1654 = vmatpush.msrb.mxu3 %v1462_v1 }
 0x200   :  { %1776 = vmatpush.msrb.mxu1 %v2827_v40  ;;  %v2832_v20 = vld [vmem:[#allocation2 + $0x420] sm:$0xff]  ;;  %v2867_v40 = vld [vmem:[#allocation2 + $0x3e8] sm:$0xff] }
 0x201   :  { %1757 = vmatpush.msrb.mxu0 %v2825_v23  ;;  %1727 = vmatpush.msra.mxu2 %v2832_v20  ;;  %v2833_v21 = vld [vmem:[#allocation2 + $0xb40] sm:$0xff]  ;;  %v2866_v23 = vld [vmem:[#allocation2 + $0x1a8] sm:$0xff] }
 0x202   :  { %1777 = vmatpush.msrb.mxu1 %v2830_v7  ;;  %v2834_v46 = vld [vmem:[#allocation2 + $0x900] sm:$0xff]  ;;  %v2872_v20 = vld [vmem:[#allocation2 + $0x168] sm:$0xff] }
 0x203   :  { %1758 = vmatpush.msrb.mxu0 %v2828_v41  ;;  %v2835_v47 = vld [vmem:[#allocation2 + $0x400] sm:$0xff] }
 0x204   :  { %1778 = vmatpush.msrb.mxu1 %v2833_v21  ;;  %1728 = vmatpush.msra.mxu2 %v2835_v47  ;;  %v2836_v11 = vld [vmem:[#allocation2 + $0xb20] sm:$0xff] }
 0x205   :  { %1759 = vmatpush.msrb.mxu0 %v2831_v45  ;;  %v2837_v48 = vld [vmem:[#allocation2 + $0x8e0] sm:$0xff]  ;;  %v2870_v45 = vld [vmem:[#allocation2 + $0x3c8] sm:$0xff] }
 0x206   :  { %1779 = vmatpush.msrb.mxu1 %v2836_v11  ;;  %v2838_v49 = vld [vmem:[#allocation2 + $0xde0] sm:$0xff]  ;;  %v2875_v11 = vld [vmem:[#allocation2 + $0x148] sm:$0xff] }
 0x207   :  { %1760 = vmatpush.msrb.mxu0 %v2834_v46  ;;  %1793 = vmatpush.msrb.mxu2 %v2838_v49  ;;  %v2839_v26 = vld [vmem:[#allocation2 + $0xb00] sm:$0xff]  ;;  %v1210_v54 = vpop.f32.mrf.mxu0  ;;  %v2873_v46 = vld [vmem:[#allocation2 + $0x3a8] sm:$0xff] }
 0x208   :  { %1780 = vmatpush.msrb.mxu1 %v2839_v26  ;;  %v2840_v15 = vld [vmem:[#allocation2 + $0x8c0] sm:$0xff]  ;;  %v1211_v13 = vadd.f32 %v1210_v54, %v708_v50  ;;  %v1230_v63 = vpop.f32.mrf.mxu1  ;;  %v2876_v49 = vld [vmem:[#allocation2 + $0x388] sm:$0xff] }
 0x209   :  { %1761 = vmatpush.msrb.mxu0 %v2837_v48  ;;  %v2841_v51 = vld [vmem:[#allocation2 + $0xdc0] sm:$0xff] }
 0x20a   :  { %1794 = vmatpush.msrb.mxu2 %v2841_v51  ;;  %v2842_v52 = vld [vmem:[#allocation2 + $0xae0] sm:$0xff]  ;;  %v1231_v30 = vadd.f32 %v1230_v63, %v1211_v13 }
 0x20b   :  { %1762 = vmatpush.msrb.mxu0 %v2840_v15  ;;  %1781 = vmatpush.msrb.mxu1 %v2842_v52  ;;  %v2843_v53 = vld [vmem:[#allocation2 + $0x8a0] sm:$0xff]  ;;  %v1250_v4 = vpop.f32.mrf.mxu2  ;;  %v2878_v15 = vld [vmem:[#allocation2 + $0x128] sm:$0xff] }
 0x20c   :  { %v2844_v19 = vld [vmem:[#allocation2 + $0xda0] sm:$0xff]  ;;  %v1251_v8 = vadd.f32 %v1250_v4, %v1231_v30  ;;  %v1270_v12 = vpop.f32.mrf.mxu3  ;;  %v2880_v52 = vld [vmem:[#allocation2 + $0x368] sm:$0xff] }
 0x20d   :  { %1763 = vmatpush.msrb.mxu0 %v2843_v53  ;;  %1795 = vmatpush.msrb.mxu2 %v2844_v19  ;;  %v2845_v55 = vld [vmem:[#allocation2 + $0xac0] sm:$0xff]  ;;  %v2881_v53 = vld [vmem:[#allocation2 + $0x108] sm:$0xff] }
 0x20e   :  { %1782 = vmatpush.msrb.mxu1 %v2845_v55  ;;  %v2846_v56 = vld [vmem:[#allocation2 + $0x880] sm:$0xff]  ;;  %v1271_v16 = vadd.f32 %v1270_v12, %v1251_v8  ;;  %v2884_v55 = vld [vmem:[#allocation2 + $0x348] sm:$0xff] }
 0x20f   :  { %1764 = vmatpush.msrb.mxu0 %v2846_v56  ;;  %v2847_v57 = vld [vmem:[#allocation2 + $0xd80] sm:$0xff]  ;;  %v2885_v56 = vld [vmem:[#allocation2 + $0xe8] sm:$0xff] }
 0x210   :  { %1796 = vmatpush.msrb.mxu2 %v2847_v57  ;;  %v2848_v58 = vld [vmem:[#allocation2 + $0xaa0] sm:$0xff]  ;;  %v2892_v30 = vld [vmem:[#allocation2 + $0xa8] sm:$0xff] }
 0x211   :  { %1783 = vmatpush.msrb.mxu1 %v2848_v58  ;;  %v2849_v60 = vld [vmem:[#allocation2 + $0x860] sm:$0xff]  ;;  %v2888_v58 = vld [vmem:[#allocation2 + $0x328] sm:$0xff] }
 0x212   :  { %1765 = vmatpush.msrb.mxu0 %v2849_v60  ;;  %v2850_v3 = vld [vmem:[#allocation2 + $0xd60] sm:$0xff]  ;;  %v2889_v60 = vld [vmem:[#allocation2 + $0xc8] sm:$0xff] }
 0x213   :  { %1797 = vmatpush.msrb.mxu2 %v2850_v3  ;;  %v2851_v5 = vld [vmem:[#allocation2 + $0xa80] sm:$0xff]  ;;  %v1290_v25 = vpop.f32.mrf.mxu0  ;;  %v2891_v3 = vld [vmem:[#allocation2 + $0x308] sm:$0xff] }
 0x214   :  { %1784 = vmatpush.msrb.mxu1 %v2851_v5  ;;  %v2852_v6 = vld [vmem:[#allocation2 + $0x840] sm:$0xff]  ;;  %v1291_v62 = vadd.f32 %v1290_v25, %v1271_v16  ;;  %v1310_v29 = vpop.f32.mrf.mxu1  ;;  %v2894_v5 = vld [vmem:[#allocation2 + $0x2e8] sm:$0xff] }
 0x215   :  { %1766 = vmatpush.msrb.mxu0 %v2852_v6  ;;  %v2853_v33 = vld [vmem:[#allocation2 + $0xd40] sm:$0xff]  ;;  %v2895_v6 = vld [vmem:[#allocation2 + $0x88] sm:$0xff] }
 0x216   :  { %1798 = vmatpush.msrb.mxu2 %v2853_v33  ;;  %v2854_v2 = vld [vmem:[#allocation2 + $0xa60] sm:$0xff]  ;;  %v1311_v32 = vadd.f32 %v1310_v29, %v1291_v62  ;;  %v2897_v8 = vld [vmem:[#allocation2 + $0x2c8] sm:$0xff] }
 0x217   :  { %1785 = vmatpush.msrb.mxu1 %v2854_v2  ;;  %v2855_v9 = vld [vmem:[#allocation2 + $0x820] sm:$0xff]  ;;  %v2898_v2 = vld [vmem:[#allocation2 + $0x68] sm:$0xff] }
 0x218   :  { %1767 = vmatpush.msrb.mxu0 %v2855_v9  ;;  %v2856_v14 = vld [vmem:[#allocation2 + $0xd20] sm:$0xff]  ;;  %v2900_v12 = vld [vmem:[#allocation2 + $0x2a8] sm:$0xff] }
 0x219   :  { %1799 = vmatpush.msrb.mxu2 %v2856_v14  ;;  %v3939_v38 = vld [vmem:[%s4275_s25 + $0x20] sm:$0xff]  ;;  %v2901_v14 = vld [vmem:[#allocation2 + $0x48] sm:$0xff] }
 0x21a   :  { %v2857_v17 = vld [vmem:[#allocation2 + $0xa40] sm:$0xff]  ;;  %v2907_v25 = vld [vmem:[#allocation2 + $0x8] sm:$0xff] }
 0x21b   :  { %1786 = vmatpush.msrb.mxu1 %v2857_v17  ;;  %v2858_v18 = vld [vmem:[#allocation2 + $0x800] sm:$0xff]  ;;  %v1330_v36 = vpop.f32.mrf.mxu2  ;;  %v2903_v17 = vld [vmem:[#allocation2 + $0x288] sm:$0xff] }
 0x21c   :  { %1768 = vmatpush.msrb.mxu0 %v2858_v18  ;;  %v2859_v22 = vld [vmem:[#allocation2 + $0xd00] sm:$0xff]  ;;  %v1331_v37 = vadd.f32 %v1330_v36, %v1311_v32  ;;  %v2904_v18 = vld [vmem:[#allocation2 + $0x28] sm:$0xff] }
 0x21d   :  { %1800 = vmatpush.msrb.mxu2 %v2859_v22  ;;  %v2861_v61 = vld [vmem:[#allocation2 + $0xa20] sm:$0xff]  ;;  %1769 = vmatmul.f32.vlgmr.msrb.gmra.mxu0 %v3939_v38  ;;  %v2914_v32 = vld [vmem:[#allocation2 + $0x9a8] sm:$0xff] }
 0x21e   :  { %1833 = vmatpush.msra.mxu0 %v2860_v24  ;;  %1787 = vmatpush.msrb.mxu1 %v2861_v61  ;;  %v2862_v27 = vld [vmem:[#allocation2 + $0xce0] sm:$0xff]  ;;  %v2906_v24 = vld [vmem:[#allocation2 + $0x268] sm:$0xff] }
 0x21f   :  { %1801 = vmatpush.msrb.mxu2 %v2862_v27  ;;  %v2864_v59 = vld [vmem:[#allocation2 + $0xa00] sm:$0xff]  ;;  %v1350_v44 = vpop.f32.mrf.mxu3  ;;  %v2908_v61 = vld [vmem:[#allocation2 + $0x9e8] sm:$0xff] }
 0x220   :  { %1834 = vmatpush.msra.mxu0 %v2863_v28  ;;  %1788 = vmatpush.msrb.mxu1 %v2864_v59  ;;  %v2865_v35 = vld [vmem:[#allocation2 + $0xcc0] sm:$0xff]  ;;  %v1351_v7 = vadd.f32 %v1350_v44, %v1331_v37  ;;  %v2910_v27 = vld [vmem:[#allocation2 + $0x248] sm:$0xff] }
 0x221   :  { %1802 = vmatpush.msrb.mxu2 %v2865_v35  ;;  %v2868_v41 = vld [vmem:[#allocation2 + $0xca0] sm:$0xff]  ;;  %v2911_v28 = vld [vmem:[#allocation2 + $0x9c8] sm:$0xff] }
 0x222   :  { %1835 = vmatpush.msra.mxu0 %v2866_v23  ;;  %1853 = vmatpush.msra.mxu1 %v2867_v40  ;;  %v2871_v1 = vld [vmem:[#allocation2 + $0xc80] sm:$0xff]  ;;  %vm1356_vm3 = vcmp.gt.f32.partialorder %v1351_v7, 0.0  ;;  %v1360_v21 = vmul.f32 0.2, %v1351_v7  ;;  %v2913_v59 = vld [vmem:[#allocation2 + $0x228] sm:$0xff] }
 0x223   :  { %1803 = vmatpush.msrb.mxu2 %v2868_v41  ;;  %v2874_v47 = vld [vmem:[#allocation2 + $0xc60] sm:$0xff]  ;;  %v3952_v23 = vld [vmem:[%s4275_s25 + $0x28] sm:$0xff] }
 0x224   :  { %1836 = vmatpush.msra.mxu0 %v2869_v43  ;;  %1854 = vmatpush.msra.mxu1 %v2870_v45  ;;  %v1364_v48 = vsel %vm1356_vm3, %v1351_v7, %v1360_v21  ;;  %v2877_v26 = vld [vmem:[#allocation2 + $0xc40] sm:$0xff]  ;;  %v2916_v36 = vld [vmem:[#allocation2 + $0x208] sm:$0xff]  ;;  %v3958_v7 = vld [vmem:[%s4275_s25 + $0x10] sm:$0xff] }
 0x225   :  { %1804 = vmatpush.msrb.mxu2 %v2871_v1  ;;  %1575 = vmatmul.f32.vlgmr.msra.gmra.mxu3 %v1364_v48  ;;  %v2879_v51 = vld [vmem:[#allocation2 + $0x7e0] sm:$0xff]  ;;  %v2917_v37 = vld [vmem:[#allocation2 + $0x988] sm:$0xff]  ;;  %v3964_v21 = vld [vmem:[%s4275_s25 + $0x18] sm:$0xff] }
 0x226   :  { %1837 = vmatpush.msra.mxu0 %v2872_v20  ;;  %1855 = vmatpush.msra.mxu1 %v2873_v46  ;;  %v2882_v19 = vld [vmem:[#allocation2 + $0xc20] sm:$0xff]  ;;  %v2919_v41 = vld [vmem:[#allocation2 + $0x968] sm:$0xff] }
 0x227   :  { %1805 = vmatpush.msrb.mxu2 %v2874_v47  ;;  %1733 = vmatpush.msra.mxu3 %v2879_v51  ;;  %v2883_v54 = vld [vmem:[#allocation2 + $0x7c0] sm:$0xff]  ;;  %v2921_v44 = vld [vmem:[#allocation2 + $0xbe8] sm:$0xff] }
 0x228   :  { %1838 = vmatpush.msra.mxu0 %v2875_v11  ;;  %1856 = vmatpush.msra.mxu1 %v2876_v49  ;;  %v2886_v13 = vld [vmem:[#allocation2 + $0xc00] sm:$0xff]  ;;  %v2922_v45 = vld [vmem:[#allocation2 + $0x948] sm:$0xff] }
 0x229   :  { %1806 = vmatpush.msrb.mxu2 %v2877_v26  ;;  %1734 = vmatpush.msra.mxu3 %v2883_v54  ;;  %v2887_v57 = vld [vmem:[#allocation2 + $0x7a0] sm:$0xff]  ;;  %v2924_v20 = vld [vmem:[#allocation2 + $0xbc8] sm:$0xff] }
 0x22a   :  { %1839 = vmatpush.msra.mxu0 %v2878_v15  ;;  %1857 = vmatpush.msra.mxu1 %v2880_v52  ;;  %v2890_v63 = vld [vmem:[#allocation2 + $0x780] sm:$0xff]  ;;  %v2925_v46 = vld [vmem:[#allocation2 + $0x928] sm:$0xff] }
 0x22b   :  { %1807 = vmatpush.msrb.mxu2 %v2882_v19  ;;  %1735 = vmatpush.msra.mxu3 %v2887_v57  ;;  %v2893_v4 = vld [vmem:[#allocation2 + $0x760] sm:$0xff]  ;;  %v2929_v49 = vld [vmem:[#allocation2 + $0x908] sm:$0xff]  ;;  %v3970_v57 = vld [vmem:[%s4275_s25 + $0x30] sm:$0xff] }
 0x22c   :  { %1840 = vmatpush.msra.mxu0 %v2881_v53  ;;  %1858 = vmatpush.msra.mxu1 %v2884_v55  ;;  %v2896_v33 = vld [vmem:[#allocation2 + $0x740] sm:$0xff]  ;;  %v2931_v15 = vld [vmem:[#allocation2 + $0xb88] sm:$0xff] }
 0x22d   :  { %1808 = vmatpush.msrb.mxu2 %v2886_v13  ;;  %1736 = vmatpush.msra.mxu3 %v2890_v63  ;;  %v2899_v9 = vld [vmem:[#allocation2 + $0x720] sm:$0xff]  ;;  %v2932_v51 = vld [vmem:[#allocation2 + $0x8e8] sm:$0xff] }
 0x22e   :  { %1841 = vmatpush.msra.mxu0 %v2885_v56  ;;  %1859 = vmatpush.msra.mxu1 %v2888_v58  ;;  %v2902_v16 = vld [vmem:[#allocation2 + $0x700] sm:$0xff]  ;;  %v2933_v52 = vld [vmem:[#allocation2 + $0x5e8] sm:$0xff] }
 0x22f   :  { %1655 = vmatmul.f32.vlgmr.msrb.gmra.mxu3 %v1364_v48  ;;  %v2905_v22 = vld [vmem:[#allocation2 + $0x6e0] sm:$0xff]  ;;  %1789 = vmatmul.f32.vlgmr.msrb.gmra.mxu1 %v3952_v23  ;;  %v2928_v48 = vld [vmem:[#allocation2 + $0xba8] sm:$0xff] }
 0x230   :  { %1842 = vmatpush.msra.mxu0 %v2889_v60  ;;  %1860 = vmatpush.msra.mxu1 %v2891_v3  ;;  %v2909_v62 = vld [vmem:[#allocation2 + $0x6c0] sm:$0xff]  ;;  %v2935_v19 = vld [vmem:[#allocation2 + $0xb68] sm:$0xff] }
 0x231   :  { %1737 = vmatpush.msra.mxu3 %v2893_v4  ;;  %v2912_v29 = vld [vmem:[#allocation2 + $0x6a0] sm:$0xff]  ;;  %1729 = vmatmul.f32.vlgmr.msra.gmra.mxu2 %v3958_v7  ;;  %v2936_v54 = vld [vmem:[#allocation2 + $0x8c8] sm:$0xff] }
 0x232   :  { %1843 = vmatpush.msra.mxu0 %v2892_v30  ;;  %1861 = vmatpush.msra.mxu1 %v2894_v5  ;;  %v2915_v35 = vld [vmem:[#allocation2 + $0x680] sm:$0xff]  ;;  %v2937_v55 = vld [vmem:[#allocation2 + $0x5c8] sm:$0xff] }
 0x233   :  { %1738 = vmatpush.msra.mxu3 %v2896_v33  ;;  %v2918_v40 = vld [vmem:[#allocation2 + $0x660] sm:$0xff]  ;;  %1873 = vmatpush.msra.mxu2 %v2933_v52  ;;  %v2939_v13 = vld [vmem:[#allocation2 + $0xb48] sm:$0xff]  ;;  %v2984_v52 = vld [vmem:[#allocation2 + $0x130] sm:$0xff] }
 0x234   :  { %1844 = vmatpush.msra.mxu0 %v2895_v6  ;;  %1862 = vmatpush.msra.mxu1 %v2897_v8  ;;  %v2920_v43 = vld [vmem:[#allocation2 + $0x640] sm:$0xff]  ;;  %v2940_v58 = vld [vmem:[#allocation2 + $0x8a8] sm:$0xff] }
 0x235   :  { %1739 = vmatpush.msra.mxu3 %v2899_v9  ;;  %v2923_v1 = vld [vmem:[#allocation2 + $0x620] sm:$0xff]  ;;  %1874 = vmatpush.msra.mxu2 %v2937_v55  ;;  %v2941_v60 = vld [vmem:[#allocation2 + $0x5a8] sm:$0xff] }
 0x236   :  { %1845 = vmatpush.msra.mxu0 %v2898_v2  ;;  %1863 = vmatpush.msra.mxu1 %v2900_v12  ;;  %v2926_v47 = vld [vmem:[#allocation2 + $0x600] sm:$0xff]  ;;  %v2943_v3 = vld [vmem:[#allocation2 + $0xb28] sm:$0xff] }
 0x237   :  { %1740 = vmatpush.msra.mxu3 %v2902_v16  ;;  %v2927_v11 = vld [vmem:[#allocation2 + $0xfe0] sm:$0xff]  ;;  %1875 = vmatpush.msra.mxu2 %v2941_v60  ;;  %v2944_v30 = vld [vmem:[#allocation2 + $0x888] sm:$0xff] }
 0x238   :  { %1846 = vmatpush.msra.mxu0 %v2901_v14  ;;  %1864 = vmatpush.msra.mxu1 %v2903_v17  ;;  %v2930_v26 = vld [vmem:[#allocation2 + $0xfc0] sm:$0xff]  ;;  %v2946_v5 = vld [vmem:[#allocation2 + $0x588] sm:$0xff] }
 0x239   :  { %1741 = vmatpush.msra.mxu3 %v2905_v22  ;;  %v2934_v53 = vld [vmem:[#allocation2 + $0xfa0] sm:$0xff]  ;;  %1809 = vmatmul.f32.vlgmr.msrb.gmra.mxu2 %v3970_v57  ;;  %v2947_v6 = vld [vmem:[#allocation2 + $0x868] sm:$0xff] }
 0x23a   :  { %1847 = vmatpush.msra.mxu0 %v2904_v18  ;;  %1865 = vmatpush.msra.mxu1 %v2906_v24  ;;  %v2938_v56 = vld [vmem:[#allocation2 + $0xf80] sm:$0xff]  ;;  %v2948_v33 = vld [vmem:[#allocation2 + $0xb08] sm:$0xff] }
 0x23b   :  { %1742 = vmatpush.msra.mxu3 %v2909_v62  ;;  %v2942_v63 = vld [vmem:[#allocation2 + $0xf60] sm:$0xff]  ;;  %1876 = vmatpush.msra.mxu2 %v2946_v5  ;;  %v2950_v2 = vld [vmem:[#allocation2 + $0x568] sm:$0xff]  ;;  %v2961_v62 = vld [vmem:[#allocation2 + $0x1f0] sm:$0xff] }
 0x23c   :  { %1848 = vmatpush.msra.mxu0 %v2907_v25  ;;  %1866 = vmatpush.msra.mxu1 %v2910_v27  ;;  %v2945_v4 = vld [vmem:[#allocation2 + $0xf40] sm:$0xff]  ;;  %v2951_v9 = vld [vmem:[#allocation2 + $0x848] sm:$0xff]  ;;  %v2997_v5 = vld [vmem:[#allocation2 + $0x3b0] sm:$0xff] }
 0x23d   :  { %1849 = vmatmul.f32.vlgmr.msra.gmra.mxu0 %v3930_v10  ;;  %1743 = vmatpush.msra.mxu3 %v2912_v29  ;;  %v2949_v8 = vld [vmem:[#allocation2 + $0xf20] sm:$0xff]  ;;  %v2952_v12 = vld [vmem:[#allocation2 + $0xae8] sm:$0xff] }
 0x23e   :  { %1913 = vmatpush.msrb.mxu0 %v2908_v61  ;;  %1867 = vmatpush.msra.mxu1 %v2913_v59  ;;  %v2953_v14 = vld [vmem:[#allocation2 + $0xf00] sm:$0xff]  ;;  %v2954_v16 = vld [vmem:[#allocation2 + $0x548] sm:$0xff]  ;;  %v2965_v59 = vld [vmem:[#allocation2 + $0x1d0] sm:$0xff] }
 0x23f   :  { %1744 = vmatpush.msra.mxu3 %v2915_v35  ;;  %1877 = vmatpush.msra.mxu2 %v2950_v2  ;;  %v2955_v17 = vld [vmem:[#allocation2 + $0x828] sm:$0xff]  ;;  %v2957_v22 = vld [vmem:[#allocation2 + $0xee0] sm:$0xff]  ;;  %v3001_v2 = vld [vmem:[#allocation2 + $0x390] sm:$0xff] }
 0x240   :  { %1914 = vmatpush.msrb.mxu0 %v2911_v28  ;;  %1868 = vmatpush.msra.mxu1 %v2916_v36  ;;  %v2956_v18 = vld [vmem:[#allocation2 + $0xac8] sm:$0xff]  ;;  %v2962_v27 = vld [vmem:[#allocation2 + $0xec0] sm:$0xff] }
 0x241   :  { %1745 = vmatpush.msra.mxu3 %v2918_v40  ;;  %1878 = vmatpush.msra.mxu2 %v2954_v16  ;;  %v2958_v24 = vld [vmem:[#allocation2 + $0x528] sm:$0xff]  ;;  %v2970_v40 = vld [vmem:[#allocation2 + $0xe80] sm:$0xff]  ;;  %v3005_v16 = vld [vmem:[#allocation2 + $0x370] sm:$0xff] }
 0x242   :  { %1915 = vmatpush.msrb.mxu0 %v2914_v32  ;;  %1933 = vmatpush.msrb.mxu1 %v2921_v44  ;;  %v2959_v25 = vld [vmem:[#allocation2 + $0x808] sm:$0xff]  ;;  %v2966_v32 = vld [vmem:[#allocation2 + $0xea0] sm:$0xff] }
 0x243   :  { %1746 = vmatpush.msra.mxu3 %v2920_v43  ;;  %1879 = vmatpush.msra.mxu2 %v2958_v24  ;;  %v2960_v61 = vld [vmem:[#allocation2 + $0xaa8] sm:$0xff]  ;;  %v2972_v43 = vld [vmem:[#allocation2 + $0x190] sm:$0xff]  ;;  %v2973_v44 = vld [vmem:[#allocation2 + $0xe60] sm:$0xff] }
 0x244   :  { %1916 = vmatpush.msrb.mxu0 %v2917_v37  ;;  %1934 = vmatpush.msrb.mxu1 %v2924_v20  ;;  %v2963_v28 = vld [vmem:[#allocation2 + $0x508] sm:$0xff]  ;;  %v2969_v37 = vld [vmem:[#allocation2 + $0x1b0] sm:$0xff] }
 0x245   :  { %1747 = vmatpush.msra.mxu3 %v2923_v1  ;;  %1880 = vmatpush.msra.mxu2 %v2963_v28  ;;  %v2964_v29 = vld [vmem:[#allocation2 + $0xa88] sm:$0xff]  ;;  %v2976_v20 = vld [vmem:[#allocation2 + $0x170] sm:$0xff] }
 0x246   :  { %1917 = vmatpush.msrb.mxu0 %v2919_v41  ;;  %1935 = vmatpush.msrb.mxu1 %v2928_v48  ;;  %v2967_v35 = vld [vmem:[#allocation2 + $0x4e8] sm:$0xff]  ;;  %v2980_v48 = vld [vmem:[#allocation2 + $0x150] sm:$0xff] }
 0x247   :  { %1748 = vmatpush.msra.mxu3 %v2926_v47  ;;  %1881 = vmatpush.msra.mxu2 %v2967_v35  ;;  %v2968_v36 = vld [vmem:[#allocation2 + $0xa68] sm:$0xff]  ;;  %v3009_v24 = vld [vmem:[#allocation2 + $0x350] sm:$0xff] }
 0x248   :  { %1918 = vmatpush.msrb.mxu0 %v2922_v45  ;;  %1749 = vmatmul.f32.vlgmr.msra.gmra.mxu3 %v3964_v21  ;;  %v2971_v41 = vld [vmem:[#allocation2 + $0x4c8] sm:$0xff]  ;;  %v3014_v28 = vld [vmem:[#allocation2 + $0x30] sm:$0xff] }
 0x249   :  { %1813 = vmatpush.msrb.mxu3 %v2927_v11  ;;  %1936 = vmatpush.msrb.mxu1 %v2931_v15  ;;  %v2974_v45 = vld [vmem:[#allocation2 + $0xa48] sm:$0xff]  ;;  %v3018_v35 = vld [vmem:[#allocation2 + $0x10] sm:$0xff] }
 0x24a   :  { %1919 = vmatpush.msrb.mxu0 %v2925_v46  ;;  %1882 = vmatpush.msra.mxu2 %v2971_v41  ;;  %v2975_v1 = vld [vmem:[#allocation2 + $0x4a8] sm:$0xff]  ;;  %v2977_v46 = vld [vmem:[#allocation2 + $0xe40] sm:$0xff]  ;;  %v3022_v41 = vld [vmem:[#allocation2 + $0x2f0] sm:$0xff] }
 0x24b   :  { %1814 = vmatpush.msrb.mxu3 %v2930_v26  ;;  %1937 = vmatpush.msrb.mxu1 %v2935_v19  ;;  %v2978_v47 = vld [vmem:[#allocation2 + $0xa28] sm:$0xff]  ;;  %v3977_v26 = vld [vmem:[%s4275_s25 + $0x38] sm:$0xff] }
 0x24c   :  { %1920 = vmatpush.msrb.mxu0 %v2929_v49  ;;  %1883 = vmatpush.msra.mxu2 %v2975_v1  ;;  %v2979_v11 = vld [vmem:[#allocation2 + $0x488] sm:$0xff]  ;;  %v2981_v49 = vld [vmem:[#allocation2 + $0xe20] sm:$0xff]  ;;  %v3026_v1 = vld [vmem:[#allocation2 + $0x2d0] sm:$0xff] }
 0x24d   :  { %1815 = vmatpush.msrb.mxu3 %v2934_v53  ;;  %1938 = vmatpush.msrb.mxu1 %v2939_v13  ;;  %v2982_v15 = vld [vmem:[#allocation2 + $0xa08] sm:$0xff]  ;;  %v2985_v53 = vld [vmem:[#allocation2 + $0xe00] sm:$0xff]  ;;  %v2990_v13 = vld [vmem:[#allocation2 + $0xf0] sm:$0xff] }
 0x24e   :  { %1921 = vmatpush.msrb.mxu0 %v2932_v51  ;;  %1884 = vmatpush.msra.mxu2 %v2979_v11  ;;  %v2983_v51 = vld [vmem:[#allocation2 + $0x468] sm:$0xff]  ;;  %v3030_v11 = vld [vmem:[#allocation2 + $0x2b0] sm:$0xff] }
 0x24f   :  { %1816 = vmatpush.msrb.mxu3 %v2938_v56  ;;  %1939 = vmatpush.msrb.mxu1 %v2943_v3  ;;  %v2986_v19 = vld [vmem:[#allocation2 + $0x7e8] sm:$0xff]  ;;  %v2989_v56 = vld [vmem:[#allocation2 + $0x3f0] sm:$0xff] }
 0x250   :  { %1922 = vmatpush.msrb.mxu0 %v2936_v54  ;;  %1885 = vmatpush.msra.mxu2 %v2983_v51  ;;  %v2987_v54 = vld [vmem:[#allocation2 + $0x110] sm:$0xff]  ;;  %v2988_v55 = vld [vmem:[#allocation2 + $0x7c8] sm:$0xff] }
 0x251   :  { %1817 = vmatpush.msrb.mxu3 %v2942_v63  ;;  %1940 = vmatpush.msrb.mxu1 %v2948_v33  ;;  %v2992_v60 = vld [vmem:[#allocation2 + $0x7a8] sm:$0xff]  ;;  %v2993_v63 = vld [vmem:[#allocation2 + $0x3d0] sm:$0xff] }
 0x252   :  { %1923 = vmatpush.msrb.mxu0 %v2940_v58  ;;  %1869 = vmatmul.f32.vlgmr.msra.gmra.mxu1 %v3945_v34  ;;  %v2991_v58 = vld [vmem:[#allocation2 + $0x448] sm:$0xff]  ;;  %v2994_v3 = vld [vmem:[#allocation2 + $0xd0] sm:$0xff] }
 0x253   :  { %1818 = vmatpush.msrb.mxu3 %v2945_v4  ;;  %1941 = vmatpush.msrb.mxu1 %v2952_v12  ;;  %v2996_v4 = vld [vmem:[#allocation2 + $0x788] sm:$0xff]  ;;  %v3034_v51 = vld [vmem:[#allocation2 + $0x290] sm:$0xff] }
 0x254   :  { %1924 = vmatpush.msrb.mxu0 %v2944_v30  ;;  %1886 = vmatpush.msra.mxu2 %v2991_v58  ;;  %v2995_v30 = vld [vmem:[#allocation2 + $0x428] sm:$0xff]  ;;  %v3042_v58 = vld [vmem:[#allocation2 + $0x250] sm:$0xff] }
 0x255   :  { %1819 = vmatpush.msrb.mxu3 %v2949_v8  ;;  %1942 = vmatpush.msrb.mxu1 %v2956_v18  ;;  %v2999_v33 = vld [vmem:[#allocation2 + $0x408] sm:$0xff] }
 0x256   :  { %1925 = vmatpush.msrb.mxu0 %v2947_v6  ;;  %1887 = vmatpush.msra.mxu2 %v2995_v30  ;;  %v2998_v6 = vld [vmem:[#allocation2 + $0xb0] sm:$0xff]  ;;  %v3000_v8 = vld [vmem:[#allocation2 + $0x768] sm:$0xff] }
 0x257   :  { %1820 = vmatpush.msrb.mxu3 %v2953_v14  ;;  %1943 = vmatpush.msrb.mxu1 %v2960_v61  ;;  %v3003_v12 = vld [vmem:[#allocation2 + $0xde8] sm:$0xff] }
 0x258   :  { %1926 = vmatpush.msrb.mxu0 %v2951_v9  ;;  %1888 = vmatpush.msra.mxu2 %v2999_v33  ;;  %v3002_v9 = vld [vmem:[#allocation2 + $0x90] sm:$0xff]  ;;  %v3004_v14 = vld [vmem:[#allocation2 + $0x748] sm:$0xff] }
 0x259   :  { %1821 = vmatpush.msrb.mxu3 %v2957_v22  ;;  %1944 = vmatpush.msrb.mxu1 %v2964_v29  ;;  %v3007_v18 = vld [vmem:[#allocation2 + $0xdc8] sm:$0xff] }
 0x25a   :  { %1927 = vmatpush.msrb.mxu0 %v2955_v17  ;;  %1953 = vmatpush.msrb.mxu2 %v3003_v12  ;;  %v3006_v17 = vld [vmem:[#allocation2 + $0x70] sm:$0xff]  ;;  %v3008_v22 = vld [vmem:[#allocation2 + $0x728] sm:$0xff] }
 0x25b   :  { %1822 = vmatpush.msrb.mxu3 %v2962_v27  ;;  %1945 = vmatpush.msrb.mxu1 %v2968_v36  ;;  %v3011_v61 = vld [vmem:[#allocation2 + $0xda8] sm:$0xff]  ;;  %v3013_v27 = vld [vmem:[#allocation2 + $0x330] sm:$0xff] }
 0x25c   :  { %1928 = vmatpush.msrb.mxu0 %v2959_v25  ;;  %1954 = vmatpush.msrb.mxu2 %v3007_v18  ;;  %v3010_v25 = vld [vmem:[#allocation2 + $0x50] sm:$0xff]  ;;  %v3015_v29 = vld [vmem:[#allocation2 + $0xd88] sm:$0xff] }
 0x25d   :  { %1823 = vmatpush.msrb.mxu3 %v2966_v32  ;;  %1929 = vmatmul.f32.vlgmr.msrb.gmra.mxu0 %v3939_v38  ;;  %v3017_v32 = vld [vmem:[#allocation2 + $0x310] sm:$0xff]  ;;  %v3019_v36 = vld [vmem:[#allocation2 + $0xd68] sm:$0xff] }
 0x25e   :  { %1993 = vmatpush.msra.mxu0 %v2961_v62  ;;  %1946 = vmatpush.msrb.mxu1 %v2974_v45  ;;  %v3012_v62 = vld [vmem:[#allocation2 + $0x708] sm:$0xff]  ;;  %v3054_v12 = vld [vmem:[#allocation2 + $0x8d0] sm:$0xff] }
 0x25f   :  { %1824 = vmatpush.msrb.mxu3 %v2970_v40  ;;  %1955 = vmatpush.msrb.mxu2 %v3011_v61  ;;  %v3021_v40 = vld [vmem:[#allocation2 + $0x6c8] sm:$0xff] }
 0x260   :  { %1994 = vmatpush.msra.mxu0 %v2965_v59  ;;  %1947 = vmatpush.msrb.mxu1 %v2978_v47  ;;  %v3016_v59 = vld [vmem:[#allocation2 + $0x6e8] sm:$0xff] }
 0x261   :  { %1825 = vmatpush.msrb.mxu3 %v2973_v44  ;;  %1956 = vmatpush.msrb.mxu2 %v3015_v29  ;;  %v3024_v44 = vld [vmem:[#allocation2 + $0x9d0] sm:$0xff]  ;;  %v3025_v45 = vld [vmem:[#allocation2 + $0x6a8] sm:$0xff] }
 0x262   :  { %1995 = vmatpush.msra.mxu0 %v2969_v37  ;;  %1948 = vmatpush.msrb.mxu1 %v2982_v15  ;;  %v3020_v37 = vld [vmem:[#allocation2 + $0x9f0] sm:$0xff]  ;;  %v3029_v47 = vld [vmem:[#allocation2 + $0x688] sm:$0xff] }
 0x263   :  { %1826 = vmatpush.msrb.mxu3 %v2977_v46  ;;  %1957 = vmatpush.msrb.mxu2 %v3019_v36  ;;  %v3028_v46 = vld [vmem:[#allocation2 + $0x9b0] sm:$0xff]  ;;  %v3033_v15 = vld [vmem:[#allocation2 + $0x668] sm:$0xff] }
 0x264   :  { %1996 = vmatpush.msra.mxu0 %v2972_v43  ;;  %2013 = vmatpush.msra.mxu1 %v2989_v56  ;;  %v3023_v43 = vld [vmem:[#allocation2 + $0xd48] sm:$0xff]  ;;  %v3040_v56 = vld [vmem:[#allocation2 + $0x950] sm:$0xff] }
 0x265   :  { %1827 = vmatpush.msrb.mxu3 %v2981_v49  ;;  %1958 = vmatpush.msrb.mxu2 %v3023_v43  ;;  %v3032_v49 = vld [vmem:[#allocation2 + $0x990] sm:$0xff]  ;;  %v3046_v30 = vld [vmem:[#allocation2 + $0xca8] sm:$0xff] }
 0x266   :  { %1997 = vmatpush.msra.mxu0 %v2976_v20  ;;  %2014 = vmatpush.msra.mxu1 %v2993_v63  ;;  %v3027_v20 = vld [vmem:[#allocation2 + $0xd28] sm:$0xff]  ;;  %v3074_v43 = vld [vmem:[#allocation2 + $0x5f0] sm:$0xff] }
 0x267   :  { %1828 = vmatpush.msrb.mxu3 %v2985_v53  ;;  %1959 = vmatpush.msrb.mxu2 %v3027_v20  ;;  %v3036_v53 = vld [vmem:[#allocation2 + $0x970] sm:$0xff]  ;;  %v3044_v63 = vld [vmem:[#allocation2 + $0x608] sm:$0xff] }
 0x268   :  { %1998 = vmatpush.msra.mxu0 %v2980_v48  ;;  %1829 = vmatmul.f32.vlgmr.msrb.gmra.mxu3 %v3977_v26  ;;  %v3031_v48 = vld [vmem:[#allocation2 + $0xd08] sm:$0xff] }
 0x269   :  { %1893 = vmatpush.msra.mxu3 %v2986_v19  ;;  %2015 = vmatpush.msra.mxu1 %v2997_v5  ;;  %v3037_v19 = vld [vmem:[#allocation2 + $0x648] sm:$0xff]  ;;  %v3048_v5 = vld [vmem:[#allocation2 + $0x230] sm:$0xff] }
 0x26a   :  { %1999 = vmatpush.msra.mxu0 %v2984_v52  ;;  %1960 = vmatpush.msrb.mxu2 %v3031_v48  ;;  %v3035_v52 = vld [vmem:[#allocation2 + $0xce8] sm:$0xff] }
 0x26b   :  { %1894 = vmatpush.msra.mxu3 %v2988_v55  ;;  %2016 = vmatpush.msra.mxu1 %v3001_v2  ;;  %v3039_v55 = vld [vmem:[#allocation2 + $0xcc8] sm:$0xff]  ;;  %v3052_v2 = vld [vmem:[#allocation2 + $0x210] sm:$0xff] }
 0x26c   :  { %2000 = vmatpush.msra.mxu0 %v2987_v54  ;;  %1961 = vmatpush.msrb.mxu2 %v3035_v52  ;;  %v3038_v54 = vld [vmem:[#allocation2 + $0x270] sm:$0xff]  ;;  %v3050_v33 = vld [vmem:[#allocation2 + $0xc88] sm:$0xff] }
 0x26d   :  { %1895 = vmatpush.msra.mxu3 %v2992_v60  ;;  %2017 = vmatpush.msra.mxu1 %v3005_v16  ;;  %v3043_v60 = vld [vmem:[#allocation2 + $0x930] sm:$0xff]  ;;  %v3058_v18 = vld [vmem:[#allocation2 + $0xc68] sm:$0xff] }
 0x26e   :  { %2001 = vmatpush.msra.mxu0 %v2990_v13  ;;  %1962 = vmatpush.msrb.mxu2 %v3039_v55  ;;  %v3041_v13 = vld [vmem:[#allocation2 + $0x628] sm:$0xff]  ;;  %v3056_v16 = vld [vmem:[#allocation2 + $0xbf0] sm:$0xff]  ;;  %v3089_v55 = vld [vmem:[#allocation2 + $0x198] sm:$0xff] }
 0x26f   :  { %1896 = vmatpush.msra.mxu3 %v2996_v4  ;;  %2018 = vmatpush.msra.mxu1 %v3009_v24  ;;  %v3047_v4 = vld [vmem:[#allocation2 + $0x910] sm:$0xff]  ;;  %v3062_v61 = vld [vmem:[#allocation2 + $0xf48] sm:$0xff] }
 0x270   :  { %2002 = vmatpush.msra.mxu0 %v2994_v3  ;;  %v3045_v3 = vld [vmem:[#allocation2 + $0xfe8] sm:$0xff]  ;;  %1963 = vmatpush.msrb.mxu2 %v3046_v30  ;;  %v3060_v24 = vld [vmem:[#allocation2 + $0xbd0] sm:$0xff]  ;;  %v1516_v30 = vpop.f32.mrf.mxu0 }
 0x271   :  { %1897 = vmatpush.msra.mxu3 %v3000_v8  ;;  %2019 = vmatpush.msra.mxu1 %v3013_v27  ;;  %v3051_v8 = vld [vmem:[#allocation2 + $0x8f0] sm:$0xff]  ;;  %v3066_v29 = vld [vmem:[#allocation2 + $0xf28] sm:$0xff] }
 0x272   :  { %2003 = vmatpush.msra.mxu0 %v2998_v6  ;;  %v3049_v6 = vld [vmem:[#allocation2 + $0xfc8] sm:$0xff]  ;;  %1964 = vmatpush.msrb.mxu2 %v3050_v33  ;;  %v3064_v27 = vld [vmem:[#allocation2 + $0x870] sm:$0xff] }
 0x273   :  { %1898 = vmatpush.msra.mxu3 %v3004_v14  ;;  %2020 = vmatpush.msra.mxu1 %v3017_v32  ;;  %v3055_v14 = vld [vmem:[#allocation2 + $0xf88] sm:$0xff]  ;;  %v3068_v32 = vld [vmem:[#allocation2 + $0x850] sm:$0xff] }
 0x274   :  { %2004 = vmatpush.msra.mxu0 %v3002_v9  ;;  %v3053_v9 = vld [vmem:[#allocation2 + $0xfa8] sm:$0xff]  ;;  %1889 = vmatmul.f32.vlgmr.msra.gmra.mxu2 %v3958_v7 }
 0x275   :  { %1899 = vmatpush.msra.mxu3 %v3008_v22  ;;  %2021 = vmatpush.msra.mxu1 %v3022_v41  ;;  %v3059_v22 = vld [vmem:[#allocation2 + $0xf68] sm:$0xff] }
 0x276   :  { %2005 = vmatpush.msra.mxu0 %v3006_v17  ;;  %1949 = vmatmul.f32.vlgmr.msrb.gmra.mxu1 %v3952_v23  ;;  %v3057_v17 = vld [vmem:[#allocation2 + $0x8b0] sm:$0xff]  ;;  %v3070_v36 = vld [vmem:[#allocation2 + $0xf08] sm:$0xff] }
 0x277   :  { %1900 = vmatpush.msra.mxu3 %v3012_v62  ;;  %2022 = vmatpush.msra.mxu1 %v3026_v1  ;;  %v3063_v62 = vld [vmem:[#allocation2 + $0xc48] sm:$0xff]  ;;  %v3077_v1 = vld [vmem:[#allocation2 + $0x1f8] sm:$0xff] }
 0x278   :  { %2006 = vmatpush.msra.mxu0 %v3010_v25  ;;  %1965 = vmatpush.msrb.mxu2 %v3058_v18  ;;  %v3061_v25 = vld [vmem:[#allocation2 + $0x890] sm:$0xff]  ;;  %v3073_v41 = vld [vmem:[#allocation2 + $0xee8] sm:$0xff]  ;;  %v3104_v18 = vld [vmem:[#allocation2 + $0x118] sm:$0xff] }
 0x279   :  { %1901 = vmatpush.msra.mxu3 %v3016_v59  ;;  %2023 = vmatpush.msra.mxu1 %v3030_v11  ;;  %v3067_v59 = vld [vmem:[#allocation2 + $0xc28] sm:$0xff]  ;;  %v3081_v11 = vld [vmem:[#allocation2 + $0x1d8] sm:$0xff] }
 0x27a   :  { %2007 = vmatpush.msra.mxu0 %v3014_v28  ;;  %1966 = vmatpush.msrb.mxu2 %v3063_v62  ;;  %v3065_v28 = vld [vmem:[#allocation2 + $0xbb0] sm:$0xff]  ;;  %v3078_v20 = vld [vmem:[#allocation2 + $0xec8] sm:$0xff] }
 0x27b   :  { %1902 = vmatpush.msra.mxu3 %v3021_v40  ;;  %2024 = vmatpush.msra.mxu1 %v3034_v51  ;;  %v3072_v40 = vld [vmem:[#allocation2 + $0x830] sm:$0xff]  ;;  %v3082_v48 = vld [vmem:[#allocation2 + $0xea8] sm:$0xff]  ;;  %v3085_v51 = vld [vmem:[#allocation2 + $0x1b8] sm:$0xff] }
 0x27c   :  { %2008 = vmatpush.msra.mxu0 %v3018_v35  ;;  %1967 = vmatpush.msrb.mxu2 %v3067_v59  ;;  %v3069_v35 = vld [vmem:[#allocation2 + $0xb90] sm:$0xff]  ;;  %v3086_v52 = vld [vmem:[#allocation2 + $0xe88] sm:$0xff]  ;;  %v1596_v59 = vpop.f32.mrf.mxu0 }
 0x27d   :  { %1903 = vmatpush.msra.mxu3 %v3025_v45  ;;  %2025 = vmatpush.msra.mxu1 %v3038_v54  ;;  %v3076_v45 = vld [vmem:[#allocation2 + $0xb70] sm:$0xff]  ;;  %v3098_v33 = vld [vmem:[#allocation2 + $0xe28] sm:$0xff] }
 0x27e   :  { %2073 = vmatpush.msrb.mxu0 %v3020_v37  ;;  %v3071_v37 = vld [vmem:[#allocation2 + $0xc08] sm:$0xff]  ;;  %v3088_v54 = vld [vmem:[#allocation2 + $0xb10] sm:$0xff] }
 0x27f   :  { %1904 = vmatpush.msra.mxu3 %v3029_v47  ;;  %2009 = vmatmul.f32.vlgmr.msra.gmra.mxu0 %v3930_v10  ;;  %v3080_v47 = vld [vmem:[#allocation2 + $0xb50] sm:$0xff] }
 0x280   :  { %2074 = vmatpush.msrb.mxu0 %v3024_v44  ;;  %2026 = vmatpush.msra.mxu1 %v3042_v58  ;;  %v3075_v44 = vld [vmem:[#allocation2 + $0x810] sm:$0xff] }
 0x281   :  { %1905 = vmatpush.msra.mxu3 %v3033_v15  ;;  %1968 = vmatpush.msrb.mxu2 %v3071_v37  ;;  %v3084_v15 = vld [vmem:[#allocation2 + $0xb30] sm:$0xff]  ;;  %v3112_v37 = vld [vmem:[#allocation2 + $0xd8] sm:$0xff] }
 0x282   :  { %2075 = vmatpush.msrb.mxu0 %v3028_v46  ;;  %2027 = vmatpush.msra.mxu1 %v3048_v5  ;;  %v3079_v46 = vld [vmem:[#allocation2 + $0x5d0] sm:$0xff] }
 0x283   :  { %1906 = vmatpush.msra.mxu3 %v3037_v19  ;;  %1969 = vmatmul.f32.vlgmr.msrb.gmra.mxu2 %v3970_v57  ;;  %v3087_v19 = vld [vmem:[#allocation2 + $0x590] sm:$0xff] }
 0x284   :  { %2076 = vmatpush.msrb.mxu0 %v3032_v49  ;;  %2028 = vmatpush.msra.mxu1 %v3052_v2  ;;  %v3083_v49 = vld [vmem:[#allocation2 + $0x5b0] sm:$0xff] }
 0x285   :  { %1907 = vmatpush.msra.mxu3 %v3041_v13  ;;  %2033 = vmatpush.msra.mxu2 %v3074_v43  ;;  %v3091_v13 = vld [vmem:[#allocation2 + $0x570] sm:$0xff] }
 0x286   :  { %2077 = vmatpush.msrb.mxu0 %v3036_v53  ;;  %2093 = vmatpush.msrb.mxu1 %v3056_v16  ;;  %v3986_v53 = vld [vmem:[#allocation7] sm:$0x3]  ;;  %v3092_v58 = vld [vmem:[#allocation2 + $0xaf0] sm:$0xff]  ;;  %v1556_v16 = vpop.f32.mrf.mxu2 }
 0x287   :  { %1908 = vmatpush.msra.mxu3 %v3044_v63  ;;  %2034 = vmatpush.msra.mxu2 %v3079_v46  ;;  %v3093_v63 = vld [vmem:[#allocation2 + $0x178] sm:$0xff]  ;;  %v3096_v5 = vld [vmem:[#allocation2 + $0xad0] sm:$0xff] }
 0x288   :  { %2078 = vmatpush.msrb.mxu0 %v3040_v56  ;;  %2094 = vmatpush.msrb.mxu1 %v3060_v24  ;;  %v3090_v56 = vld [vmem:[#allocation2 + $0xe68] sm:$0xff]  ;;  %v3100_v2 = vld [vmem:[#allocation2 + $0xab0] sm:$0xff]  ;;  %v1536_v24 = vpop.f32.mrf.mxu1 }
 0x289   :  { %1973 = vmatpush.msrb.mxu3 %v3045_v3  ;;  %2035 = vmatpush.msra.mxu2 %v3083_v49  ;;  %v3094_v3 = vld [vmem:[#allocation2 + $0xe48] sm:$0xff]  ;;  %v3114_v43 = vld [vmem:[#allocation2 + $0xa50] sm:$0xff] }
 0x28a   :  { %2079 = vmatpush.msrb.mxu0 %v3043_v60  ;;  %1909 = vmatmul.f32.vlgmr.msra.gmra.mxu3 %v3964_v21  ;;  %v1495_v60 = vperm.slane %v3986_v53, 0  ;;  %v3117_v46 = vld [vmem:[#allocation2 + $0x4b0] sm:$0xff] }
 0x28b   :  { %1974 = vmatpush.msrb.mxu3 %v3049_v6  ;;  %2095 = vmatpush.msrb.mxu1 %v3065_v28  ;;  %v3097_v6 = vld [vmem:[#allocation2 + $0x158] sm:$0xff]  ;;  %v3120_v49 = vld [vmem:[#allocation2 + $0x770] sm:$0xff] }
 0x28c   :  { %2080 = vmatpush.msrb.mxu0 %v3047_v4  ;;  %2036 = vmatpush.msra.mxu2 %v3087_v19  ;;  %v3095_v4 = vld [vmem:[#allocation2 + $0x550] sm:$0xff]  ;;  %v3108_v28 = vld [vmem:[#allocation2 + $0xf8] sm:$0xff] }
 0x28d   :  { %1975 = vmatpush.msrb.mxu3 %v3053_v9  ;;  %2096 = vmatpush.msrb.mxu1 %v3069_v35  ;;  %v1517_v9 = vadd.f32 %v1516_v30, %v1495_v60  ;;  %v3111_v35 = vld [vmem:[#allocation2 + $0x4d0] sm:$0xff] }
 0x28e   :  { %2081 = vmatpush.msrb.mxu0 %v3051_v8  ;;  %2037 = vmatpush.msra.mxu2 %v3091_v13  ;;  %v3099_v8 = vld [vmem:[#allocation2 + $0x530] sm:$0xff] }
 0x28f   :  { %1976 = vmatpush.msrb.mxu3 %v3055_v14  ;;  %2097 = vmatpush.msrb.mxu1 %v3076_v45  ;;  %v3102_v14 = vld [vmem:[#allocation2 + $0xe08] sm:$0xff]  ;;  %v1537_v62 = vadd.f32 %v1536_v24, %v1517_v9  ;;  %v3115_v45 = vld [vmem:[#allocation2 + $0xb8] sm:$0xff]  ;;  %v3122_v19 = vld [vmem:[#allocation2 + $0xa10] sm:$0xff] }
 0x290   :  { %2082 = vmatpush.msrb.mxu0 %v3054_v12  ;;  %2038 = vmatpush.msra.mxu2 %v3095_v4  ;;  %v3101_v12 = vld [vmem:[#allocation2 + $0x138] sm:$0xff]  ;;  %v3124_v13 = vld [vmem:[#allocation2 + $0x750] sm:$0xff] }
 0x291   :  { %1977 = vmatpush.msrb.mxu3 %v3059_v22  ;;  %2098 = vmatpush.msrb.mxu1 %v3080_v47  ;;  %v3105_v22 = vld [vmem:[#allocation2 + $0x7f0] sm:$0xff]  ;;  %v3132_v9 = vld [vmem:[#allocation2 + $0x3d8] sm:$0xff] }
 0x292   :  { %2083 = vmatpush.msrb.mxu0 %v3057_v17  ;;  %2039 = vmatpush.msra.mxu2 %v3099_v8  ;;  %v3103_v17 = vld [vmem:[#allocation2 + $0x510] sm:$0xff] }
 0x293   :  { %1978 = vmatpush.msrb.mxu3 %v3062_v61  ;;  %2099 = vmatpush.msrb.mxu1 %v3084_v15  ;;  %v3107_v61 = vld [vmem:[#allocation2 + $0x4f0] sm:$0xff]  ;;  %v1616_v15 = vpop.f32.mrf.mxu1 }
 0x294   :  { %2084 = vmatpush.msrb.mxu0 %v3061_v25  ;;  %2040 = vmatpush.msra.mxu2 %v3103_v17  ;;  %v3106_v25 = vld [vmem:[#allocation2 + $0xa90] sm:$0xff] }
 0x295   :  { %1979 = vmatpush.msrb.mxu3 %v3066_v29  ;;  %2100 = vmatpush.msrb.mxu1 %v3088_v54  ;;  %v3109_v29 = vld [vmem:[#allocation2 + $0x7d0] sm:$0xff] }
 0x296   :  { %2085 = vmatpush.msrb.mxu0 %v3064_v27  ;;  %2041 = vmatpush.msra.mxu2 %v3107_v61  ;;  %v1496_v27 = vperm.slane %v3986_v53, 1  ;;  %v3118_v47 = vld [vmem:[#allocation2 + $0xa30] sm:$0xff] }
 0x297   :  { %1980 = vmatpush.msrb.mxu3 %v3070_v36  ;;  %2101 = vmatpush.msrb.mxu1 %v3092_v58  ;;  %v1557_v36 = vadd.f32 %v1556_v16, %v1537_v62  ;;  %v3125_v58 = vld [vmem:[#allocation2 + $0x470] sm:$0xff]  ;;  %v3134_v16 = vld [vmem:[#allocation2 + $0x18] sm:$0xff] }
 0x298   :  { %2086 = vmatpush.msrb.mxu0 %v3068_v32  ;;  %v3110_v32 = vld [vmem:[#allocation2 + $0xa70] sm:$0xff]  ;;  %2042 = vmatpush.msra.mxu2 %v3111_v35  ;;  %v3140_v62 = vld [vmem:[#allocation2 + $0x9d8] sm:$0xff] }
 0x299   :  { %1981 = vmatpush.msrb.mxu3 %v3073_v41  ;;  %2102 = vmatpush.msrb.mxu1 %v3096_v5  ;;  %v3127_v30 = vld [vmem:[#allocation2 + $0x730] sm:$0xff]  ;;  %v3128_v5 = vld [vmem:[#allocation2 + $0x3f8] sm:$0xff] }
 0x29a   :  { %2087 = vmatpush.msrb.mxu0 %v3072_v40  ;;  %v3113_v40 = vld [vmem:[#allocation2 + $0x7b0] sm:$0xff]  ;;  %2043 = vmatpush.msra.mxu2 %v3117_v46  ;;  %v3145_v35 = vld [vmem:[#allocation2 + $0x378] sm:$0xff] }
 0x29b   :  { %1982 = vmatpush.msrb.mxu3 %v3078_v20  ;;  %2103 = vmatpush.msrb.mxu1 %v3100_v2  ;;  %v3131_v8 = vld [vmem:[#allocation2 + $0x710] sm:$0xff] }
 0x29c   :  { %2088 = vmatpush.msrb.mxu0 %v3075_v44  ;;  %v1597_v44 = vadd.f32 %v1596_v59, %v1496_v27  ;;  %2029 = vmatmul.f32.vlgmr.msra.gmra.mxu1 %v3945_v34  ;;  %v3135_v17 = vld [vmem:[#allocation2 + $0x6f0] sm:$0xff] }
 0x29d   :  { %1983 = vmatpush.msrb.mxu3 %v3082_v48  ;;  %2104 = vmatpush.msrb.mxu1 %v3106_v25  ;;  %v3119_v48 = vld [vmem:[#allocation2 + $0x98] sm:$0xff]  ;;  %v3138_v25 = vld [vmem:[#allocation2 + $0x6d0] sm:$0xff] }
 0x29e   :  { %2153 = vmatpush.msra.mxu0 %v3077_v1  ;;  %v3116_v1 = vld [vmem:[#allocation2 + $0x790] sm:$0xff]  ;;  %v1617_v54 = vadd.f32 %v1616_v15, %v1597_v44  ;;  %v3160_v15 = vld [vmem:[#allocation2 + $0x938] sm:$0xff] }
 0x29f   :  { %1984 = vmatpush.msrb.mxu3 %v3086_v52  ;;  %2105 = vmatpush.msrb.mxu1 %v3110_v32  ;;  %v3121_v52 = vld [vmem:[#allocation2 + $0x490] sm:$0xff]  ;;  %v3144_v32 = vld [vmem:[#allocation2 + $0x9b8] sm:$0xff] }
 0x2a0   :  { %2154 = vmatpush.msra.mxu0 %v3081_v11  ;;  %2044 = vmatpush.msra.mxu2 %v3121_v52  ;;  %v3139_v61 = vld [vmem:[#allocation2 + $0x410] sm:$0xff] }
 0x2a1   :  { %1985 = vmatpush.msrb.mxu3 %v3090_v56  ;;  %2089 = vmatmul.f32.vlgmr.msrb.gmra.mxu0 %v3939_v38  ;;  %v3123_v56 = vld [vmem:[#allocation2 + $0x78] sm:$0xff]  ;;  %v3143_v59 = vld [vmem:[#allocation2 + $0xdf0] sm:$0xff] }
 0x2a2   :  { %2155 = vmatpush.msra.mxu0 %v3085_v51  ;;  %2106 = vmatpush.msrb.mxu1 %v3114_v43  ;;  %v1636_v51 = vpop.f32.mrf.mxu2  ;;  %v3150_v43 = vld [vmem:[#allocation2 + $0x670] sm:$0xff] }
 0x2a3   :  { %1986 = vmatpush.msrb.mxu3 %v3094_v3  ;;  %2045 = vmatpush.msra.mxu2 %v3125_v58  ;;  %v3126_v3 = vld [vmem:[#allocation2 + $0x58] sm:$0xff]  ;;  %v3151_v44 = vld [vmem:[#allocation2 + $0xdb0] sm:$0xff] }
 0x2a4   :  { %2156 = vmatpush.msra.mxu0 %v3089_v55  ;;  %2107 = vmatpush.msrb.mxu1 %v3118_v47  ;;  %v3155_v46 = vld [vmem:[#allocation2 + $0xd90] sm:$0xff]  ;;  %v3156_v47 = vld [vmem:[#allocation2 + $0x958] sm:$0xff] }
 0x2a5   :  { %1987 = vmatpush.msrb.mxu3 %v3098_v33  ;;  %v3130_v33 = vld [vmem:[#allocation2 + $0x38] sm:$0xff]  ;;  %v3162_v52 = vld [vmem:[#allocation2 + $0x610] sm:$0xff] }
 0x2a6   :  { %2157 = vmatpush.msra.mxu0 %v3093_v63  ;;  %2108 = vmatpush.msrb.mxu1 %v3122_v19  ;;  %v1637_v63 = vadd.f32 %v1636_v51, %v1617_v54  ;;  %v3161_v51 = vld [vmem:[#allocation2 + $0x2f8] sm:$0xff]  ;;  %v3163_v19 = vld [vmem:[#allocation2 + $0xd50] sm:$0xff] }
 0x2a7   :  { %1988 = vmatpush.msrb.mxu3 %v3102_v14  ;;  %v3164_v54 = vld [vmem:[#allocation2 + $0x918] sm:$0xff]  ;;  %v3167_v58 = vld [vmem:[#allocation2 + $0xd30] sm:$0xff]  ;;  %2109 = vmatmul.f32.vlgmr.msrb.gmra.mxu1 %v3952_v23 }
 0x2a8   :  { %2158 = vmatpush.msra.mxu0 %v3097_v6  ;;  %1989 = vmatmul.f32.vlgmr.msrb.gmra.mxu3 %v3977_v26  ;;  %v1576_v41 = vpop.f32.mrf.mxu3  ;;  %v3129_v6 = vld [vmem:[#allocation2 + $0x450] sm:$0xff] }
 0x2a9   :  { %2053 = vmatpush.msra.mxu3 %v3105_v22  ;;  %v1577_v20 = vadd.f32 %v1576_v41, %v1557_v36  ;;  %2173 = vmatpush.msra.mxu1 %v3128_v5  ;;  %v3137_v22 = vld [vmem:[#allocation2 + $0x3b8] sm:$0xff]  ;;  %v3146_v36 = vld [vmem:[#allocation2 + $0x690] sm:$0xff] }
 0x2aa   :  { %2159 = vmatpush.msra.mxu0 %v3101_v12  ;;  %2046 = vmatpush.msra.mxu2 %v3129_v6  ;;  %v3133_v12 = vld [vmem:[#allocation2 + $0x430] sm:$0xff]  ;;  %v3149_v41 = vld [vmem:[#allocation2 + $0x358] sm:$0xff] }
 0x2ab   :  { %2054 = vmatpush.msra.mxu3 %v3109_v29  ;;  %vm1659_vm4 = vcmp.gt.f32.partialorder %v1577_v20, 0.0  ;;  %v1661_v11 = vmul.f32 0.2, %v1577_v20  ;;  %2174 = vmatpush.msra.mxu1 %v3132_v9  ;;  %v3142_v29 = vld [vmem:[#allocation2 + $0x6b0] sm:$0xff]  ;;  %v3172_v5 = vld [vmem:[#allocation2 + $0x8d8] sm:$0xff] }
 0x2ac   :  { %2160 = vmatpush.msra.mxu0 %v3104_v18  ;;  %2047 = vmatpush.msra.mxu2 %v3133_v12  ;;  %v3136_v18 = vld [vmem:[#allocation2 + $0x9f8] sm:$0xff]  ;;  %v3173_v6 = vld [vmem:[#allocation2 + $0xfb0] sm:$0xff] }
 0x2ad   :  { %2055 = vmatpush.msra.mxu3 %v3113_v40  ;;  %v3996_v55 = vsel %vm1659_vm4, %v1577_v20, %v1661_v11  ;;  %2175 = vmatpush.msra.mxu1 %v3137_v22  ;;  %v3148_v40 = vld [vmem:[#allocation2 + $0x998] sm:$0xff]  ;;  %v3154_v20 = vld [vmem:[#allocation2 + $0x650] sm:$0xff] }
 0x2ae   :  { %2161 = vmatpush.msra.mxu0 %v3108_v28  ;;  %2491 = vst [vmem:[%s4267_s15] sm:$0xff] %v3996_v55  ;;  %2048 = vmatpush.msra.mxu2 %v3139_v61  ;;  %v3141_v28 = vld [vmem:[#allocation2 + $0x398] sm:$0xff]  ;;  %v3177_v9 = vld [vmem:[#allocation2 + $0xf90] sm:$0xff]  ;;  %v1690_v61 = vpop.f32.mrf.mxu0 }
 0x2af   :  { %2056 = vmatpush.msra.mxu3 %v3116_v1  ;;  %2176 = vmatpush.msra.mxu1 %v3141_v28  ;;  %v3153_v1 = vld [vmem:[#allocation2 + $0x338] sm:$0xff] }
 0x2b0   :  { %2162 = vmatpush.msra.mxu0 %v3112_v37  ;;  %2113 = vmatpush.msrb.mxu2 %v3143_v59  ;;  %v3147_v37 = vld [vmem:[#allocation2 + $0xdd0] sm:$0xff]  ;;  %v3157_v11 = vld [vmem:[#allocation2 + $0x318] sm:$0xff] }
 0x2b1   :  { %2057 = vmatpush.msra.mxu3 %v3120_v49  ;;  %2177 = vmatpush.msra.mxu1 %v3145_v35  ;;  %v3159_v49 = vld [vmem:[#allocation2 + $0xd70] sm:$0xff]  ;;  %v3178_v12 = vld [vmem:[#allocation2 + $0x278] sm:$0xff] }
 0x2b2   :  { %2163 = vmatpush.msra.mxu0 %v3115_v45  ;;  %v1656_v4 = vpop.f32.mrf.mxu3  ;;  %2114 = vmatpush.msrb.mxu2 %v3147_v37  ;;  %v3152_v45 = vld [vmem:[#allocation2 + $0x978] sm:$0xff]  ;;  %v3188_v59 = vld [vmem:[#allocation2 + $0xf30] sm:$0xff] }
 0x2b3   :  { %2058 = vmatpush.msra.mxu3 %v3124_v13  ;;  %v1657_v2 = vadd.f32 %v1656_v4, %v1637_v63  ;;  %2178 = vmatpush.msra.mxu1 %v3149_v41  ;;  %v3166_v13 = vld [vmem:[#allocation2 + $0x2d8] sm:$0xff]  ;;  %v3171_v4 = vld [vmem:[#allocation2 + $0xd10] sm:$0xff] }
 0x2b4   :  { %2164 = vmatpush.msra.mxu0 %v3119_v48  ;;  %2115 = vmatpush.msrb.mxu2 %v3151_v44  ;;  %v3158_v48 = vld [vmem:[#allocation2 + $0x630] sm:$0xff]  ;;  %v3168_v63 = vld [vmem:[#allocation2 + $0x8f8] sm:$0xff] }
 0x2b5   :  { %2059 = vmatpush.msra.mxu3 %v3127_v30  ;;  %vm1660_vm5 = vcmp.gt.f32.partialorder %v1657_v2, 0.0  ;;  %v1662_v14 = vmul.f32 0.2, %v1657_v2  ;;  %2179 = vmatpush.msra.mxu1 %v3153_v1  ;;  %v3170_v30 = vld [vmem:[#allocation2 + $0x2b8] sm:$0xff]  ;;  %v3192_v37 = vld [vmem:[#allocation2 + $0xf10] sm:$0xff] }
 0x2b6   :  { %2165 = vmatpush.msra.mxu0 %v3123_v56  ;;  %2116 = vmatpush.msrb.mxu2 %v3155_v46  ;;  %v3165_v56 = vld [vmem:[#allocation2 + $0xff0] sm:$0xff]  ;;  %v3183_v22 = vld [vmem:[#allocation2 + $0x878] sm:$0xff]  ;;  %v1730_v46 = vpop.f32.mrf.mxu2 }
 0x2b7   :  { %2060 = vmatpush.msra.mxu3 %v3131_v8  ;;  %v4003_v24 = vsel %vm1660_vm5, %v1657_v2, %v1662_v14  ;;  %2180 = vmatpush.msra.mxu1 %v3157_v11  ;;  %v3175_v8 = vld [vmem:[#allocation2 + $0xcf0] sm:$0xff]  ;;  %v3176_v2 = vld [vmem:[#allocation2 + $0x8b8] sm:$0xff] }
 0x2b8   :  { %2166 = vmatpush.msra.mxu0 %v3126_v3  ;;  %2492 = vst [vmem:[%s4267_s15 + $0x8] sm:$0xff] %v4003_v24  ;;  %2117 = vmatpush.msrb.mxu2 %v3159_v49  ;;  %v3169_v3 = vld [vmem:[#allocation2 + $0xfd0] sm:$0xff]  ;;  %v3186_v28 = vld [vmem:[#allocation2 + $0x238] sm:$0xff] }
 0x2b9   :  { %2061 = vmatpush.msra.mxu3 %v3135_v17  ;;  %2181 = vmatpush.msra.mxu1 %v3161_v51  ;;  %v3179_v14 = vld [vmem:[#allocation2 + $0xcd0] sm:$0xff]  ;;  %v3190_v35 = vld [vmem:[#allocation2 + $0x218] sm:$0xff] }
 0x2ba   :  { %2167 = vmatpush.msra.mxu0 %v3130_v33  ;;  %2118 = vmatpush.msrb.mxu2 %v3163_v19  ;;  %v3174_v33 = vld [vmem:[#allocation2 + $0x298] sm:$0xff]  ;;  %v3181_v17 = vld [vmem:[#allocation2 + $0xf70] sm:$0xff] }
 0x2bb   :  { %2062 = vmatpush.msra.mxu3 %v3138_v25  ;;  %2182 = vmatpush.msra.mxu1 %v3166_v13  ;;  %v3184_v25 = vld [vmem:[#allocation2 + $0xf50] sm:$0xff]  ;;  %v3193_v41 = vld [vmem:[#allocation2 + $0x818] sm:$0xff] }
 0x2bc   :  { %2168 = vmatpush.msra.mxu0 %v3134_v16  ;;  %2119 = vmatpush.msrb.mxu2 %v3167_v58  ;;  %v3180_v16 = vld [vmem:[#allocation2 + $0x898] sm:$0xff]  ;;  %v3200_v11 = vld [vmem:[#allocation2 + $0xeb0] sm:$0xff] }
 0x2bd   :  { %2063 = vmatpush.msra.mxu3 %v3142_v29  ;;  %2183 = vmatpush.msra.mxu1 %v3170_v30  ;;  %v3187_v29 = vld [vmem:[#allocation2 + $0x858] sm:$0xff]  ;;  %v3207_v13 = vld [vmem:[#allocation2 + $0xc30] sm:$0xff] }
 0x2be   :  { %2233 = vmatpush.msrb.mxu0 %v3136_v18  ;;  %2120 = vmatpush.msrb.mxu2 %v3171_v4  ;;  %v3182_v18 = vld [vmem:[#allocation2 + $0x258] sm:$0xff]  ;;  %v3208_v58 = vld [vmem:[#allocation2 + $0xe70] sm:$0xff] }
 0x2bf   :  { %2064 = vmatpush.msra.mxu3 %v3146_v36  ;;  %2184 = vmatpush.msra.mxu1 %v3174_v33  ;;  %v3191_v36 = vld [vmem:[#allocation2 + $0x838] sm:$0xff]  ;;  %v3211_v30 = vld [vmem:[#allocation2 + $0xc10] sm:$0xff]  ;;  %v3213_v33 = vld [vmem:[#allocation6 + $0xa0] sm:$0xff] }
 0x2c0   :  { %2234 = vmatpush.msrb.mxu0 %v3140_v62  ;;  %2121 = vmatpush.msrb.mxu2 %v3175_v8  ;;  %v3185_v62 = vld [vmem:[#allocation2 + $0xcb0] sm:$0xff]  ;;  %v3205_v19 = vld [vmem:[#allocation2 + $0xbb8] sm:$0xff] }
 0x2c1   :  { %2065 = vmatpush.msra.mxu3 %v3150_v43  ;;  %2185 = vmatpush.msra.mxu1 %v3178_v12  ;;  %v3194_v43 = vld [vmem:[#allocation2 + $0xef0] sm:$0xff]  ;;  %v3214_v8 = vld [vmem:[#allocation2 + $0x5f8] sm:$0xff] }
 0x2c2   :  { %2235 = vmatpush.msrb.mxu0 %v3144_v32  ;;  %2122 = vmatpush.msrb.mxu2 %v3179_v14  ;;  %v3189_v32 = vld [vmem:[#allocation2 + $0xc90] sm:$0xff]  ;;  %v3218_v14 = vld [vmem:[#allocation2 + $0x5d8] sm:$0xff] }
 0x2c3   :  { %2066 = vmatpush.msra.mxu3 %v3154_v20  ;;  %2169 = vmatmul.f32.vlgmr.msra.gmra.mxu0 %v3930_v10  ;;  %v1691_v10 = vadd.f32 %v1690_v61, %v705_v39  ;;  %v3195_v44 = vld [vmem:[#allocation6 + $0xf0] sm:$0xff] }
 0x2c4   :  { %2236 = vmatpush.msrb.mxu0 %v3148_v40  ;;  %2186 = vmatpush.msra.mxu1 %v3182_v18  ;;  %v1710_v40 = vpop.f32.mrf.mxu1  ;;  %v3197_v20 = vld [vmem:[#allocation2 + $0xed0] sm:$0xff]  ;;  %v3220_v18 = vld [vmem:[#allocation2 + $0xb58] sm:$0xff] }
 0x2c5   :  { %2067 = vmatpush.msra.mxu3 %v3158_v48  ;;  %2123 = vmatpush.msrb.mxu2 %v3185_v62  ;;  %v1711_v1 = vadd.f32 %v1710_v40, %v1691_v10  ;;  %v3198_v39 = vld [vmem:[#allocation2 + $0xc70] sm:$0xff]  ;;  %v3201_v48 = vld [vmem:[#allocation2 + $0xbd8] sm:$0xff]  ;;  %v1810_v10 = vpop.f32.mrf.mxu2 }
 0x2c6   :  { %2237 = vmatpush.msrb.mxu0 %v3152_v45  ;;  %2187 = vmatpush.msra.mxu1 %v3186_v28  ;;  %v3196_v45 = vld [vmem:[#allocation2 + $0xbf8] sm:$0xff] }
 0x2c7   :  { %2068 = vmatpush.msra.mxu3 %v3162_v52  ;;  %2124 = vmatpush.msrb.mxu2 %v3189_v32  ;;  %v3202_v49 = vld [vmem:[#allocation6 + $0xd0] sm:$0xff]  ;;  %v1731_v51 = vadd.f32 %v1730_v46, %v1711_v1  ;;  %v3236_v46 = vld [vmem:[#allocation6 + $0x40] sm:$0xff] }
 0x2c8   :  { %2238 = vmatpush.msrb.mxu0 %v3156_v47  ;;  %2188 = vmatpush.msra.mxu1 %v3190_v35  ;;  %v3199_v47 = vld [vmem:[#allocation6 + $0xe0] sm:$0xff]  ;;  %v3204_v52 = vld [vmem:[#allocation2 + $0xe90] sm:$0xff]  ;;  %v3222_v61 = vld [vmem:[#allocation2 + $0x7f8] sm:$0xff] }
 0x2c9   :  { %2133 = vmatpush.msrb.mxu3 %v3165_v56  ;;  %2049 = vmatmul.f32.vlgmr.msra.gmra.mxu2 %v3958_v7  ;;  %v3206_v56 = vld [vmem:[#allocation6 + $0xc0] sm:$0xff]  ;;  %v3217_v12 = vld [vmem:[#allocation6 + $0x90] sm:$0xff] }
 0x2ca   :  { %2239 = vmatpush.msrb.mxu0 %v3160_v15  ;;  %2253 = vmatpush.msrb.mxu1 %v3196_v45  ;;  %v3203_v15 = vld [vmem:[#allocation2 + $0xc50] sm:$0xff]  ;;  %v3223_v62 = vld [vmem:[#allocation2 + $0x5b8] sm:$0xff] }
 0x2cb   :  { %2134 = vmatpush.msrb.mxu3 %v3169_v3  ;;  %2125 = vmatpush.msrb.mxu2 %v3198_v39  ;;  %v3210_v3 = vld [vmem:[#allocation6 + $0xb0] sm:$0xff] }
 0x2cc   :  { %2240 = vmatpush.msrb.mxu0 %v3164_v54  ;;  %2069 = vmatmul.f32.vlgmr.msra.gmra.mxu3 %v3964_v21  ;;  %v1750_v54 = vpop.f32.mrf.mxu3  ;;  %v3224_v28 = vld [vmem:[#allocation6 + $0x70] sm:$0xff] }
 0x2cd   :  { %2135 = vmatpush.msrb.mxu3 %v3173_v6  ;;  %2254 = vmatpush.msrb.mxu1 %v3201_v48  ;;  %v1751_v4 = vadd.f32 %v1750_v54, %v1731_v51  ;;  %v1770_v6 = vpop.f32.mrf.mxu0  ;;  %v3226_v32 = vld [vmem:[#allocation2 + $0x7d8] sm:$0xff] }
 0x2ce   :  { %2241 = vmatpush.msrb.mxu0 %v3168_v63  ;;  %2126 = vmatpush.msrb.mxu2 %v3203_v15  ;;  %v3209_v63 = vld [vmem:[#allocation2 + $0xb98] sm:$0xff] }
 0x2cf   :  { %2136 = vmatpush.msrb.mxu3 %v3177_v9  ;;  %2255 = vmatpush.msrb.mxu1 %v3205_v19  ;;  %v3216_v9 = vld [vmem:[#allocation2 + $0xb78] sm:$0xff]  ;;  %v3243_v19 = vld [vmem:[#allocation6 + $0x20] sm:$0xff] }
 0x2d0   :  { %2242 = vmatpush.msrb.mxu0 %v3172_v5  ;;  %2127 = vmatpush.msrb.mxu2 %v3207_v13  ;;  %v3212_v5 = vld [vmem:[#allocation2 + $0xe50] sm:$0xff]  ;;  %v3227_v35 = vld [vmem:[#allocation2 + $0x598] sm:$0xff] }
 0x2d1   :  { %2137 = vmatpush.msrb.mxu3 %v3181_v17  ;;  %2256 = vmatpush.msrb.mxu1 %v3209_v63  ;;  %v3219_v17 = vld [vmem:[#allocation2 + $0xe10] sm:$0xff]  ;;  %v3230_v40 = vld [vmem:[#allocation2 + $0x7b8] sm:$0xff] }
 0x2d2   :  { %2243 = vmatpush.msrb.mxu0 %v3176_v2  ;;  %2128 = vmatpush.msrb.mxu2 %v3211_v30  ;;  %v3215_v2 = vld [vmem:[#allocation2 + $0xe30] sm:$0xff]  ;;  %v3234_v1 = vld [vmem:[#allocation2 + $0x798] sm:$0xff] }
 0x2d3   :  { %2138 = vmatpush.msrb.mxu3 %v3184_v25  ;;  %2129 = vmatmul.f32.vlgmr.msrb.gmra.mxu2 %v3970_v57  ;;  %v3221_v25 = vld [vmem:[#allocation6 + $0x80] sm:$0xff]  ;;  %v3239_v48 = vld [vmem:[#allocation2 + $0x538] sm:$0xff] }
 0x2d4   :  { %2244 = vmatpush.msrb.mxu0 %v3180_v16  ;;  %2193 = vmatpush.msra.mxu2 %v3214_v8  ;;  %v1771_v16 = vadd.f32 %v1770_v6, %v1751_v4  ;;  %v3241_v15 = vld [vmem:[#allocation2 + $0xab8] sm:$0xff] }
 0x2d5   :  { %2139 = vmatpush.msrb.mxu3 %v3188_v59  ;;  %2257 = vmatpush.msrb.mxu1 %v3216_v9  ;;  %v3244_v54 = vld [vmem:[#allocation2 + $0x518] sm:$0xff] }
 0x2d6   :  { %2245 = vmatpush.msrb.mxu0 %v3183_v22  ;;  %2194 = vmatpush.msra.mxu2 %v3218_v14  ;;  %v1790_v22 = vpop.f32.mrf.mxu1  ;;  %v3246_v13 = vld [vmem:[#allocation2 + $0xa98] sm:$0xff] }
 0x2d7   :  { %2140 = vmatpush.msrb.mxu3 %v3192_v37  ;;  %2258 = vmatpush.msrb.mxu1 %v3220_v18  ;;  %v1791_v59 = vadd.f32 %v1790_v22, %v1771_v16  ;;  %v3229_v37 = vld [vmem:[#allocation2 + $0xb18] sm:$0xff]  ;;  %v3259_v16 = vld [vmem:[#allocation6 + $0xe8] sm:$0xff] }
 0x2d8   :  { %2246 = vmatpush.msrb.mxu0 %v3187_v29  ;;  %2195 = vmatpush.msra.mxu2 %v3223_v62  ;;  %v3225_v29 = vld [vmem:[#allocation2 + $0xb38] sm:$0xff] }
 0x2d9   :  { %2141 = vmatpush.msrb.mxu3 %v3194_v43  ;;  %2259 = vmatpush.msrb.mxu1 %v3225_v29  ;;  %v3232_v43 = vld [vmem:[#allocation6 + $0x50] sm:$0xff]  ;;  %v1811_v45 = vadd.f32 %v1810_v10, %v1791_v59  ;;  %v3255_v8 = vld [vmem:[#allocation6 + $0xf8] sm:$0xff]  ;;  %v3267_v29 = vld [vmem:[#allocation6 + $0xc8] sm:$0xff] }
 0x2da   :  { %2247 = vmatpush.msrb.mxu0 %v3191_v36  ;;  %2196 = vmatpush.msra.mxu2 %v3227_v35  ;;  %v3228_v36 = vld [vmem:[#allocation6 + $0x60] sm:$0xff]  ;;  %v3247_v63 = vld [vmem:[#allocation6 + $0x10] sm:$0xff]  ;;  %v3271_v10 = vld [vmem:[#allocation6 + $0xb8] sm:$0xff] }
 0x2db   :  { %2142 = vmatpush.msrb.mxu3 %v3197_v20  ;;  %2260 = vmatpush.msrb.mxu1 %v3229_v37  ;;  %v3235_v20 = vld [vmem:[#allocation2 + $0x558] sm:$0xff] }
 0x2dc   :  { %2248 = vmatpush.msrb.mxu0 %v3193_v41  ;;  %v3231_v41 = vld [vmem:[#allocation2 + $0x578] sm:$0xff]  ;;  %2189 = vmatmul.f32.vlgmr.msra.gmra.mxu1 %v3945_v34 }
 0x2dd   :  { %2143 = vmatpush.msrb.mxu3 %v3200_v11  ;;  %2197 = vmatpush.msra.mxu2 %v3231_v41  ;;  %v3238_v11 = vld [vmem:[#allocation2 + $0x778] sm:$0xff] }
 0x2de   :  { %2325 = vmatpush.msra.mxu0 %v3195_v44  ;;  %v3233_v44 = vld [vmem:[#allocation2 + $0xaf8] sm:$0xff] }
 0x2df   :  { %2144 = vmatpush.msrb.mxu3 %v3204_v52  ;;  %2261 = vmatpush.msrb.mxu1 %v3233_v44  ;;  %v3242_v52 = vld [vmem:[#allocation2 + $0x758] sm:$0xff] }
 0x2e0   :  { %2326 = vmatpush.msra.mxu0 %v3199_v47  ;;  %2198 = vmatpush.msra.mxu2 %v3235_v20  ;;  %v3237_v47 = vld [vmem:[#allocation2 + $0xad8] sm:$0xff] }
 0x2e1   :  { %2145 = vmatpush.msrb.mxu3 %v3208_v58  ;;  %2262 = vmatpush.msrb.mxu1 %v3237_v47  ;;  %v3249_v30 = vld [vmem:[#allocation2 + $0x718] sm:$0xff] }
 0x2e2   :  { %2327 = vmatpush.msra.mxu0 %v3202_v49  ;;  %2199 = vmatpush.msra.mxu2 %v3239_v48  ;;  %v3240_v49 = vld [vmem:[#allocation6 + $0x30] sm:$0xff]  ;;  %v3286_v48 = vld [vmem:[#allocation6 + $0x1a0] sm:$0xff] }
 0x2e3   :  { %2146 = vmatpush.msrb.mxu3 %v3212_v5  ;;  %2263 = vmatpush.msrb.mxu1 %v3241_v15  ;;  %v3250_v4 = vld [vmem:[#allocation2 + $0xa78] sm:$0xff]  ;;  %v3251_v5 = vld [vmem:[#allocation6] sm:$0xff] }
 0x2e4   :  { %2328 = vmatpush.msra.mxu0 %v3206_v56  ;;  %2200 = vmatpush.msra.mxu2 %v3244_v54  ;;  %v3245_v56 = vld [vmem:[#allocation2 + $0x738] sm:$0xff] }
 0x2e5   :  { %2147 = vmatpush.msrb.mxu3 %v3215_v2  ;;  %2249 = vmatmul.f32.vlgmr.msrb.gmra.mxu0 %v3939_v38  ;;  %v3252_v38 = vld [vmem:[#allocation2 + $0x4d8] sm:$0xff] }
 0x2e6   :  { %2329 = vmatpush.msra.mxu0 %v3210_v3  ;;  %2264 = vmatpush.msrb.mxu1 %v3246_v13  ;;  %v3248_v3 = vld [vmem:[#allocation2 + $0x4f8] sm:$0xff]  ;;  %v3294_v13 = vld [vmem:[#allocation6 + $0x180] sm:$0xff] }
 0x2e7   :  { %2148 = vmatpush.msrb.mxu3 %v3219_v17  ;;  %2201 = vmatpush.msra.mxu2 %v3248_v3  ;;  %v3253_v6 = vld [vmem:[#allocation2 + $0x6f8] sm:$0xff] }
 0x2e8   :  { %2330 = vmatpush.msra.mxu0 %v3213_v33  ;;  %2149 = vmatmul.f32.vlgmr.msrb.gmra.mxu3 %v3977_v26  ;;  %v3254_v33 = vld [vmem:[#allocation2 + $0xa58] sm:$0xff] }
 0x2e9   :  { %2213 = vmatpush.msra.mxu3 %v3222_v61  ;;  %2265 = vmatpush.msrb.mxu1 %v3250_v4  ;;  %v3256_v2 = vld [vmem:[#allocation2 + $0x4b8] sm:$0xff] }
 0x2ea   :  { %2331 = vmatpush.msra.mxu0 %v3217_v12  ;;  %2202 = vmatpush.msra.mxu2 %v3252_v38  ;;  %v3257_v12 = vld [vmem:[#allocation2 + $0x6d8] sm:$0xff] }
 0x2eb   :  { %2214 = vmatpush.msra.mxu3 %v3226_v32  ;;  %v1830_v39 = vpop.f32.mrf.mxu3  ;;  %2266 = vmatpush.msrb.mxu1 %v3254_v33  ;;  %v3258_v14 = vld [vmem:[#allocation2 + $0xa38] sm:$0xff]  ;;  %v3269_v32 = vld [vmem:[#allocation6 + $0x1e0] sm:$0xff] }
 0x2ec   :  { %2332 = vmatpush.msra.mxu0 %v3221_v25  ;;  %v1831_v51 = vadd.f32 %v1830_v39, %v1811_v45  ;;  %2203 = vmatpush.msra.mxu2 %v3256_v2  ;;  %v3260_v17 = vld [vmem:[#allocation2 + $0x498] sm:$0xff]  ;;  %v1870_v2 = vpop.f32.mrf.mxu1 }
 0x2ed   :  { %2215 = vmatpush.msra.mxu3 %v3230_v40  ;;  %2267 = vmatpush.msrb.mxu1 %v3258_v14  ;;  %v3261_v18 = vld [vmem:[#allocation2 + $0x6b8] sm:$0xff]  ;;  %v3275_v40 = vld [vmem:[#allocation6 + $0xa8] sm:$0xff] }
 0x2ee   :  { %2333 = vmatpush.msra.mxu0 %v3224_v28  ;;  %v2317_v58 = vmul.f32 0.2, %v1831_v51  ;;  %vm2313_vm6 = vcmp.gt.f32.partialorder %v1831_v51, 0.0  ;;  %2204 = vmatpush.msra.mxu2 %v3260_v17  ;;  %v3262_v22 = vld [vmem:[#allocation2 + $0xa18] sm:$0xff] }
 0x2ef   :  { %2216 = vmatpush.msra.mxu3 %v3234_v1  ;;  %2268 = vmatpush.msrb.mxu1 %v3262_v22  ;;  %v3263_v25 = vld [vmem:[#allocation6 + $0xd8] sm:$0xff]  ;;  %v3265_v62 = vld [vmem:[#allocation6 + $0x1f0] sm:$0xff] }
 0x2f0   :  { %2334 = vmatpush.msra.mxu0 %v3228_v36  ;;  %v4019_v9 = vsel %vm2313_vm6, %v1831_v51, %v2317_v58  ;;  %v3264_v61 = vld [vmem:[#allocation2 + $0x478] sm:$0xff]  ;;  %v1850_v58 = vpop.f32.mrf.mxu0  ;;  %2269 = vmatmul.f32.vlgmr.msrb.gmra.mxu1 %v3952_v23 }
 0x2f1   :  { %2217 = vmatpush.msra.mxu3 %v3238_v11  ;;  %2205 = vmatpush.msra.mxu2 %v3264_v61  ;;  %v3266_v28 = vld [vmem:[#allocation2 + $0x698] sm:$0xff] }
 0x2f2   :  { %2335 = vmatpush.msra.mxu0 %v3232_v43  ;;  %2345 = vmatpush.msra.mxu1 %v3265_v62  ;;  %v3268_v59 = vld [vmem:[#allocation2 + $0x458] sm:$0xff]  ;;  %v3277_v43 = vld [vmem:[#allocation6 + $0x1c0] sm:$0xff] }
 0x2f3   :  { %2218 = vmatpush.msra.mxu3 %v3242_v52  ;;  %2206 = vmatpush.msra.mxu2 %v3268_v59  ;;  %v3270_v35 = vld [vmem:[#allocation2 + $0x678] sm:$0xff] }
 0x2f4   :  { %2336 = vmatpush.msra.mxu0 %v3236_v46  ;;  %2346 = vmatpush.msra.mxu1 %v3269_v32  ;;  %v3272_v36 = vld [vmem:[#allocation2 + $0x438] sm:$0xff]  ;;  %v3283_v46 = vld [vmem:[#allocation6 + $0x88] sm:$0xff] }
 0x2f5   :  { %2219 = vmatpush.msra.mxu3 %v3245_v56  ;;  %2207 = vmatpush.msra.mxu2 %v3272_v36  ;;  %v3273_v37 = vld [vmem:[#allocation6 + $0x1d0] sm:$0xff]  ;;  %v3279_v45 = vld [vmem:[#allocation6 + $0x98] sm:$0xff] }
 0x2f6   :  { %2337 = vmatpush.msra.mxu0 %v3240_v49  ;;  %2347 = vmatpush.msra.mxu1 %v3273_v37  ;;  %v3274_v34 = vld [vmem:[#allocation2 + $0x658] sm:$0xff] }
 0x2f7   :  { %2220 = vmatpush.msra.mxu3 %v3249_v30  ;;  %v3276_v41 = vld [vmem:[#allocation2 + $0x418] sm:$0xff]  ;;  %v1890_v62 = vpop.f32.mrf.mxu2 }
 0x2f8   :  { %2338 = vmatpush.msra.mxu0 %v3243_v19  ;;  %2208 = vmatpush.msra.mxu2 %v3276_v41  ;;  %v3278_v44 = vld [vmem:[#allocation2 + $0x638] sm:$0xff]  ;;  %v3291_v19 = vld [vmem:[#allocation6 + $0x68] sm:$0xff] }
 0x2f9   :  { %2221 = vmatpush.msra.mxu3 %v3253_v6  ;;  %2348 = vmatpush.msra.mxu1 %v3277_v43  ;;  %v3280_v1 = vld [vmem:[#allocation2 + $0xdf8] sm:$0xff]  ;;  %v1851_v6 = vadd.f32 %v1850_v58, %v706_v42  ;;  %v3310_v42 = vld [vmem:[#allocation6 + $0x140] sm:$0xff] }
 0x2fa   :  { %2339 = vmatpush.msra.mxu0 %v3247_v63  ;;  %2273 = vmatpush.msrb.mxu2 %v3280_v1  ;;  %v3281_v20 = vld [vmem:[#allocation6 + $0x1b0] sm:$0xff]  ;;  %v3287_v49 = vld [vmem:[#allocation6 + $0x78] sm:$0xff] }
 0x2fb   :  { %2222 = vmatpush.msra.mxu3 %v3257_v12  ;;  %2349 = vmatpush.msra.mxu1 %v3281_v20  ;;  %v3282_v39 = vld [vmem:[#allocation2 + $0x618] sm:$0xff] }
 0x2fc   :  { %2340 = vmatpush.msra.mxu0 %v3251_v5  ;;  %v3284_v47 = vld [vmem:[#allocation2 + $0xdd8] sm:$0xff]  ;;  %v3299_v5 = vld [vmem:[#allocation6 + $0x48] sm:$0xff]  ;;  %2209 = vmatmul.f32.vlgmr.msra.gmra.mxu2 %v3958_v7 }
 0x2fd   :  { %2341 = vmatmul.f32.vlgmr.msra.gmra.mxu0 %v4019_v9  ;;  %2223 = vmatpush.msra.mxu3 %v3261_v18  ;;  %v3285_v11 = vld [vmem:[#allocation2 + $0xff8] sm:$0xff]  ;;  %v3307_v18 = vld [vmem:[#allocation6 + $0x28] sm:$0xff] }
 0x2fe   :  { %2405 = vmatpush.msrb.mxu0 %v3255_v8  ;;  %2274 = vmatpush.msrb.mxu2 %v3284_v47  ;;  %v3288_v15 = vld [vmem:[#allocation2 + $0xdb8] sm:$0xff]  ;;  %v3302_v8 = vld [vmem:[#allocation6 + $0x160] sm:$0xff] }
 0x2ff   :  { %2224 = vmatpush.msra.mxu3 %v3266_v28  ;;  %2350 = vmatpush.msra.mxu1 %v3286_v48  ;;  %v3289_v51 = vld [vmem:[#allocation2 + $0xfd8] sm:$0xff]  ;;  %v3328_v48 = vld [vmem:[#allocation6 + $0x1e8] sm:$0xff] }
 0x300   :  { %2406 = vmatpush.msrb.mxu0 %v3259_v16  ;;  %2275 = vmatpush.msrb.mxu2 %v3288_v15  ;;  %v3290_v52 = vld [vmem:[#allocation6 + $0x190] sm:$0xff]  ;;  %v3295_v63 = vld [vmem:[#allocation6 + $0x58] sm:$0xff] }
 0x301   :  { %2225 = vmatpush.msra.mxu3 %v3270_v35  ;;  %2351 = vmatpush.msra.mxu1 %v3290_v52  ;;  %v3292_v54 = vld [vmem:[#allocation2 + $0xd98] sm:$0xff]  ;;  %v3315_v35 = vld [vmem:[#allocation6 + $0x8] sm:$0xff] }
 0x302   :  { %2407 = vmatpush.msrb.mxu0 %v3263_v25  ;;  %2276 = vmatpush.msrb.mxu2 %v3292_v54  ;;  %v3293_v56 = vld [vmem:[#allocation2 + $0xfb8] sm:$0xff]  ;;  %v1871_v25 = vadd.f32 %v1870_v2, %v1851_v6  ;;  %v3334_v54 = vld [vmem:[#allocation6 + $0x1c8] sm:$0xff] }
 0x303   :  { %2226 = vmatpush.msra.mxu3 %v3274_v34  ;;  %2352 = vmatpush.msra.mxu1 %v3294_v13  ;;  %v3296_v3 = vld [vmem:[#allocation2 + $0xd78] sm:$0xff]  ;;  %v3318_v34 = vld [vmem:[#allocation6 + $0x120] sm:$0xff] }
 0x304   :  { %2408 = vmatpush.msrb.mxu0 %v3267_v29  ;;  %2277 = vmatpush.msrb.mxu2 %v3296_v3  ;;  %v3297_v30 = vld [vmem:[#allocation2 + $0xf98] sm:$0xff]  ;;  %v1891_v36 = vadd.f32 %v1890_v62, %v1871_v25  ;;  %v3351_v25 = vld [vmem:[#allocation6 + $0x3c0] sm:$0xff] }
 0x305   :  { %2227 = vmatpush.msra.mxu3 %v3278_v44  ;;  %v3298_v4 = vld [vmem:[#allocation6 + $0x170] sm:$0xff]  ;;  %v3303_v12 = vld [vmem:[#allocation6 + $0x38] sm:$0xff]  ;;  %v3353_v62 = vld [vmem:[#allocation6 + $0x2a0] sm:$0xff] }
 0x306   :  { %2409 = vmatpush.msrb.mxu0 %v3271_v10  ;;  %2353 = vmatpush.msra.mxu1 %v3298_v4  ;;  %v3300_v38 = vld [vmem:[#allocation2 + $0xd58] sm:$0xff]  ;;  %v1970_v58 = vpop.f32.mrf.mxu2  ;;  %v3340_v4 = vld [vmem:[#allocation6 + $0x1a8] sm:$0xff] }
 0x307   :  { %2228 = vmatpush.msra.mxu3 %v3282_v39  ;;  %2278 = vmatpush.msrb.mxu2 %v3300_v38  ;;  %v3301_v33 = vld [vmem:[#allocation2 + $0xf78] sm:$0xff]  ;;  %v3324_v39 = vld [vmem:[#allocation6 + $0x100] sm:$0xff] }
 0x308   :  { %2410 = vmatpush.msrb.mxu0 %v3275_v40  ;;  %2354 = vmatpush.msra.mxu1 %v3302_v8  ;;  %v3304_v14 = vld [vmem:[#allocation2 + $0xd38] sm:$0xff]  ;;  %v3341_v38 = vld [vmem:[#allocation6 + $0x2e0] sm:$0xff] }
 0x309   :  { %2293 = vmatpush.msrb.mxu3 %v3285_v11  ;;  %2279 = vmatpush.msrb.mxu2 %v3304_v14  ;;  %v3305_v16 = vld [vmem:[#allocation2 + $0xf58] sm:$0xff] }
 0x30a   :  { %2411 = vmatpush.msrb.mxu0 %v3279_v45  ;;  %v3306_v17 = vld [vmem:[#allocation6 + $0x150] sm:$0xff]  ;;  %v3311_v28 = vld [vmem:[#allocation6 + $0x18] sm:$0xff]  ;;  %2229 = vmatmul.f32.vlgmr.msra.gmra.mxu3 %v3964_v21 }
 0x30b   :  { %2294 = vmatpush.msrb.mxu3 %v3289_v51  ;;  %2355 = vmatpush.msra.mxu1 %v3306_v17  ;;  %v3308_v22 = vld [vmem:[#allocation2 + $0xd18] sm:$0xff]  ;;  %v1950_v51 = vpop.f32.mrf.mxu1 }
 0x30c   :  { %2412 = vmatpush.msrb.mxu0 %v3283_v46  ;;  %2280 = vmatpush.msrb.mxu2 %v3308_v22  ;;  %v3309_v61 = vld [vmem:[#allocation2 + $0xf38] sm:$0xff]  ;;  %v1930_v46 = vpop.f32.mrf.mxu0 }
 0x30d   :  { %2295 = vmatpush.msrb.mxu3 %v3293_v56  ;;  %2356 = vmatpush.msra.mxu1 %v3310_v42  ;;  %v3312_v29 = vld [vmem:[#allocation2 + $0xcf8] sm:$0xff]  ;;  %v1910_v40 = vpop.f32.mrf.mxu3 }
 0x30e   :  { %2413 = vmatpush.msrb.mxu0 %v3287_v49  ;;  %2281 = vmatpush.msrb.mxu2 %v3312_v29  ;;  %v3313_v59 = vld [vmem:[#allocation2 + $0xf18] sm:$0xff]  ;;  %v1911_v1 = vadd.f32 %v1910_v40, %v1891_v36  ;;  %v3363_v40 = vld [vmem:[#allocation6 + $0x128] sm:$0xff] }
 0x30f   :  { %2296 = vmatpush.msrb.mxu3 %v3297_v30  ;;  %v3314_v32 = vld [vmem:[#allocation6 + $0x130] sm:$0xff]  ;;  %v3325_v47 = vld [vmem:[#allocation6 + $0x1f8] sm:$0xff] }
 0x310   :  { %2414 = vmatpush.msrb.mxu0 %v3291_v19  ;;  %2357 = vmatpush.msra.mxu1 %v3314_v32  ;;  %v3316_v10 = vld [vmem:[#allocation2 + $0xcd8] sm:$0xff]  ;;  %v1931_v49 = vadd.f32 %v1930_v46, %v1911_v1  ;;  %v3357_v32 = vld [vmem:[#allocation6 + $0x148] sm:$0xff]  ;;  %v3371_v46 = vld [vmem:[#allocation6 + $0x240] sm:$0xff] }
 0x311   :  { %2297 = vmatpush.msrb.mxu3 %v3301_v33  ;;  %2282 = vmatpush.msrb.mxu2 %v3316_v10  ;;  %v3317_v37 = vld [vmem:[#allocation2 + $0xef8] sm:$0xff]  ;;  %v3359_v10 = vld [vmem:[#allocation6 + $0x280] sm:$0xff] }
 0x312   :  { %2415 = vmatpush.msrb.mxu0 %v3295_v63  ;;  %2358 = vmatpush.msra.mxu1 %v3318_v34  ;;  %v3319_v41 = vld [vmem:[#allocation2 + $0xcb8] sm:$0xff]  ;;  %v1951_v56 = vadd.f32 %v1950_v51, %v1931_v49  ;;  %v3379_v51 = vld [vmem:[#allocation6 + $0x200] sm:$0xff] }
 0x313   :  { %2298 = vmatpush.msrb.mxu3 %v3305_v16  ;;  %2283 = vmatpush.msrb.mxu2 %v3319_v41  ;;  %v3320_v43 = vld [vmem:[#allocation2 + $0xed8] sm:$0xff]  ;;  %v3347_v16 = vld [vmem:[#allocation6 + $0x2c0] sm:$0xff] }
 0x314   :  { %2416 = vmatpush.msrb.mxu0 %v3299_v5  ;;  %v3321_v44 = vld [vmem:[#allocation6 + $0x110] sm:$0xff]  ;;  %v3331_v52 = vld [vmem:[#allocation6 + $0x1d8] sm:$0xff]  ;;  %v1971_v5 = vadd.f32 %v1970_v58, %v1951_v56  ;;  %v3364_v41 = vld [vmem:[#allocation6 + $0x380] sm:$0xff] }
 0x315   :  { %2299 = vmatpush.msrb.mxu3 %v3309_v61  ;;  %2359 = vmatpush.msra.mxu1 %v3321_v44  ;;  %v3322_v45 = vld [vmem:[#allocation2 + $0xc98] sm:$0xff]  ;;  %v3352_v61 = vld [vmem:[#allocation6 + $0x168] sm:$0xff] }
 0x316   :  { %2417 = vmatpush.msrb.mxu0 %v3303_v12  ;;  %2284 = vmatpush.msrb.mxu2 %v3322_v45  ;;  %v3323_v20 = vld [vmem:[#allocation2 + $0xeb8] sm:$0xff]  ;;  %v3346_v12 = vld [vmem:[#allocation6 + $0x188] sm:$0xff] }
 0x317   :  { %2300 = vmatpush.msrb.mxu3 %v3313_v59  ;;  %2360 = vmatpush.msra.mxu1 %v3324_v39  ;;  %v3327_v11 = vld [vmem:[#allocation2 + $0xe98] sm:$0xff]  ;;  %v3370_v39 = vld [vmem:[#allocation6 + $0x360] sm:$0xff]  ;;  %v3387_v58 = vld [vmem:[#allocation6 + $0x2c8] sm:$0xff] }
 0x318   :  { %2418 = vmatpush.msrb.mxu0 %v3307_v18  ;;  %v3329_v23 = vld [vmem:[#allocation2 + $0xc58] sm:$0xff] }
 0x319   :  { %2301 = vmatpush.msrb.mxu3 %v3317_v37  ;;  %2425 = vmatpush.msrb.mxu1 %v3325_v47  ;;  %v3330_v15 = vld [vmem:[#allocation2 + $0xe78] sm:$0xff] }
 0x31a   :  { %2419 = vmatpush.msrb.mxu0 %v3311_v28  ;;  %v3332_v19 = vld [vmem:[#allocation2 + $0xc38] sm:$0xff] }
 0x31b   :  { %2302 = vmatpush.msrb.mxu3 %v3320_v43  ;;  %2426 = vmatpush.msrb.mxu1 %v3328_v48  ;;  %v3333_v7 = vld [vmem:[#allocation2 + $0xe58] sm:$0xff]  ;;  %v3365_v43 = vld [vmem:[#allocation6 + $0x260] sm:$0xff] }
 0x31c   :  { %2420 = vmatpush.msrb.mxu0 %v3315_v35  ;;  %v3335_v13 = vld [vmem:[#allocation2 + $0xc18] sm:$0xff]  ;;  %v3358_v35 = vld [vmem:[#allocation6 + $0x3a0] sm:$0xff] }
 0x31d   :  { %2421 = vmatmul.f32.vlgmr.msrb.gmra.mxu0 %v4019_v9  ;;  %2303 = vmatpush.msrb.mxu3 %v3323_v20  ;;  %v3326_v9 = vld [vmem:[#allocation2 + $0xc78] sm:$0xff]  ;;  %v3369_v20 = vld [vmem:[#allocation6 + $0x108] sm:$0xff]  ;;  %v3375_v48 = vld [vmem:[#allocation6 + $0x220] sm:$0xff] }
 0x31e   :  { %2285 = vmatpush.msrb.mxu2 %v3326_v9  ;;  %2427 = vmatpush.msrb.mxu1 %v3331_v52  ;;  %v3336_v21 = vld [vmem:[#allocation2 + $0xe38] sm:$0xff] }
 0x31f   :  { %2304 = vmatpush.msrb.mxu3 %v3327_v11  ;;  %v3337_v63 = vld [vmem:[#allocation6 + $0x1b8] sm:$0xff]  ;;  %v3339_v30 = vld [vmem:[#allocation6 + $0x2f0] sm:$0xff]  ;;  %v3374_v11 = vld [vmem:[#allocation6 + $0x340] sm:$0xff]  ;;  %2548 = vmatpush.msra.mxu0 %v2547_v0 }
 0x320   :  { %2286 = vmatpush.msrb.mxu2 %v3329_v23  ;;  %2428 = vmatpush.msrb.mxu1 %v3334_v54  ;;  %v3338_v3 = vld [vmem:[#allocation2 + $0xe18] sm:$0xff]  ;;  %v3383_v54 = vld [vmem:[#allocation6 + $0x300] sm:$0xff] }
 0x321   :  { %2305 = vmatpush.msrb.mxu3 %v3330_v15  ;;  %v3342_v6 = vld [vmem:[#allocation6 + $0x3f0] sm:$0xff]  ;;  %v3343_v33 = vld [vmem:[#allocation6 + $0x198] sm:$0xff]  ;;  %v3378_v15 = vld [vmem:[#allocation6 + $0x320] sm:$0xff] }
 0x322   :  { %2287 = vmatpush.msrb.mxu2 %v3332_v19  ;;  %2429 = vmatpush.msrb.mxu1 %v3337_v63  ;;  %v3344_v2 = vld [vmem:[#allocation6 + $0x2d0] sm:$0xff]  ;;  %v3349_v17 = vld [vmem:[#allocation6 + $0x178] sm:$0xff] }
 0x323   :  { %2306 = vmatpush.msrb.mxu3 %v3333_v7  ;;  %v3350_v22 = vld [vmem:[#allocation6 + $0x2b0] sm:$0xff]  ;;  %v3354_v28 = vld [vmem:[#allocation6 + $0x158] sm:$0xff]  ;;  %v3382_v7 = vld [vmem:[#allocation6 + $0x2e8] sm:$0xff] }
 0x324   :  { %2288 = vmatpush.msrb.mxu2 %v3335_v13  ;;  %2430 = vmatpush.msrb.mxu1 %v3340_v4  ;;  %v3355_v29 = vld [vmem:[#allocation6 + $0x3b0] sm:$0xff]  ;;  %v3360_v36 = vld [vmem:[#allocation6 + $0x138] sm:$0xff]  ;;  %v3391_v4 = vld [vmem:[#allocation6 + $0x2a8] sm:$0xff] }
 0x325   :  { %2307 = vmatpush.msrb.mxu3 %v3336_v21  ;;  %2289 = vmatmul.f32.vlgmr.msrb.gmra.mxu2 %v3970_v57  ;;  %v3345_v57 = vld [vmem:[#allocation6 + $0x3e0] sm:$0xff]  ;;  %v3356_v59 = vld [vmem:[#allocation6 + $0x290] sm:$0xff]  ;;  %v3366_v44 = vld [vmem:[#allocation6 + $0x118] sm:$0xff] }
 0x326   :  { %2365 = vmatpush.msra.mxu2 %v3339_v30  ;;  %2431 = vmatpush.msrb.mxu1 %v3343_v33  ;;  %v3361_v37 = vld [vmem:[#allocation6 + $0x390] sm:$0xff]  ;;  %v3380_v52 = vld [vmem:[#allocation6 + $0x2f8] sm:$0xff]  ;;  %v3386_v21 = vld [vmem:[#allocation6 + $0x3e8] sm:$0xff] }
 0x327   :  { %2308 = vmatpush.msrb.mxu3 %v3338_v3  ;;  %v3362_v34 = vld [vmem:[#allocation6 + $0x270] sm:$0xff]  ;;  %v3384_v56 = vld [vmem:[#allocation6 + $0x3f8] sm:$0xff]  ;;  %v3390_v30 = vld [vmem:[#allocation6 + $0x3c8] sm:$0xff] }
 0x328   :  { %2309 = vmatmul.f32.vlgmr.msrb.gmra.mxu3 %v3977_v26  ;;  %2366 = vmatpush.msra.mxu2 %v3341_v38  ;;  %v3348_v26 = vld [vmem:[#allocation6 + $0x3d0] sm:$0xff]  ;;  %v3385_v13 = vld [vmem:[#allocation6 + $0x2d8] sm:$0xff]  ;;  %v2010_v38 = vpop.f32.mrf.mxu0 }
 0x329   :  { %2385 = vmatpush.msra.mxu3 %v3342_v6  ;;  %2432 = vmatpush.msrb.mxu1 %v3346_v12  ;;  %v3367_v45 = vld [vmem:[#allocation6 + $0x370] sm:$0xff]  ;;  %v3388_v63 = vld [vmem:[#allocation6 + $0x3d8] sm:$0xff]  ;;  %v2011_v33 = vadd.f32 %v2010_v38, %v707_v31 }
 0x32a   :  { %2367 = vmatpush.msra.mxu2 %v3344_v2  ;;  %v3368_v1 = vld [vmem:[#allocation6 + $0x250] sm:$0xff]  ;;  %v3389_v3 = vld [vmem:[#allocation6 + $0x2b8] sm:$0xff]  ;;  %v2030_v2 = vpop.f32.mrf.mxu1 }
 0x32b   :  { %v1990_v8 = vpop.f32.mrf.mxu3  ;;  %2386 = vmatpush.msra.mxu3 %v3345_v57  ;;  %2433 = vmatpush.msrb.mxu1 %v3349_v17  ;;  %v3372_v47 = vld [vmem:[#allocation6 + $0x350] sm:$0xff]  ;;  %v3393_v6 = vld [vmem:[#allocation6 + $0x298] sm:$0xff]  ;;  %v3395_v57 = vld [vmem:[#allocation6 + $0x288] sm:$0xff] }
 0x32c   :  { %v1991_v14 = vadd.f32 %v1990_v8, %v1971_v5  ;;  %2368 = vmatpush.msra.mxu2 %v3347_v16  ;;  %v3373_v9 = vld [vmem:[#allocation6 + $0x230] sm:$0xff]  ;;  %v3392_v5 = vld [vmem:[#allocation6 + $0x3b8] sm:$0xff]  ;;  %v3394_v8 = vld [vmem:[#allocation6 + $0x3a8] sm:$0xff]  ;;  %v2031_v16 = vadd.f32 %v2030_v2, %v2011_v33 }
 0x32d   :  { %2387 = vmatpush.msra.mxu3 %v3348_v26  ;;  %2434 = vmatpush.msrb.mxu1 %v3352_v61  ;;  %v3376_v49 = vld [vmem:[#allocation6 + $0x330] sm:$0xff]  ;;  %v3396_v12 = vld [vmem:[#allocation6 + $0x398] sm:$0xff]  ;;  %v3398_v26 = vld [vmem:[#allocation6 + $0x388] sm:$0xff] }
 0x32e   :  { %vm2314_vm7 = vcmp.gt.f32.partialorder %v1991_v14, 0.0  ;;  %v2318_v18 = vmul.f32 0.2, %v1991_v14  ;;  %2369 = vmatpush.msra.mxu2 %v3350_v22  ;;  %v3377_v23 = vld [vmem:[#allocation6 + $0x210] sm:$0xff]  ;;  %v3399_v17 = vld [vmem:[#allocation6 + $0x268] sm:$0xff] }
 0x32f   :  { %2388 = vmatpush.msra.mxu3 %v3351_v25  ;;  %2435 = vmatpush.msrb.mxu1 %v3354_v28  ;;  %v3381_v19 = vld [vmem:[#allocation6 + $0x310] sm:$0xff]  ;;  %v3401_v25 = vld [vmem:[#allocation6 + $0x258] sm:$0xff]  ;;  %v3402_v61 = vld [vmem:[#allocation6 + $0x368] sm:$0xff] }
 0x330   :  { %v2322_v42 = vsel %vm2314_vm7, %v1991_v14, %v2318_v18  ;;  %2370 = vmatpush.msra.mxu2 %v3353_v62  ;;  %v3397_v14 = vld [vmem:[#allocation6 + $0x278] sm:$0xff]  ;;  %v2546_v38 = vld [vmem:[%s4260_s8 + $0x70] sm:$0xff]  ;;  %v2545_v33 = vld [vmem:[%s4260_s8 + $0x68] sm:$0xff] }
 0x331   :  { %2361 = vmatmul.f32.vlgmr.msra.gmra.mxu1 %v2322_v42  ;;  %2389 = vmatpush.msra.mxu3 %v3355_v29  ;;  %v3400_v18 = vld [vmem:[#allocation6 + $0x378] sm:$0xff] }
 0x332   :  { %2371 = vmatpush.msra.mxu2 %v3356_v59  ;;  %2436 = vmatpush.msrb.mxu1 %v3357_v32  ;;  %v3404_v62 = vld [vmem:[#allocation6 + $0x358] sm:$0xff]  ;;  %v3406_v32 = vld [vmem:[#allocation6 + $0x348] sm:$0xff] }
 0x333   :  { %2390 = vmatpush.msra.mxu3 %v3358_v35  ;;  %v3405_v29 = vld [vmem:[#allocation6 + $0x238] sm:$0xff]  ;;  %v2090_v35 = vpop.f32.mrf.mxu0  ;;  %2549 = vmatpush.msra.mxu0 %v2546_v38 }
 0x334   :  { %2372 = vmatpush.msra.mxu2 %v3359_v10  ;;  %2437 = vmatpush.msrb.mxu1 %v3360_v36  ;;  %v2110_v10 = vpop.f32.mrf.mxu1  ;;  %v3407_v36 = vld [vmem:[#allocation6 + $0x228] sm:$0xff]  ;;  %v2531_v2 = vld [vmem:[%s4259_s7 + $0xf8] sm:$0xff] }
 0x335   :  { %2391 = vmatpush.msra.mxu3 %v3361_v37  ;;  %2550 = vmatpush.msra.mxu0 %v2545_v33 }
 0x336   :  { %2373 = vmatpush.msra.mxu2 %v3362_v34  ;;  %2438 = vmatpush.msrb.mxu1 %v3363_v40  ;;  %v3408_v34 = vld [vmem:[#allocation6 + $0x338] sm:$0xff] }
 0x337   :  { %2392 = vmatpush.msra.mxu3 %v3364_v41  ;;  %v3409_v40 = vld [vmem:[#allocation6 + $0x218] sm:$0xff] }
 0x338   :  { %2374 = vmatpush.msra.mxu2 %v3365_v43  ;;  %2439 = vmatpush.msrb.mxu1 %v3366_v44  ;;  %v3410_v43 = vld [vmem:[#allocation6 + $0x328] sm:$0xff] }
 0x339   :  { %2393 = vmatpush.msra.mxu3 %v3367_v45  ;;  %v3411_v44 = vld [vmem:[#allocation6 + $0x208] sm:$0xff] }
 0x33a   :  { %2375 = vmatpush.msra.mxu2 %v3368_v1  ;;  %2440 = vmatpush.msrb.mxu1 %v3369_v20  ;;  %v3412_v1 = vld [vmem:[#allocation6 + $0x318] sm:$0xff] }
 0x33b   :  { %2394 = vmatpush.msra.mxu3 %v3370_v39  ;;  %2441 = vmatmul.f32.vlgmr.msrb.gmra.mxu1 %v2322_v42  ;;  %v3403_v42 = vld [vmem:[#allocation6 + $0x248] sm:$0xff] }
 0x33c   :  { %2376 = vmatpush.msra.mxu2 %v3371_v46  ;;  %v3413_v39 = vld [vmem:[#allocation6 + $0x308] sm:$0xff] }
 0x33d   :  { %2395 = vmatpush.msra.mxu3 %v3372_v47 }
 0x33e   :  { %2377 = vmatpush.msra.mxu2 %v3373_v9 }
 0x33f   :  { %2396 = vmatpush.msra.mxu3 %v3374_v11 }
 0x340   :  { %2378 = vmatpush.msra.mxu2 %v3375_v48  ;;  %v2170_v48 = vpop.f32.mrf.mxu0 }
 0x341   :  { %2397 = vmatpush.msra.mxu3 %v3376_v49  ;;  %v2171_v49 = vadd.f32 %v2170_v48, %v708_v50  ;;  %v2515_v50 = vld [vmem:[%s4259_s7 + $0x78] sm:$0xff]  ;;  %v2532_v48 = vld [vmem:[%s4260_s8] sm:$0xff] }
 0x342   :  { %2379 = vmatpush.msra.mxu2 %v3377_v23  ;;  %2568 = vmatpush.msra.mxu1 %v2515_v50 }
 0x343   :  { %2398 = vmatpush.msra.mxu3 %v3378_v15 }
 0x344   :  { %2380 = vmatpush.msra.mxu2 %v3379_v51 }
 0x345   :  { %2399 = vmatpush.msra.mxu3 %v3381_v19 }
 0x346   :  { %2445 = vmatpush.msrb.mxu2 %v3380_v52 }
 0x347   :  { %2400 = vmatpush.msra.mxu3 %v3383_v54 }
 0x348   :  { %2446 = vmatpush.msrb.mxu2 %v3382_v7 }
 0x349   :  { %2465 = vmatpush.msrb.mxu3 %v3384_v56 }
 0x34a   :  { %2447 = vmatpush.msrb.mxu2 %v3385_v13 }
 0x34b   :  { %2466 = vmatpush.msrb.mxu3 %v3386_v21 }
 0x34c   :  { %2448 = vmatpush.msrb.mxu2 %v3387_v58  ;;  %v2050_v22 = vpop.f32.mrf.mxu2 }
 0x34d   :  { %2467 = vmatpush.msrb.mxu3 %v3388_v63  ;;  %v2051_v31 = vadd.f32 %v2050_v22, %v2031_v16  ;;  %v2529_v16 = vld [vmem:[%s4259_s7 + $0xe8] sm:$0xff]  ;;  %v2542_v22 = vld [vmem:[%s4260_s8 + $0x50] sm:$0xff] }
 0x34e   :  { %2449 = vmatpush.msrb.mxu2 %v3389_v3 }
 0x34f   :  { %2468 = vmatpush.msrb.mxu3 %v3390_v30  ;;  %v2070_v28 = vpop.f32.mrf.mxu3 }
 0x350   :  { %2450 = vmatpush.msrb.mxu2 %v3391_v4  ;;  %v2071_v59 = vadd.f32 %v2070_v28, %v2051_v31  ;;  %v2527_v31 = vld [vmem:[%s4259_s7 + $0xd8] sm:$0xff]  ;;  %v2540_v28 = vld [vmem:[%s4260_s8 + $0x40] sm:$0xff] }
 0x351   :  { %2469 = vmatpush.msrb.mxu3 %v3392_v5 }
 0x352   :  { %2451 = vmatpush.msrb.mxu2 %v3393_v6  ;;  %v2091_v37 = vadd.f32 %v2090_v35, %v2071_v59  ;;  %v2514_v6 = vld [vmem:[%s4259_s7 + $0x70] sm:$0xff]  ;;  %v2525_v59 = vld [vmem:[%s4259_s7 + $0xc8] sm:$0xff]  ;;  %v2507_v35 = vld [vmem:[%s4259_s7 + $0x38] sm:$0xff] }
 0x353   :  { %2470 = vmatpush.msrb.mxu3 %v3394_v8  ;;  %v2513_v8 = vld [vmem:[%s4259_s7 + $0x68] sm:$0xff]  ;;  %2569 = vmatpush.msra.mxu1 %v2514_v6 }
 0x354   :  { %2452 = vmatpush.msrb.mxu2 %v3395_v57  ;;  %v2111_v41 = vadd.f32 %v2110_v10, %v2091_v37  ;;  %v2544_v57 = vld [vmem:[%s4260_s8 + $0x60] sm:$0xff]  ;;  %v2538_v10 = vld [vmem:[%s4260_s8 + $0x30] sm:$0xff]  ;;  %v2537_v37 = vld [vmem:[%s4260_s8 + $0x28] sm:$0xff] }
 0x355   :  { %2471 = vmatpush.msrb.mxu3 %v3396_v12  ;;  %v2512_v12 = vld [vmem:[%s4259_s7 + $0x60] sm:$0xff]  ;;  %2570 = vmatpush.msra.mxu1 %v2513_v8 }
 0x356   :  { %2453 = vmatpush.msrb.mxu2 %v3397_v14  ;;  %v2130_v45 = vpop.f32.mrf.mxu2  ;;  %v2530_v14 = vld [vmem:[%s4259_s7 + $0xf0] sm:$0xff]  ;;  %2551 = vmatpush.msra.mxu0 %v2544_v57 }
 0x357   :  { %2472 = vmatpush.msrb.mxu3 %v3398_v26  ;;  %v2131_v20 = vadd.f32 %v2130_v45, %v2111_v41  ;;  %v2543_v26 = vld [vmem:[%s4260_s8 + $0x58] sm:$0xff]  ;;  %2571 = vmatpush.msra.mxu1 %v2512_v12  ;;  %v2504_v41 = vld [vmem:[%s4259_s7 + $0x20] sm:$0xff] }
 0x358   :  { %2454 = vmatpush.msrb.mxu2 %v3399_v17  ;;  %v2511_v17 = vld [vmem:[%s4259_s7 + $0x58] sm:$0xff]  ;;  %2552 = vmatpush.msra.mxu0 %v2543_v26  ;;  %v2623_v26 = vld [vmem:[#allocation10 + $0x38] sm:$0xff] }
 0x359   :  { %2473 = vmatpush.msrb.mxu3 %v3400_v18  ;;  %v2190_v23 = vpop.f32.mrf.mxu1  ;;  %v2528_v18 = vld [vmem:[%s4259_s7 + $0xe0] sm:$0xff]  ;;  %2572 = vmatpush.msra.mxu1 %v2511_v17  ;;  %v2503_v45 = vld [vmem:[%s4259_s7 + $0x18] sm:$0xff] }
 0x35a   :  { %2455 = vmatpush.msrb.mxu2 %v3401_v25  ;;  %v2191_v15 = vadd.f32 %v2190_v23, %v2171_v49  ;;  %v2510_v25 = vld [vmem:[%s4259_s7 + $0x50] sm:$0xff]  ;;  %2553 = vmatpush.msra.mxu0 %v2542_v22  ;;  %v2500_v49 = vld [vmem:[%s4259_s7] sm:$0xff]  ;;  %v2622_v17 = vld [vmem:[#allocation10 + $0x30] sm:$0xff] }
 0x35b   :  { %2474 = vmatpush.msrb.mxu3 %v3402_v61  ;;  %v2541_v61 = vld [vmem:[%s4260_s8 + $0x48] sm:$0xff]  ;;  %2573 = vmatpush.msra.mxu1 %v2510_v25  ;;  %v2520_v23 = vld [vmem:[%s4259_s7 + $0xa0] sm:$0xff]  ;;  %v2618_v25 = vld [vmem:[#allocation10 + $0x10] sm:$0xff] }
 0x35c   :  { %2456 = vmatpush.msrb.mxu2 %v3403_v42  ;;  %v2509_v42 = vld [vmem:[%s4259_s7 + $0x48] sm:$0xff]  ;;  %2554 = vmatpush.msra.mxu0 %v2541_v61  ;;  %v2619_v22 = vld [vmem:[#allocation10 + $0x18] sm:$0xff] }
 0x35d   :  { %2475 = vmatpush.msrb.mxu3 %v3404_v62  ;;  %v2526_v62 = vld [vmem:[%s4259_s7 + $0xd0] sm:$0xff]  ;;  %2574 = vmatpush.msra.mxu1 %v2509_v42  ;;  %v2616_v61 = vld [vmem:[#allocation10] sm:$0xff] }
 0x35e   :  { %2457 = vmatpush.msrb.mxu2 %v3405_v29  ;;  %v2508_v29 = vld [vmem:[%s4259_s7 + $0x40] sm:$0xff]  ;;  %2555 = vmatpush.msra.mxu0 %v2540_v28  ;;  %v2675_v42 = vld [vmem:[%s4265_s13 + $0x70] sm:$0xff] }
 0x35f   :  { %2476 = vmatpush.msrb.mxu3 %v3406_v32  ;;  %v2539_v32 = vld [vmem:[%s4260_s8 + $0x38] sm:$0xff]  ;;  %2575 = vmatpush.msra.mxu1 %v2508_v29  ;;  %v2673_v28 = vld [vmem:[%s4265_s13 + $0x60] sm:$0xff] }
 0x360   :  { %2458 = vmatpush.msrb.mxu2 %v3407_v36  ;;  %v2506_v36 = vld [vmem:[%s4259_s7 + $0x30] sm:$0xff]  ;;  %2556 = vmatpush.msra.mxu0 %v2539_v32  ;;  %v2660_v29 = vld [vmem:[#allocation13 + $0x38] sm:$0xff]  ;;  %v2672_v32 = vld [vmem:[%s4265_s13 + $0x58] sm:$0xff] }
 0x361   :  { %2477 = vmatpush.msrb.mxu3 %v3408_v34  ;;  %2576 = vmatpush.msra.mxu1 %v2507_v35  ;;  %v2505_v34 = vld [vmem:[%s4259_s7 + $0x28] sm:$0xff]  ;;  %v2658_v35 = vld [vmem:[#allocation13 + $0x28] sm:$0xff] }
 0x362   :  { %2459 = vmatpush.msrb.mxu2 %v3409_v40  ;;  %v2250_v54 = vpop.f32.mrf.mxu0  ;;  %2557 = vmatpush.msra.mxu0 %v2538_v10  ;;  %v2536_v40 = vld [vmem:[%s4260_s8 + $0x20] sm:$0xff]  ;;  %v2671_v10 = vld [vmem:[%s4265_s13 + $0x50] sm:$0xff] }
 0x363   :  { %2478 = vmatpush.msrb.mxu3 %v3410_v43  ;;  %2577 = vmatpush.msra.mxu1 %v2506_v36  ;;  %v2524_v43 = vld [vmem:[%s4259_s7 + $0xc0] sm:$0xff]  ;;  %v2657_v36 = vld [vmem:[#allocation13 + $0x20] sm:$0xff] }
 0x364   :  { %2460 = vmatpush.msrb.mxu2 %v3411_v44  ;;  %2558 = vmatpush.msra.mxu0 %v2537_v37  ;;  %v2535_v44 = vld [vmem:[%s4260_s8 + $0x18] sm:$0xff]  ;;  %v2670_v37 = vld [vmem:[%s4265_s13 + $0x48] sm:$0xff] }
 0x365   :  { %2479 = vmatpush.msrb.mxu3 %v3412_v1  ;;  %2578 = vmatpush.msra.mxu1 %v2505_v34  ;;  %v2523_v1 = vld [vmem:[%s4259_s7 + $0xb8] sm:$0xff]  ;;  %v2656_v34 = vld [vmem:[#allocation13 + $0x18] sm:$0xff] }
 0x366   :  { %2559 = vmatpush.msra.mxu0 %v2536_v40  ;;  %v2669_v40 = vld [vmem:[%s4265_s13 + $0x40] sm:$0xff] }
 0x367   :  { %2480 = vmatpush.msrb.mxu3 %v3413_v39  ;;  %2579 = vmatpush.msra.mxu1 %v2504_v41  ;;  %v2502_v39 = vld [vmem:[%s4259_s7 + $0x10] sm:$0xff]  ;;  %v2668_v41 = vld [vmem:[%s4265_s13 + $0x38] sm:$0xff] }
 0x368   :  { %2560 = vmatpush.msra.mxu0 %v2535_v44  ;;  %v2666_v44 = vld [vmem:[%s4265_s13 + $0x28] sm:$0xff] }
 0x369   :  { %2580 = vmatpush.msra.mxu1 %v2503_v45 }
 0x36b   :  { %v2150_v46 = vpop.f32.mrf.mxu3  ;;  %2581 = vmatpush.msra.mxu1 %v2502_v39  ;;  %v2664_v39 = vld [vmem:[%s4265_s13 + $0x18] sm:$0xff] }
 0x36c   :  { %v2151_v47 = vadd.f32 %v2150_v46, %v2131_v20  ;;  %v2534_v20 = vld [vmem:[%s4260_s8 + $0x10] sm:$0xff] }
 0x36d   :  { %v2270_v56 = vpop.f32.mrf.mxu1  ;;  %v2522_v46 = vld [vmem:[%s4259_s7 + $0xb0] sm:$0xff]  ;;  %2561 = vmatpush.msra.mxu0 %v2534_v20  ;;  %v2665_v20 = vld [vmem:[%s4265_s13 + $0x20] sm:$0xff] }
 0x36e   :  { %vm2315_vm8 = vcmp.gt.f32.partialorder %v2151_v47, 0.0  ;;  %v2319_v9 = vmul.f32 0.2, %v2151_v47 }
 0x370   :  { %v2323_v11 = vsel %vm2315_vm8, %v2151_v47, %v2319_v9  ;;  %v2533_v47 = vld [vmem:[%s4260_s8 + $0x8] sm:$0xff] }
 0x371   :  { %2381 = vmatmul.f32.vlgmr.msra.gmra.mxu2 %v2323_v11  ;;  %v2501_v9 = vld [vmem:[%s4259_s7 + $0x8] sm:$0xff]  ;;  %2562 = vmatpush.msra.mxu0 %v2533_v47  ;;  %v2761_v47 = vld [vmem:[#allocation9] ss:$0 sm:$0xff] }
 0x372   :  { %2588 = vmatpush.msra.mxu2 %v2531_v2  ;;  %2582 = vmatpush.msra.mxu1 %v2501_v9 }
 0x373   :  { %2563 = vmatpush.msra.mxu0 %v2532_v48 }
 0x374   :  { %2589 = vmatpush.msra.mxu2 %v2530_v14  ;;  %2583 = vmatpush.msra.mxu1 %v2500_v49  ;;  %v2662_v49 = vld [vmem:[%s4265_s13 + $0x8] sm:$0xff] }
 0x375   :  { %2708 = vmatpush.msrb.mxu0 %v2660_v29 }
 0x376   :  { %2590 = vmatpush.msra.mxu2 %v2529_v16 }
 0x378   :  { %2591 = vmatpush.msra.mxu2 %v2528_v18  ;;  %v2620_v18 = vld [vmem:[#allocation10 + $0x20] sm:$0xff] }
 0x379   :  { %2461 = vmatmul.f32.vlgmr.msrb.gmra.mxu2 %v2323_v11  ;;  %v2521_v11 = vld [vmem:[%s4259_s7 + $0xa8] sm:$0xff] }
 0x37a   :  { %2592 = vmatpush.msra.mxu2 %v2527_v31  ;;  %v2617_v31 = vld [vmem:[#allocation10 + $0x8] sm:$0xff] }
 0x37c   :  { %2593 = vmatpush.msra.mxu2 %v2526_v62  ;;  %v2674_v62 = vld [vmem:[%s4265_s13 + $0x68] sm:$0xff] }
 0x37e   :  { %2594 = vmatpush.msra.mxu2 %v2525_v59  ;;  %v2659_v59 = vld [vmem:[#allocation13 + $0x30] sm:$0xff] }
 0x37f   :  { %v2210_v51 = vpop.f32.mrf.mxu2  ;;  %2709 = vmatpush.msrb.mxu0 %v2659_v59 }
 0x380   :  { %v2211_v52 = vadd.f32 %v2210_v51, %v2191_v15  ;;  %2595 = vmatpush.msra.mxu2 %v2524_v43  ;;  %v4170_v15 = vld [vmem:[%s4254_s2] sm:$0xff]  ;;  %v2519_v51 = vld [vmem:[%s4259_s7 + $0x98] sm:$0xff]  ;;  %v2667_v43 = vld [vmem:[%s4265_s13 + $0x30] sm:$0xff] }
 0x381   :  { %2564 = vmatmul.f32.vlgmr.msra.gmra.mxu0 %v4170_v15 }
 0x382   :  { %2596 = vmatpush.msra.mxu2 %v2523_v1  ;;  %2710 = vmatpush.msrb.mxu0 %v2658_v35 }
 0x384   :  { %2597 = vmatpush.msra.mxu2 %v2522_v46  ;;  %2711 = vmatpush.msrb.mxu0 %v2657_v36 }
 0x386   :  { %2598 = vmatpush.msra.mxu2 %v2521_v11  ;;  %2712 = vmatpush.msrb.mxu0 %v2656_v34  ;;  %v2663_v11 = vld [vmem:[%s4265_s13 + $0x10] sm:$0xff] }
 0x388   :  { %2599 = vmatpush.msra.mxu2 %v2520_v23 }
 0x38a   :  { %2600 = vmatpush.msra.mxu2 %v2519_v51  ;;  %v2661_v51 = vld [vmem:[%s4265_s13] sm:$0xff] }
 0x38d   :  { %v2230_v19 = vpop.f32.mrf.mxu3 }
 0x38e   :  { %v2231_v7 = vadd.f32 %v2230_v19, %v2211_v52  ;;  %v2518_v52 = vld [vmem:[%s4259_s7 + $0x90] sm:$0xff]  ;;  %v2517_v19 = vld [vmem:[%s4259_s7 + $0x88] sm:$0xff] }
 0x38f   :  { %2601 = vmatpush.msra.mxu2 %v2518_v52 }
 0x390   :  { %v2251_v13 = vadd.f32 %v2250_v54, %v2231_v7  ;;  %v2516_v7 = vld [vmem:[%s4259_s7 + $0x80] sm:$0xff]  ;;  %v2342_v54 = vpop.f32.mrf.mxu0 }
 0x391   :  { %2602 = vmatpush.msra.mxu2 %v2517_v19 }
 0x392   :  { %v2271_v21 = vadd.f32 %v2270_v56, %v2251_v13 }
 0x393   :  { %2603 = vmatpush.msra.mxu2 %v2516_v7  ;;  %v2655_v7 = vld [vmem:[#allocation13 + $0x10] sm:$0xff] }
 0x394   :  { %2713 = vmatpush.msrb.mxu0 %v2655_v7 }
 0x3a8   :  { %v2290_v58 = vpop.f32.mrf.mxu2 }
 0x3a9   :  { %v2291_v63 = vadd.f32 %v2290_v58, %v2271_v21  ;;  %v2343_v21 = vadd.f32 %v2342_v54, %v1495_v60  ;;  %v2654_v54 = vld [vmem:[#allocation13 + $0x8] sm:$0xff] }
 0x3aa   :  { %2714 = vmatpush.msrb.mxu0 %v2654_v54 }
 0x3ab   :  { %v2310_v3 = vpop.f32.mrf.mxu3 }
 0x3ac   :  { %v2311_v30 = vadd.f32 %v2310_v3, %v2291_v63  ;;  %v2422_v3 = vpop.f32.mrf.mxu0 }
 0x3ad   :  { %v2423_v0 = vadd.f32 %v2422_v3, %v1496_v27 }
 0x3ae   :  { %vm2316_vm9 = vcmp.gt.f32.partialorder %v2311_v30, 0.0  ;;  %v2320_v4 = vmul.f32 0.2, %v2311_v30  ;;  %v2362_v56 = vpop.f32.mrf.mxu1 }
 0x3af   :  { %v2363_v58 = vadd.f32 %v2362_v56, %v2343_v21  ;;  %v2653_v56 = vld [vmem:[#allocation13] sm:$0xff] }
 0x3b0   :  { %v2324_v5 = vsel %vm2316_vm9, %v2311_v30, %v2320_v4  ;;  %2715 = vmatpush.msrb.mxu0 %v2653_v56 }
 0x3b1   :  { %2401 = vmatmul.f32.vlgmr.msra.gmra.mxu3 %v2324_v5 }
 0x3b2   :  { %2640 = vmatpush.msra.mxu3 %v2623_v26 }
 0x3b4   :  { %2641 = vmatpush.msra.mxu3 %v2622_v17 }
 0x3b9   :  { %2481 = vmatmul.f32.vlgmr.msrb.gmra.mxu3 %v2324_v5  ;;  %v2442_v5 = vpop.f32.mrf.mxu1 }
 0x3ba   :  { %v2443_v6 = vadd.f32 %v2442_v5, %v2423_v0 }
 0x3f4   :  { %v2382_v13 = vpop.f32.mrf.mxu2 }
 0x3f5   :  { %v2383_v63 = vadd.f32 %v2382_v13, %v2363_v58  ;;  %v2762_v13 = vld [vmem:[#allocation12] ss:$0 sm:$0xff] }
 0x3fc   :  { %v2462_v38 = vpop.f32.mrf.mxu2 }
 0x3fd   :  { %v2463_v8 = vadd.f32 %v2462_v38, %v2443_v6 }
 0x3fe   :  { %v2565_v45 = vpop.f32.mrf.mxu0 }
 0x434   :  { %v2402_v30 = vpop.f32.mrf.mxu3 }
 0x435   :  { %v2403_v4 = vadd.f32 %v2402_v30, %v2383_v63  ;;  %v2763_v30 = vld [vmem:[#allocation15] ss:$0 sm:$0xff] }
 0x437   :  { %vm2485_vm10 = vcmp.gt.f32.partialorder %v2403_v4, 0.0  ;;  %v2487_v50 = vmul.f32 0.2, %v2403_v4 }
 0x439   :  { %v2489_v33 = vsel %vm2485_vm10, %v2403_v4, %v2487_v50 }
 0x43a   :  { %2493 = vst [vmem:[%s4268_s16] sm:$0xff] %v2489_v33  ;;  %v2495_v60 = vadd.f32 %v2489_v33, %v3996_v55  ;;  %v2621_v55 = vld [vmem:[#allocation10 + $0x28] sm:$0xff] }
 0x43b   :  { %2642 = vmatpush.msra.mxu3 %v2621_v55 }
 0x43c   :  { %v2497_v2 = vmul.f32 0.5, %v2495_v60  ;;  %v2482_v57 = vpop.f32.mrf.mxu3 }
 0x43d   :  { %v2483_v12 = vadd.f32 %v2482_v57, %v2463_v8  ;;  %2643 = vmatpush.msra.mxu3 %v2620_v18 }
 0x43e   :  { %2584 = vmatmul.f32.vlgmr.msra.gmra.mxu1 %v2497_v2 }
 0x43f   :  { %vm2486_vm11 = vcmp.gt.f32.partialorder %v2483_v12, 0.0  ;;  %v2488_v14 = vmul.f32 0.2, %v2483_v12  ;;  %2644 = vmatpush.msra.mxu3 %v2619_v22 }
 0x441   :  { %v2490_v53 = vsel %vm2486_vm11, %v2483_v12, %v2488_v14  ;;  %2645 = vmatpush.msra.mxu3 %v2618_v25 }
 0x442   :  { %2494 = vst [vmem:[%s4268_s16 + $0x8] sm:$0xff] %v2490_v53  ;;  %v2496_v27 = vadd.f32 %v2490_v53, %v4003_v24  ;;  %v2676_v24 = vld [vmem:[%s4265_s13 + $0x78] sm:$0xff] }
 0x443   :  { %2646 = vmatpush.msra.mxu3 %v2617_v31 }
 0x444   :  { %v2498_v16 = vmul.f32 0.5, %v2496_v27 }
 0x445   :  { %2647 = vmatpush.msra.mxu3 %v2616_v61 }
 0x446   :  { %2604 = vmatmul.f32.vlgmr.msra.gmra.mxu2 %v2498_v16 }
 0x447   :  { %2677 = vmatpush.msrb.mxu3 %v2676_v24 }
 0x449   :  { %2678 = vmatpush.msrb.mxu3 %v2675_v42 }
 0x44b   :  { %2679 = vmatpush.msrb.mxu3 %v2674_v62 }
 0x44d   :  { %2680 = vmatpush.msrb.mxu3 %v2673_v28 }
 0x44f   :  { %2681 = vmatpush.msrb.mxu3 %v2672_v32 }
 0x451   :  { %2682 = vmatpush.msrb.mxu3 %v2671_v10 }
 0x453   :  { %2683 = vmatpush.msrb.mxu3 %v2670_v37 }
 0x455   :  { %2684 = vmatpush.msrb.mxu3 %v2669_v40 }
 0x457   :  { %2685 = vmatpush.msrb.mxu3 %v2668_v41 }
 0x459   :  { %2686 = vmatpush.msrb.mxu3 %v2667_v43 }
 0x45b   :  { %2687 = vmatpush.msrb.mxu3 %v2666_v44 }
 0x45d   :  { %2688 = vmatpush.msrb.mxu3 %v2665_v20 }
 0x45f   :  { %2689 = vmatpush.msrb.mxu3 %v2664_v39 }
 0x461   :  { %2690 = vmatpush.msrb.mxu3 %v2663_v11 }
 0x463   :  { %2691 = vmatpush.msrb.mxu3 %v2662_v49 }
 0x465   :  { %2692 = vmatpush.msrb.mxu3 %v2661_v51 }
 0x4bb   :  { %v2585_v1 = vpop.f32.mrf.mxu1 }
 0x4bc   :  { %v2586_v46 = vadd.f32 %v2585_v1, %v2565_v45 }
 0x4c9   :  { %v2605_v9 = vpop.f32.mrf.mxu2 }
 0x4ca   :  { %v2606_v48 = vadd.f32 %v2605_v9, %v2586_v46 }
 0x4cc   :  { %v2612_v23 = vadd.f32 %v2761_v47, %v2606_v48 }
 0x4ce   :  { %vm2613_vm12 = vcmp.gt.f32.partialorder %v2612_v23, 0.0  ;;  %v2614_v52 = vmul.f32 0.2, %v2612_v23 }
 0x4d0   :  { %v2615_v19 = vsel %vm2613_vm12, %v2612_v23, %v2614_v52 }
 0x4d1   :  { %2744 = vmatmul.msk.f32.vlgmr.msra.gmra.mxu3 %vm2628_vm13, %v2615_v19 }
 0x4d9   :  { %2693 = vmatmul.f32.vlgmr.msrb.gmra.mxu3 %v4170_v15 }
 0x554   :  { %v2649_v21 = vpop.f32.mrf.mxu3 }
 0x555   :  { %v2650_v58 = vadd.f32 %v2762_v13, %v2649_v21 }
 0x557   :  { %v2652_v63 = vmax.f32 %v2650_v58, 0.0 }
 0x559   :  { %2745 = vmatmul.msk.f32.vlgmr.msrb.gmra.mxu0 %vm2628_vm13, %v2652_v63 }
 0x55c   :  { %v2694_v3 = vpop.f32.mrf.mxu3 }
 0x5d6   :  { %v2717_v4 = vpop.f32.mrf.mxu0 }
 0x5d7   :  { %v2718_v5 = vadd.f32 %v2717_v4, %v2694_v3 }
 0x5d9   :  { %v2724_v0 = vadd.f32 %v2763_v30, %v2718_v5 }
 0x5db   :  { %2764 = vtanh.f32 %v2724_v0 }
 0x5e1   :  { %v2765_v50 = vpop.eup %2764 }
 0x5e2   :  { %2726 = vst.msk [vmem:[%s4269_s17] sm:$0xff] %vm2628_vm13, %v2765_v50 }
 0x5e3   :  { %2739 = vsyncpa [#allocation3], 1 }
 0x5e4   :  { %2740 = vsyncpa [#allocation5], 1 }
 0x5e5   :  { %2741 = vsyncpa [#allocation8], 1 }
 0x5e6   :  { %2742 = vsyncpa [#allocation11], 1 }
 0x5e7   :  { %2743 = vsyncpa [#allocation14], 1 }

</bundles_post_ra>
